<compile_context>
chip_gen: v7x
topology: tpu7x:2x2x1
jax: 0.10.0
libtpu: 0.0.40
codegen_flags: <defaults>
</compile_context>

<pallas_src>
import math
import functools

import jax
import jax.numpy as jnp
from jax import lax
from jax.experimental import pallas as pl
from jax.experimental.pallas import tpu as pltpu

NEG_SLOPE = 0.1            # module default: LeakyReLU(negative_slope=0.1)
_FOLD_ALL_MAX_CIN = 64     # fold all 9 taps when Cin <= 64 (contraction K = 9*Cin <= 576)

_MB = 1024 * 1024
try:
    _VMEM_CAP = int(pltpu.get_tpu_info().vmem_capacity_bytes)
except Exception:          # conservative default (v7x per-core VMEM)
    _VMEM_CAP = 64 * _MB
_TILE_BUDGET = max(12 * _MB, min(int(_VMEM_CAP * 0.40), 48 * _MB))
_VMEM_LIMIT = max(32 * _MB, min(int(_VMEM_CAP * 3 // 4), 64 * _MB))


def _round_up(x, m):
    return ((x + m - 1) // m) * m


def conv2d_leakyrelu_nhwc(x_nhwc, weight_oikk, *, mxu_dtype=None, out_dtype=None):
    """One fused Conv2d(3x3, stride=1, 'same', bias=False) + LeakyReLU(0.1) layer.

    x_nhwc : (N, H, W, Cc) NHWC activations; Cc >= weight Cin, channels [Cin:] are the
             zero lane-padding carried from the previous layer's lane-dense store.
    weight_oikk : (Cout, Cin, K, K)  (PyTorch OIHW).
    Returns (N, H, W, Cout_store) NHWC; channels [Cout:Cout_store] are exactly zero.
    """
    N, H, W, Cc = x_nhwc.shape
    Cout, Cin, K, K2 = weight_oikk.shape
    assert K == K2 and K % 2 == 1 and Cin <= Cc
    pad = K // 2
    Wp = W + 2 * pad
    cdt = jnp.dtype(mxu_dtype) if mxu_dtype is not None else x_nhwc.dtype
    odt = jnp.dtype(out_dtype) if out_dtype is not None else x_nhwc.dtype
    cbytes = jnp.dtype(cdt).itemsize
    obytes = jnp.dtype(odt).itemsize

    # ---- channel store width: lane-dense (multiple of 128) unless the padding is wasteful ----
    Cout_128 = _round_up(Cout, 128)
    Cout_store = Cout_128 if Cout_128 <= 2 * Cout else Cout

    # ---- weights: OIHW -> (kh, kw, cin, cout); zero-pad cin -> Cc and cout -> Cout_store ----
    w = jnp.transpose(weight_oikk, (2, 3, 1, 0)).astype(cdt)
    w = jnp.pad(w, ((0, 0), (0, 0), (0, Cc - Cin), (0, Cout_store - Cout)))

    fold_all = Cc <= _FOLD_ALL_MAX_CIN

    # ---- Cout tiling: prefer fully VMEM-resident weights (n_c == 1) ----
    if Cout_store <= 512:
        tile_c = Cout_store
    elif Cout_store % 256 == 0:
        tile_c = 256
    else:
        tile_c = 128            # Cout_store > 512 is always a multiple of 128
    n_c = Cout_store // tile_c
    w_bytes = K * K * Cc * tile_c * cbytes

    # ---- row tiling from the VMEM budget ----
    def step_bytes(th):
        hin = th + 2 * pad
        in_t = hin * Wp * Cc * cbytes * 2            # double-buffered input tile
        out_t = th * W * tile_c * obytes * 2         # double-buffered output tile
        acc = th * W * tile_c * 4
        if fold_all:
            scratch = th * W * K * K * Cc * cbytes + acc
        else:
            scratch = hin * W * K * Cc * cbytes + acc
        return in_t + out_t + w_bytes + scratch

    if step_bytes(H) <= _TILE_BUDGET:
        tile_h, n_h, use_gather = H, 1, False        # full-H slab: no halo gather needed
    else:
        # Large-image fallback: row tiling with a wrapper-side overlapping-window gather.
        # TODO(synk): replace with in-kernel halo DMA (memory_space=pl.ANY +
        #             pltpu.make_async_copy) to avoid the extra HBM pass for very large maps.
        tile_h = H
        while tile_h > 8 and step_bytes(tile_h) > _TILE_BUDGET:
            tile_h = max(8, tile_h // 2)
        n_h = -(-H // tile_h)
        use_gather = True

    Hg = n_h * tile_h                                # grid-covered rows (>= H)
    Hb = tile_h + 2 * pad

    # ---- spatial 'same' padding: the single wrapper-side XLA pass per layer ----
    x_pad = jnp.pad(x_nhwc.astype(cdt),
                    ((0, 0), (pad, Hg - H + pad), (pad, pad), (0, 0)))

    if use_gather:
        row = jnp.arange(n_h)[:, None] * tile_h + jnp.arange(Hb)[None, :]
        x_arg = x_pad[:, row].reshape(N * n_h, Hb, Wp, Cc)
        x_spec = pl.BlockSpec((1, Hb, Wp, Cc), lambda c, n, h: (n * n_h + h, 0, 0, 0))
    else:
        x_arg = x_pad                                # (N, Hb, Wp, Cc)
        x_spec = pl.BlockSpec((1, Hb, Wp, Cc), lambda c, n, h: (n, 0, 0, 0))

    if fold_all:
        # One (tile_h*W, K*K*Cc) x (K*K*Cc, tile_c) matmul per tile.
        w_arg = w.reshape(K * K * Cc, Cout_store)
        w_spec = pl.BlockSpec((K * K * Cc, tile_c), lambda c, n, h: (0, c))

        def kernel(x_ref, w_ref, o_ref):
            # Build the 3 kw-shifted slabs once (sublane shifts) and reuse across kh.
            slabs = [x_ref[0, :, kw:kw + W, :] for kw in range(K)]      # each (Hb, W, Cc)
            taps = [slabs[kw][kh:kh + tile_h] for kh in range(K) for kw in range(K)]
            patch = jnp.concatenate(taps, axis=-1).reshape(tile_h * W, K * K * Cc)
            acc = jnp.dot(patch, w_ref[...], preferred_element_type=jnp.float32)
            y = jnp.where(acc >= 0.0, acc, NEG_SLOPE * acc)             # LeakyReLU(0.1), f32
            o_ref[0] = y.reshape(tile_h, W, tile_c).astype(o_ref.dtype)
    else:
        # Fold only the kw taps: 3 matmuls with contraction depth 3*Cc.
        w_arg = w.reshape(K, K * Cc, Cout_store)
        w_spec = pl.BlockSpec((K, K * Cc, tile_c), lambda c, n, h: (0, 0, c))

        def kernel(x_ref, w_ref, o_ref):
            slab = jnp.concatenate([x_ref[0, :, kw:kw + W, :] for kw in range(K)],
                                   axis=-1)                              # (Hb, W, K*Cc)
            acc = jnp.zeros((tile_h * W, tile_c), jnp.float32)
            for kh in range(K):
                tap = slab[kh:kh + tile_h].reshape(tile_h * W, K * Cc)
                acc = acc + jnp.dot(tap, w_ref[kh], preferred_element_type=jnp.float32)
            y = jnp.where(acc >= 0.0, acc, NEG_SLOPE * acc)
            o_ref[0] = y.reshape(tile_h, W, tile_c).astype(o_ref.dtype)

    o_spec = pl.BlockSpec((1, tile_h, W, tile_c), lambda c, n, h: (n, h, 0, c))

    flops = 2 * K * K * Cc * Cout_store * N * Hg * W
    bytes_accessed = int(x_arg.size) * cbytes + N * Hg * W * Cout_store * obytes \
        + int(w_arg.size) * cbytes

    y = pl.pallas_call(
        kernel,
        out_shape=jax.ShapeDtypeStruct((N, Hg, W, Cout_store), odt),
        grid=(n_c, N, n_h),                          # Cout outermost -> weight stays resident
        in_specs=[x_spec, w_spec],
        out_specs=o_spec,
        compiler_params=pltpu.CompilerParams(
            dimension_semantics=("parallel", "parallel", "parallel"),
            vmem_limit_bytes=_VMEM_LIMIT),
        cost_estimate=pl.CostEstimate(flops=flops, transcendentals=0,
                                      bytes_accessed=bytes_accessed),
    )(x_arg, w_arg)

    if Hg != H:
        y = y[:, :H]
    return y


def vgg_block_forward(x_nchw, weights, *, stride=1, mxu_dtype=None):
    """VGGNetBlock.forward: n_conv x [Conv2d(3x3, 'same', bias=False) + LeakyReLU(0.1)].

    NCHW in / NCHW out (PyTorch semantics).  Internally the activation chain stays NHWC with
    lane-padded channels; NCHW<->NHWC transposes and the lane-padding slice happen once.
    If mxu_dtype=bfloat16, activations are carried in bf16 between layers (MXU feed is bf16
    with f32 accumulation); the f32 path keeps the TPU's default matmul precision.
    """
    # TODO(synk): stride != 1 on the last conv and use_batch_norm=True (BatchNorm2d) are not
    #             implemented (module defaults: stride=1, use_batch_norm=False).
    assert stride == 1, "only stride=1 (module default) is implemented"
    in_dtype = x_nchw.dtype
    carry_dtype = jnp.dtype(mxu_dtype) if mxu_dtype is not None else in_dtype
    y = jnp.transpose(x_nchw, (0, 2, 3, 1)).astype(carry_dtype)      # NCHW -> NHWC, once
    for w in weights:
        y = conv2d_leakyrelu_nhwc(y, w, mxu_dtype=mxu_dtype, out_dtype=carry_dtype)
    Cout = weights[-1].shape[0]
    y = y[..., :Cout].astype(in_dtype)                               # drop lane padding, once
    return jnp.transpose(y, (0, 3, 1, 2))                            # NHWC -> NCHW, once


def _reference(x_nchw, weights):
    y = x_nchw.astype(jnp.float32)
    for w in weights:
        y = lax.conv_general_dilated(
            y, w.astype(jnp.float32), window_strides=(1, 1), padding="SAME",
            dimension_numbers=("NCHW", "OIHW", "NCHW"))
        y = jnp.where(y >= 0, y, NEG_SLOPE * y)
    return y


def _kaiming_uniform(key, cout, cin, k):
    # PyTorch Conv2d default init (kaiming_uniform_, a=sqrt(5)) => U(+-1/sqrt(fan_in))
    fan_in = cin * k * k
    bound = 1.0 / math.sqrt(fan_in)
    return jax.random.uniform(key, (cout, cin, k, k), jnp.float32, minval=-bound, maxval=bound)


if __name__ == "__main__":
    key = jax.random.PRNGKey(0)
    kx, kw1, kw2, kx2, kw3, kw4 = jax.random.split(key, 6)

    # --- Test 1: VGGNetBlock(in_channels=4, out_channels=8, n_conv=2), batch=2, 16x16 ---
    N, Cin, H, W, Cout, K = 2, 4, 16, 16, 8, 3
    x = jax.random.normal(kx, (N, Cin, H, W), dtype=jnp.float32)
    weights = [_kaiming_uniform(kw1, Cout, Cin, K), _kaiming_uniform(kw2, Cout, Cout, K)]
    y_ref = _reference(x, weights)

    # f32 MXU feed (tight check vs the lax.conv reference at the same default precision)
    fwd_f32 = jax.jit(functools.partial(vgg_block_forward, weights=weights))
    y = jax.block_until_ready(fwd_f32(x))
    assert y.shape == (N, Cout, H, W)
    assert jnp.allclose(y, y_ref, atol=1e-5, rtol=1e-5), "f32 path mismatch vs reference"

    # bf16 MXU feed + bf16 activation carry, f32 accumulation; loose tolerance.
    fwd_bf16 = jax.jit(functools.partial(vgg_block_forward, weights=weights,
                                         mxu_dtype=jnp.bfloat16))
    y_b = jax.block_until_ready(fwd_bf16(x))
    assert y_b.dtype == x.dtype
    assert float(jnp.max(jnp.abs(y_b - y_ref))) < 0.1, "bf16 path deviates too much"

    # --- Test 2: 2-conv block at Cin=Cout=64: exercises the fold-all path (K=576), the
    #     lane-padded channel carry (64 stored as 128), and the kw-fold path (Cc=128 > 64). ---
    C2 = 64
    x2 = jax.random.normal(kx2, (1, C2, 16, 16), dtype=jnp.float32)
    w2 = [_kaiming_uniform(kw3, C2, C2, K), _kaiming_uniform(kw4, C2, C2, K)]
    fwd2 = jax.jit(functools.partial(vgg_block_forward, weights=w2))
    y2 = jax.block_until_ready(fwd2(x2))
    y2_ref = _reference(x2, w2)
    assert y2.shape == (1, C2, 16, 16)
    assert jnp.allclose(y2, y2_ref, atol=5e-4, rtol=5e-4), "deep-channel path mismatch vs reference"

    print("KERNEL_OK")
</pallas_src>

<mosaic_0001>
module attributes {stable_mosaic.version = 11 : i64} {
  func.func @kernel(%arg0: i32, %arg1: i32, %arg2: i32, %arg3: memref<1x18x18x4xf32, #tpu.memory_space<vmem>>, %arg4: memref<36x8xf32, #tpu.memory_space<vmem>>, %arg5: memref<1x16x16x8xf32, #tpu.memory_space<vmem>>) attributes {dimension_semantics = [#tpu.dimension_semantics<parallel>, #tpu.dimension_semantics<parallel>, #tpu.dimension_semantics<parallel>], iteration_bounds = array<i64: 1, 2, 1>, scalar_prefetch = 0 : i64, scratch_operands = 0 : i64, tpu.core_type = #tpu.core_type<tc>, window_params = [{transform_indices = @transform_0, window_bounds = array<i64: 1, 18, 18, 4>}, {transform_indices = @transform_1, window_bounds = array<i64: 36, 8>}, {transform_indices = @transform_2, window_bounds = array<i64: 1, 16, 16, 8>}]} {
    %c0 = arith.constant 0 : index
    %c0_0 = arith.constant 0 : index
    %c0_1 = arith.constant 0 : index
    %c0_2 = arith.constant 0 : index
    %0 = vector.load %arg3[%c0, %c0_0, %c0_1, %c0_2] : memref<1x18x18x4xf32, #tpu.memory_space<vmem>>, vector<1x18x16x4xf32>
    %1 = vector.shape_cast %0 : vector<1x18x16x4xf32> to vector<18x16x4xf32>
    %c0_3 = arith.constant 0 : index
    %c0_4 = arith.constant 0 : index
    %c1 = arith.constant 1 : index
    %c0_5 = arith.constant 0 : index
    %2 = vector.load %arg3[%c0_3, %c0_4, %c1, %c0_5] : memref<1x18x18x4xf32, #tpu.memory_space<vmem>>, vector<1x18x16x4xf32>
    %3 = vector.shape_cast %2 : vector<1x18x16x4xf32> to vector<18x16x4xf32>
    %c0_6 = arith.constant 0 : index
    %c0_7 = arith.constant 0 : index
    %c2 = arith.constant 2 : index
    %c0_8 = arith.constant 0 : index
    %4 = vector.load %arg3[%c0_6, %c0_7, %c2, %c0_8] : memref<1x18x18x4xf32, #tpu.memory_space<vmem>>, vector<1x18x16x4xf32>
    %5 = vector.shape_cast %4 : vector<1x18x16x4xf32> to vector<18x16x4xf32>
    %6 = vector.extract_strided_slice %1 {offsets = [0, 0, 0], sizes = [16, 16, 4], strides = [1, 1, 1]} : vector<18x16x4xf32> to vector<16x16x4xf32>
    %7 = vector.extract_strided_slice %3 {offsets = [0, 0, 0], sizes = [16, 16, 4], strides = [1, 1, 1]} : vector<18x16x4xf32> to vector<16x16x4xf32>
    %8 = vector.extract_strided_slice %5 {offsets = [0, 0, 0], sizes = [16, 16, 4], strides = [1, 1, 1]} : vector<18x16x4xf32> to vector<16x16x4xf32>
    %9 = vector.extract_strided_slice %1 {offsets = [1, 0, 0], sizes = [16, 16, 4], strides = [1, 1, 1]} : vector<18x16x4xf32> to vector<16x16x4xf32>
    %10 = vector.extract_strided_slice %3 {offsets = [1, 0, 0], sizes = [16, 16, 4], strides = [1, 1, 1]} : vector<18x16x4xf32> to vector<16x16x4xf32>
    %11 = vector.extract_strided_slice %5 {offsets = [1, 0, 0], sizes = [16, 16, 4], strides = [1, 1, 1]} : vector<18x16x4xf32> to vector<16x16x4xf32>
    %12 = vector.extract_strided_slice %1 {offsets = [2, 0, 0], sizes = [16, 16, 4], strides = [1, 1, 1]} : vector<18x16x4xf32> to vector<16x16x4xf32>
    %13 = vector.extract_strided_slice %3 {offsets = [2, 0, 0], sizes = [16, 16, 4], strides = [1, 1, 1]} : vector<18x16x4xf32> to vector<16x16x4xf32>
    %14 = vector.extract_strided_slice %5 {offsets = [2, 0, 0], sizes = [16, 16, 4], strides = [1, 1, 1]} : vector<18x16x4xf32> to vector<16x16x4xf32>
    %15 = tpu.concatenate %6, %7, %8, %9, %10, %11, %12, %13, %14 in 2 : vector<16x16x4xf32>, vector<16x16x4xf32>, vector<16x16x4xf32>, vector<16x16x4xf32>, vector<16x16x4xf32>, vector<16x16x4xf32>, vector<16x16x4xf32>, vector<16x16x4xf32>, vector<16x16x4xf32> -> vector<16x16x36xf32>
    %16 = vector.shape_cast %15 : vector<16x16x36xf32> to vector<256x36xf32>
    %c0_9 = arith.constant 0 : index
    %c0_10 = arith.constant 0 : index
    %17 = vector.load %arg4[%c0_9, %c0_10] : memref<36x8xf32, #tpu.memory_space<vmem>>, vector<36x8xf32>
    %cst = arith.constant dense<0.000000e+00> : vector<256x8xf32>
    %18 = tpu.matmul %16, %17, %cst {dimension_numbers = #tpu.dot_dimension_numbers<[1], [0], [0], [1], [0, 0, 1, 1], [], []>} : vector<256x36xf32>, vector<36x8xf32>, vector<256x8xf32> -> vector<256x8xf32>
    %cst_11 = arith.constant 0.000000e+00 : f32
    %19 = vector.broadcast %cst_11 : f32 to vector<256x8xf32>
    %20 = arith.cmpf oge, %18, %19 : vector<256x8xf32>
    %cst_12 = arith.constant 1.000000e-01 : f32
    %21 = vector.broadcast %cst_12 : f32 to vector<256x8xf32>
    %22 = arith.mulf %21, %18 : vector<256x8xf32>
    %23 = arith.select %20, %18, %22 : vector<256x8xi1>, vector<256x8xf32>
    %24 = vector.shape_cast %23 : vector<256x8xf32> to vector<16x16x8xf32>
    %c0_13 = arith.constant 0 : index
    %c0_14 = arith.constant 0 : index
    %c0_15 = arith.constant 0 : index
    %c0_16 = arith.constant 0 : index
    %25 = vector.load %arg5[%c0_13, %c0_14, %c0_15, %c0_16] : memref<1x16x16x8xf32, #tpu.memory_space<vmem>>, vector<1x16x16x8xf32>
    %26 = vector.shape_cast %25 : vector<1x16x16x8xf32> to vector<16x16x8xf32>
    %27 = vector.shape_cast %24 : vector<16x16x8xf32> to vector<1x16x16x8xf32>
    tpu.vector_store %arg5[%c0_13, %c0_14, %c0_15, %c0_16], %27 {strides = array<i32>} : memref<1x16x16x8xf32, #tpu.memory_space<vmem>>, vector<1x16x16x8xf32>,
    return
  }
  func.func @transform_0(%arg0: i32, %arg1: i32, %arg2: i32) -> (i32, i32, i32, i32) {
    %c0_i32 = arith.constant 0 : i32
    %c0_i32_0 = arith.constant 0 : i32
    %c0_i32_1 = arith.constant 0 : i32
    %c0_i32_2 = arith.constant 0 : i32
    return %arg1, %c0_i32, %c0_i32_0, %c0_i32_1 : i32, i32, i32, i32
  }
  func.func @transform_1(%arg0: i32, %arg1: i32, %arg2: i32) -> (i32, i32) {
    %c0_i32 = arith.constant 0 : i32
    %c0_i32_0 = arith.constant 0 : i32
    return %c0_i32, %arg0 : i32, i32
  }
  func.func @transform_2(%arg0: i32, %arg1: i32, %arg2: i32) -> (i32, i32, i32, i32) {
    %c0_i32 = arith.constant 0 : i32
    %c0_i32_0 = arith.constant 0 : i32
    return %arg1, %arg2, %c0_i32, %arg0 : i32, i32, i32, i32
  }
}

module attributes {stable_mosaic.version = 11 : i64} {
  func.func @kernel(%arg0: i32, %arg1: i32, %arg2: i32, %arg3: memref<1x18x18x8xf32, #tpu.memory_space<vmem>>, %arg4: memref<72x8xf32, #tpu.memory_space<vmem>>, %arg5: memref<1x16x16x8xf32, #tpu.memory_space<vmem>>) attributes {dimension_semantics = [#tpu.dimension_semantics<parallel>, #tpu.dimension_semantics<parallel>, #tpu.dimension_semantics<parallel>], iteration_bounds = array<i64: 1, 2, 1>, scalar_prefetch = 0 : i64, scratch_operands = 0 : i64, tpu.core_type = #tpu.core_type<tc>, window_params = [{transform_indices = @transform_0, window_bounds = array<i64: 1, 18, 18, 8>}, {transform_indices = @transform_1, window_bounds = array<i64: 72, 8>}, {transform_indices = @transform_2, window_bounds = array<i64: 1, 16, 16, 8>}]} {
    %c0 = arith.constant 0 : index
    %c0_0 = arith.constant 0 : index
    %c0_1 = arith.constant 0 : index
    %c0_2 = arith.constant 0 : index
    %0 = vector.load %arg3[%c0, %c0_0, %c0_1, %c0_2] : memref<1x18x18x8xf32, #tpu.memory_space<vmem>>, vector<1x18x16x8xf32>
    %1 = vector.shape_cast %0 : vector<1x18x16x8xf32> to vector<18x16x8xf32>
    %c0_3 = arith.constant 0 : index
    %c0_4 = arith.constant 0 : index
    %c1 = arith.constant 1 : index
    %c0_5 = arith.constant 0 : index
    %2 = vector.load %arg3[%c0_3, %c0_4, %c1, %c0_5] : memref<1x18x18x8xf32, #tpu.memory_space<vmem>>, vector<1x18x16x8xf32>
    %3 = vector.shape_cast %2 : vector<1x18x16x8xf32> to vector<18x16x8xf32>
    %c0_6 = arith.constant 0 : index
    %c0_7 = arith.constant 0 : index
    %c2 = arith.constant 2 : index
    %c0_8 = arith.constant 0 : index
    %4 = vector.load %arg3[%c0_6, %c0_7, %c2, %c0_8] : memref<1x18x18x8xf32, #tpu.memory_space<vmem>>, vector<1x18x16x8xf32>
    %5 = vector.shape_cast %4 : vector<1x18x16x8xf32> to vector<18x16x8xf32>
    %6 = vector.extract_strided_slice %1 {offsets = [0, 0, 0], sizes = [16, 16, 8], strides = [1, 1, 1]} : vector<18x16x8xf32> to vector<16x16x8xf32>
    %7 = vector.extract_strided_slice %3 {offsets = [0, 0, 0], sizes = [16, 16, 8], strides = [1, 1, 1]} : vector<18x16x8xf32> to vector<16x16x8xf32>
    %8 = vector.extract_strided_slice %5 {offsets = [0, 0, 0], sizes = [16, 16, 8], strides = [1, 1, 1]} : vector<18x16x8xf32> to vector<16x16x8xf32>
    %9 = vector.extract_strided_slice %1 {offsets = [1, 0, 0], sizes = [16, 16, 8], strides = [1, 1, 1]} : vector<18x16x8xf32> to vector<16x16x8xf32>
    %10 = vector.extract_strided_slice %3 {offsets = [1, 0, 0], sizes = [16, 16, 8], strides = [1, 1, 1]} : vector<18x16x8xf32> to vector<16x16x8xf32>
    %11 = vector.extract_strided_slice %5 {offsets = [1, 0, 0], sizes = [16, 16, 8], strides = [1, 1, 1]} : vector<18x16x8xf32> to vector<16x16x8xf32>
    %12 = vector.extract_strided_slice %1 {offsets = [2, 0, 0], sizes = [16, 16, 8], strides = [1, 1, 1]} : vector<18x16x8xf32> to vector<16x16x8xf32>
    %13 = vector.extract_strided_slice %3 {offsets = [2, 0, 0], sizes = [16, 16, 8], strides = [1, 1, 1]} : vector<18x16x8xf32> to vector<16x16x8xf32>
    %14 = vector.extract_strided_slice %5 {offsets = [2, 0, 0], sizes = [16, 16, 8], strides = [1, 1, 1]} : vector<18x16x8xf32> to vector<16x16x8xf32>
    %15 = tpu.concatenate %6, %7, %8, %9, %10, %11, %12, %13, %14 in 2 : vector<16x16x8xf32>, vector<16x16x8xf32>, vector<16x16x8xf32>, vector<16x16x8xf32>, vector<16x16x8xf32>, vector<16x16x8xf32>, vector<16x16x8xf32>, vector<16x16x8xf32>, vector<16x16x8xf32> -> vector<16x16x72xf32>
    %16 = vector.shape_cast %15 : vector<16x16x72xf32> to vector<256x72xf32>
    %c0_9 = arith.constant 0 : index
    %c0_10 = arith.constant 0 : index
    %17 = vector.load %arg4[%c0_9, %c0_10] : memref<72x8xf32, #tpu.memory_space<vmem>>, vector<72x8xf32>
    %cst = arith.constant dense<0.000000e+00> : vector<256x8xf32>
    %18 = tpu.matmul %16, %17, %cst {dimension_numbers = #tpu.dot_dimension_numbers<[1], [0], [0], [1], [0, 0, 1, 1], [], []>} : vector<256x72xf32>, vector<72x8xf32>, vector<256x8xf32> -> vector<256x8xf32>
    %cst_11 = arith.constant 0.000000e+00 : f32
    %19 = vector.broadcast %cst_11 : f32 to vector<256x8xf32>
    %20 = arith.cmpf oge, %18, %19 : vector<256x8xf32>
    %cst_12 = arith.constant 1.000000e-01 : f32
    %21 = vector.broadcast %cst_12 : f32 to vector<256x8xf32>
    %22 = arith.mulf %21, %18 : vector<256x8xf32>
    %23 = arith.select %20, %18, %22 : vector<256x8xi1>, vector<256x8xf32>
    %24 = vector.shape_cast %23 : vector<256x8xf32> to vector<16x16x8xf32>
    %c0_13 = arith.constant 0 : index
    %c0_14 = arith.constant 0 : index
    %c0_15 = arith.constant 0 : index
    %c0_16 = arith.constant 0 : index
    %25 = vector.load %arg5[%c0_13, %c0_14, %c0_15, %c0_16] : memref<1x16x16x8xf32, #tpu.memory_space<vmem>>, vector<1x16x16x8xf32>
    %26 = vector.shape_cast %25 : vector<1x16x16x8xf32> to vector<16x16x8xf32>
    %27 = vector.shape_cast %24 : vector<16x16x8xf32> to vector<1x16x16x8xf32>
    tpu.vector_store %arg5[%c0_13, %c0_14, %c0_15, %c0_16], %27 {strides = array<i32>} : memref<1x16x16x8xf32, #tpu.memory_space<vmem>>, vector<1x16x16x8xf32>,
    return
  }
  func.func @transform_0(%arg0: i32, %arg1: i32, %arg2: i32) -> (i32, i32, i32, i32) {
    %c0_i32 = arith.constant 0 : i32
    %c0_i32_0 = arith.constant 0 : i32
    %c0_i32_1 = arith.constant 0 : i32
    %c0_i32_2 = arith.constant 0 : i32
    return %arg1, %c0_i32, %c0_i32_0, %c0_i32_1 : i32, i32, i32, i32
  }
  func.func @transform_1(%arg0: i32, %arg1: i32, %arg2: i32) -> (i32, i32) {
    %c0_i32 = arith.constant 0 : i32
    %c0_i32_0 = arith.constant 0 : i32
    return %c0_i32, %arg0 : i32, i32
  }
  func.func @transform_2(%arg0: i32, %arg1: i32, %arg2: i32) -> (i32, i32, i32, i32) {
    %c0_i32 = arith.constant 0 : i32
    %c0_i32_0 = arith.constant 0 : i32
    return %arg1, %arg2, %c0_i32, %arg0 : i32, i32, i32, i32
  }
}

</mosaic_0001>

<bundles_post_ra>
// kernel: vgg_block_forward.2
= control target key start
LH: loop header
LB: loop body
LE: loop exit
PB: predicated region body
PF: predicated region fallthrough
CT: control target
= control target key end

     0   :  { %s2281_s9 = smov 0   ;;  %s2283_s10 = smov 0   ;;  %s3813_s0 = inlined_call_operand.vmem [shape: f32[2,18,18,4], index: 0, kind: input, shape index: {}]   ;;  %s3814_s1 = inlined_call_operand.vmem [shape: f32[36,8], index: 1, kind: input, shape index: {}]   ;;  %s3815_s2 = inlined_call_operand.vmem [shape: f32[2,16,16,8], index: 2, kind: output, shape index: {}]  }
   0x1   :  { %s2285_s11 = smov 0  }
   0x2 LB: > { %s27_s12 = sadd.s32 1, %s2252_s10  ;;  %p2026_p0 = scmp.ge.s32.totalorder %s2256_s11, 1  ;;  %s2256_s11 = sphi %s2285_s11, %s12_s11   ;;  %s2252_s10 = sphi %s2283_s10, %s4031_s10   ;;  %s2248_s9 = sphi %s2281_s9, %s4030_s9  }
   0x3   : > { %p29_p1 = scmp.ge.s32.totalorder %s27_s12, 2  ;;  %p144_p2 = scmp.lt.s32.totalorder %s2256_s11, 3 }
   0x5   : > { %s4033_s12 = smov (%p29_p1, %s27_s12), 0  ;;  %p145_p3 = pnand %p2026_p0, %p144_p2 }
   0x7   : > { %148 = sbr.rel (%p145_p3) target bundleno = 865 (0x361), region = 28 }
   0xe   : > { %p178_p4 = scmp.lt.s32.totalorder %s2248_s9, 1  ;;  %s2258_s17 = smov 4   ;;  %vm1183_vm0 = vcmask 31744   ;;  %vm1549_vm1 = vcmask 1043456   ;;  %vm1216_vm2 = vcmask 64512   ;;  %vm1249_vm3 = vcmask 97280  }
   0xf   : > { %s2259_s18 = smov 8   ;;  %s2260_s19 = smov 12   ;;  %vm1282_vm4 = vcmask 130048   ;;  %vm1315_vm5 = vcmask 162816   ;;  %vm1348_vm6 = vcmask 195584   ;;  %vm1381_vm7 = vcmask 228352  }
  0x10   : > { %s4035_s9 = smov (!%p178_p4, %s2248_s9), 1  ;;  %s2261_s20 = smov 16   ;;  %vm1414_vm8 = vcmask 261120   ;;  %vm1452_vm9 = vcmask 293888  }
  0x11   : > { %s2175_s13 = smul.u32 432, %s4035_s9  ;;  %s2262_s21 = smov 20  }
  0x12   : > { %s2263_s22 = smov 24   ;;  %s2264_s27 = smov 28  }
  0x13   : > { %s2305_s16 = scalar_lea.vmem %s3813_s0, %s2175_s13  ;;  %s2265_s6 = smov 32  }
  0x14   : > { %v2308_v0 = vld [vmem:[%s2305_s16 + $0x19] sm:$0xff]  ;;  %v237_v1 = vld [vmem:[%s2305_s16 + $0x1] sm:$0xff]  ;;  %v238_v3 = vld [vmem:[%s2305_s16 + $0x9] sm:$0xff]  ;;  %s2065_s7 = sshll.u32 %s4035_s9, 8 }
  0x15   : > { %345 = vrot.lane.b32.xlu1 %v2308_v0, %s2258_s17  ;;  %341 = vrot.lane.b32.xlu0 %v237_v1, %s2258_s17  ;;  %v2315_v2 = vld [vmem:[%s2305_s16 + $0x21] sm:$0xff]  ;;  %v2322_v4 = vld [vmem:[%s2305_s16 + $0x39] sm:$0xff]  ;;  %s3672_s14 = scalar_lea.vmem %s3815_s2, %s2065_s7 }
  0x16   : > { %v2325_v5 = vld [vmem:[%s2305_s16 + $0x31] sm:$0xff]  ;;  %v2335_v7 = vld [vmem:[%s2305_s16 + $0x49] sm:$0xff]  ;;  %v2345_v9 = vld [vmem:[%s2305_s16 + $0x61] sm:$0xff] }
  0x17   : > { %v2332_v6 = vld [vmem:[%s2305_s16 + $0x51] sm:$0xff]  ;;  %v2342_v8 = vld [vmem:[%s2305_s16 + $0x69] sm:$0xff]  ;;  %3879 = vst [vmem:[#allocation3_spill] sm:$0xff] %v2345_v9  ;;  %v2352_v10 = vld [vmem:[%s2305_s16 + $0x81] sm:$0xff] }
  0x18   : > { %3878 = vst [vmem:[#allocation2_spill] sm:$0xff] %v2342_v8  ;;  %3880 = vst [vmem:[#allocation4_spill] sm:$0xff] %v2352_v10  ;;  %v2355_v11 = vld [vmem:[%s2305_s16 + $0x79] sm:$0xff]  ;;  %v249_v13 = vld [vmem:[%s2305_s16 + $0x91] sm:$0xff] }
  0x19   : > { %347 = vrot.lane.b32.xlu1 %v2315_v2, %s2258_s17  ;;  %343 = vrot.lane.b32.xlu0 %v238_v3, %s2258_s17  ;;  %3881 = vst [vmem:[#allocation5_spill] sm:$0xff] %v2355_v11  ;;  %v250_v12 = vld [vmem:[%s2305_s16 + $0x99] sm:$0xff]  ;;  %v252_v14 = vld [vmem:[%s2305_s16 + $0xb1] sm:$0xff] }
  0x1a   : > { %v251_v15 = vld [vmem:[%s2305_s16 + $0xa9] sm:$0xff]  ;;  %v253_v17 = vld [vmem:[%s2305_s16 + $0xc1] sm:$0xff]  ;;  %v2377_v19 = vld [vmem:[%s2305_s16 + $0xd9] sm:$0xff] }
  0x1b   : > { %v254_v16 = vld [vmem:[%s2305_s16 + $0xc9] sm:$0xff]  ;;  %v2374_v18 = vld [vmem:[%s2305_s16 + $0xe1] sm:$0xff]  ;;  %v2384_v20 = vld [vmem:[%s2305_s16 + $0xf9] sm:$0xff] }
  0x1c   : > { %v2387_v21 = vld [vmem:[%s2305_s16 + $0xf1] sm:$0xff]  ;;  %v2397_v23 = vld [vmem:[%s2305_s16 + $0x109] sm:$0xff]  ;;  %v2407_v25 = vld [vmem:[%s2305_s16 + $0x121] sm:$0xff] }
  0x1d   : > { %351 = vrot.lane.b32.xlu1 %v2322_v4, %s2258_s17  ;;  %349 = vrot.lane.b32.xlu0 %v2325_v5, %s2258_s17  ;;  %v2394_v22 = vld [vmem:[%s2305_s16 + $0x111] sm:$0xff]  ;;  %v2404_v24 = vld [vmem:[%s2305_s16 + $0x129] sm:$0xff]  ;;  %3883 = vst [vmem:[#allocation7_spill] sm:$0xff] %v2407_v25 }
  0x1e   : > { %3882 = vst [vmem:[#allocation6_spill] sm:$0xff] %v2404_v24  ;;  %v2414_v26 = vld [vmem:[%s2305_s16 + $0x141] sm:$0xff]  ;;  %v2417_v27 = vld [vmem:[%s2305_s16 + $0x139] sm:$0xff]  ;;  %v2425_v29 = vld [vmem:[%s2305_s16 + $0x151] sm:$0xff] }
  0x1f   : > { %3884 = vst [vmem:[#allocation8_spill] sm:$0xff] %v2414_v26  ;;  %3885 = vst [vmem:[#allocation9_spill] sm:$0xff] %v2417_v27  ;;  %v266_v28 = vld [vmem:[%s2305_s16 + $0x159] sm:$0xff]  ;;  %v268_v30 = vld [vmem:[%s2305_s16 + $0x171] sm:$0xff] }
  0x20   : > { %3886 = vst [vmem:[#allocation10_spill] sm:$0xff] %v2425_v29  ;;  %v267_v31 = vld [vmem:[%s2305_s16 + $0x169] sm:$0xff]  ;;  %v2442_v35 = vld [vmem:[%s2305_s16 + $0x1a] sm:$0xff]  ;;  %v2452_v37 = vld [vmem:[%s2305_s16 + $0x32] sm:$0xff] }
  0x21   : > { %355 = vrot.lane.b32.xlu1 %v2332_v6, %s2258_s17  ;;  %353 = vrot.lane.b32.xlu0 %v2335_v7, %s2258_s17  ;;  %v274_v32 = vld [vmem:[%s2305_s16 + $0xa] sm:$0xff]  ;;  %v273_v33 = vld [vmem:[%s2305_s16 + $0x2] sm:$0xff] }
  0x22   : > { %v2439_v34 = vld [vmem:[%s2305_s16 + $0x22] sm:$0xff]  ;;  %v2449_v36 = vld [vmem:[%s2305_s16 + $0x3a] sm:$0xff]  ;;  %v2459_v38 = vld [vmem:[%s2305_s16 + $0x52] sm:$0xff] }
  0x23   : > { %v2462_v39 = vld [vmem:[%s2305_s16 + $0x4a] sm:$0xff]  ;;  %v2472_v41 = vld [vmem:[%s2305_s16 + $0x62] sm:$0xff]  ;;  %v2482_v43 = vld [vmem:[%s2305_s16 + $0x7a] sm:$0xff] }
  0x24   : > { %v2469_v40 = vld [vmem:[%s2305_s16 + $0x6a] sm:$0xff]  ;;  %3888 = vst [vmem:[#allocation12_spill] sm:$0xff] %v2472_v41  ;;  %v2479_v42 = vld [vmem:[%s2305_s16 + $0x82] sm:$0xff]  ;;  %3890 = vst [vmem:[#allocation14_spill] sm:$0xff] %v2482_v43 }
  0x25   : > { %359 = vrot.lane.b32.xlu1 %v2342_v8, %s2258_s17  ;;  %357 = vrot.lane.b32.xlu0 %v2345_v9, %s2258_s17  ;;  %3887 = vst [vmem:[#allocation11_spill] sm:$0xff] %v2469_v40  ;;  %3889 = vst [vmem:[#allocation13_spill] sm:$0xff] %v2479_v42  ;;  %v286_v44 = vld [vmem:[%s2305_s16 + $0x9a] sm:$0xff]  ;;  %v2490_v45 = vld [vmem:[%s2305_s16 + $0x92] sm:$0xff] }
  0x26   : > { %3891 = vst [vmem:[#allocation15_spill] sm:$0xff] %v2490_v45  ;;  %v288_v46 = vld [vmem:[%s2305_s16 + $0xb2] sm:$0xff]  ;;  %v287_v47 = vld [vmem:[%s2305_s16 + $0xaa] sm:$0xff]  ;;  %v289_v49 = vld [vmem:[%s2305_s16 + $0xc2] sm:$0xff] }
  0x27   : > { %v290_v48 = vld [vmem:[%s2305_s16 + $0xca] sm:$0xff]  ;;  %v2504_v50 = vld [vmem:[%s2305_s16 + $0xe2] sm:$0xff]  ;;  %v2507_v51 = vld [vmem:[%s2305_s16 + $0xda] sm:$0xff] }
  0x28   : > { %v2514_v52 = vld [vmem:[%s2305_s16 + $0xfa] sm:$0xff]  ;;  %v2517_v53 = vld [vmem:[%s2305_s16 + $0xf2] sm:$0xff]  ;;  %v2527_v55 = vld [vmem:[%s2305_s16 + $0x10a] sm:$0xff] }
  0x29   : > { %363 = vrot.lane.b32.xlu1 %v2352_v10, %s2258_s17  ;;  %361 = vrot.lane.b32.xlu0 %v2355_v11, %s2258_s17  ;;  %v2524_v54 = vld [vmem:[%s2305_s16 + $0x112] sm:$0xff]  ;;  %v2534_v56 = vld [vmem:[%s2305_s16 + $0x12a] sm:$0xff] }
  0x2a   : > { %3892 = vst [vmem:[#allocation16_spill] sm:$0xff] %v2534_v56  ;;  %v2537_v57 = vld [vmem:[%s2305_s16 + $0x122] sm:$0xff]  ;;  %v2547_v59 = vld [vmem:[%s2305_s16 + $0x13a] sm:$0xff]  ;;  %v2561_v63 = vld [vmem:[%s2305_s16 + $0x152] sm:$0xff] }
  0x2b   : > { %3893 = vst [vmem:[#allocation17_spill] sm:$0xff] %v2537_v57  ;;  %v2544_v58 = vld [vmem:[%s2305_s16 + $0x142] sm:$0xff]  ;;  %3895 = vst [vmem:[#allocation19_spill] sm:$0xff] %v2547_v59  ;;  %v2558_v62 = vld [vmem:[%s2305_s16 + $0x15a] sm:$0xff] }
  0x2c   : > { %3894 = vst [vmem:[#allocation18_spill] sm:$0xff] %v2544_v58  ;;  %3898 = vst [vmem:[#allocation22_spill] sm:$0xff] %v2558_v62  ;;  %v2678_v10 = vld [vmem:[%s2305_s16 + $0xf0] sm:$0xff]  ;;  %v2740_v9 = vld [vmem:[%s2305_s16 + $0x128] sm:$0xff] }
  0x2d   : > { %367 = vrot.lane.b32.xlu1 %v250_v12, %s2258_s17  ;;  %365 = vrot.lane.b32.xlu0 %v249_v13, %s2258_s17  ;;  %3899 = vst [vmem:[#allocation23_spill] sm:$0xff] %v2561_v63  ;;  %v304_v12 = vld [vmem:[%s2305_s16 + $0x172] sm:$0xff]  ;;  %v303_v13 = vld [vmem:[%s2305_s16 + $0x16a] sm:$0xff]  ;;  %3922 = vst [vmem:[#allocation46_spill] sm:$0xff] %v2740_v9 }
  0x31   : > { %371 = vrot.lane.b32.xlu1 %v252_v14, %s2258_s17  ;;  %369 = vrot.lane.b32.xlu0 %v251_v15, %s2258_s17 }
  0x35   : > { %375 = vrot.lane.b32.xlu1 %v254_v16, %s2258_s17  ;;  %373 = vrot.lane.b32.xlu0 %v253_v17, %s2258_s17 }
  0x39   : > { %379 = vrot.lane.b32.xlu1 %v2374_v18, %s2258_s17  ;;  %377 = vrot.lane.b32.xlu0 %v2377_v19, %s2258_s17 }
  0x3d   : > { %383 = vrot.lane.b32.xlu1 %v2384_v20, %s2258_s17  ;;  %381 = vrot.lane.b32.xlu0 %v2387_v21, %s2258_s17 }
  0x41   : > { %387 = vrot.lane.b32.xlu1 %v2394_v22, %s2258_s17  ;;  %385 = vrot.lane.b32.xlu0 %v2397_v23, %s2258_s17 }
  0x45   : > { %391 = vrot.lane.b32.xlu1 %v2404_v24, %s2258_s17  ;;  %389 = vrot.lane.b32.xlu0 %v2407_v25, %s2258_s17  ;;  %v2743_v25 = vld [vmem:[%s2305_s16 + $0x120] sm:$0xff] }
  0x46   : > { %3923 = vst [vmem:[#allocation47_spill] sm:$0xff] %v2743_v25 }
  0x49   : > { %395 = vrot.lane.b32.xlu1 %v2414_v26, %s2258_s17  ;;  %393 = vrot.lane.b32.xlu0 %v2417_v27, %s2258_s17 }
  0x4d   : > { %399 = vrot.lane.b32.xlu1 %v266_v28, %s2258_s17  ;;  %397 = vrot.lane.b32.xlu0 %v2425_v29, %s2258_s17  ;;  %v2584_v28 = vld [vmem:[%s2305_s16 + $0x18] sm:$0xff] }
  0x4e   : > { %3902 = vst [vmem:[#allocation26_spill] sm:$0xff] %v2584_v28  ;;  %v2643_v29 = vld [vmem:[%s2305_s16 + $0x78] sm:$0xff] }
  0x51   : > { %403 = vrot.lane.b32.xlu1 %v268_v30, %s2258_s17  ;;  %401 = vrot.lane.b32.xlu0 %v267_v31, %s2258_s17  ;;  %v2587_v30 = vld [vmem:[%s2305_s16 + $0x20] sm:$0xff] }
  0x52   : > { %3903 = vst [vmem:[#allocation27_spill] sm:$0xff] %v2587_v30 }
  0x55   : > { %471 = vrot.lane.b32.xlu1 %v274_v32, %s2259_s18  ;;  %469 = vrot.lane.b32.xlu0 %v273_v33, %s2259_s18  ;;  %v2598_v33 = vld [vmem:[%s2305_s16 + $0x38] sm:$0xff] }
  0x59   : > { %475 = vrot.lane.b32.xlu1 %v2439_v34, %s2259_s18  ;;  %473 = vrot.lane.b32.xlu0 %v2442_v35, %s2259_s18 }
  0x5d   : > { %479 = vrot.lane.b32.xlu1 %v2449_v36, %s2259_s18  ;;  %477 = vrot.lane.b32.xlu0 %v2452_v37, %s2259_s18 }
  0x61   : > { %483 = vrot.lane.b32.xlu1 %v2459_v38, %s2259_s18  ;;  %481 = vrot.lane.b32.xlu0 %v2462_v39, %s2259_s18 }
  0x65   : > { %487 = vrot.lane.b32.xlu1 %v2469_v40, %s2259_s18  ;;  %485 = vrot.lane.b32.xlu0 %v2472_v41, %s2259_s18  ;;  %v2701_v40 = vld [vmem:[%s2305_s16 + $0xe0] sm:$0xff] }
  0x66   : > { %3914 = vst [vmem:[#allocation38_spill] sm:$0xff] %v2701_v40 }
  0x69   : > { %491 = vrot.lane.b32.xlu1 %v2479_v42, %s2259_s18  ;;  %489 = vrot.lane.b32.xlu0 %v2482_v43, %s2259_s18  ;;  %v2654_v42 = vld [vmem:[%s2305_s16 + $0x98] sm:$0xff] }
  0x6d   : > { %495 = vrot.lane.b32.xlu1 %v286_v44, %s2259_s18  ;;  %493 = vrot.lane.b32.xlu0 %v2490_v45, %s2259_s18  ;;  %v2601_v44 = vld [vmem:[%s2305_s16 + $0x30] sm:$0xff]  ;;  %v2629_v45 = vld [vmem:[%s2305_s16 + $0x60] sm:$0xff] }
  0x71   : > { %499 = vrot.lane.b32.xlu1 %v288_v46, %s2259_s18  ;;  %497 = vrot.lane.b32.xlu0 %v287_v47, %s2259_s18 }
  0x75   : > { %503 = vrot.lane.b32.xlu1 %v290_v48, %s2259_s18  ;;  %501 = vrot.lane.b32.xlu0 %v289_v49, %s2259_s18  ;;  %v2612_v48 = vld [vmem:[%s2305_s16 + $0x50] sm:$0xff]  ;;  %v2615_v49 = vld [vmem:[%s2305_s16 + $0x48] sm:$0xff] }
  0x79   : > { %507 = vrot.lane.b32.xlu1 %v2504_v50, %s2259_s18  ;;  %505 = vrot.lane.b32.xlu0 %v2507_v51, %s2259_s18 }
  0x7d   : > { %511 = vrot.lane.b32.xlu1 %v2514_v52, %s2259_s18  ;;  %509 = vrot.lane.b32.xlu0 %v2517_v53, %s2259_s18 }
  0x81   : > { %515 = vrot.lane.b32.xlu1 %v2524_v54, %s2259_s18  ;;  %513 = vrot.lane.b32.xlu0 %v2527_v55, %s2259_s18 }
  0x85   : > { %519 = vrot.lane.b32.xlu1 %v2534_v56, %s2259_s18  ;;  %517 = vrot.lane.b32.xlu0 %v2537_v57, %s2259_s18  ;;  %v2704_v56 = vld [vmem:[%s2305_s16 + $0xd8] sm:$0xff]  ;;  %v2726_v57 = vld [vmem:[%s2305_s16 + $0x110] sm:$0xff] }
  0x86   : > { %3915 = vst [vmem:[#allocation39_spill] sm:$0xff] %v2704_v56 }
  0x87   : > { %v2549_v60 = vpop.permute.xlu1 %345  ;;  %v2551_v61 = vpop.permute.xlu0 %341 }
  0x88   : > { %3896 = vst [vmem:[#allocation20_spill] sm:$0xff] %v2549_v60  ;;  %3897 = vst [vmem:[#allocation21_spill] sm:$0xff] %v2551_v61 }
  0x89   : > { %523 = vrot.lane.b32.xlu1 %v2544_v58, %s2259_s18  ;;  %521 = vrot.lane.b32.xlu0 %v2547_v59, %s2259_s18  ;;  %v2657_v58 = vld [vmem:[%s2305_s16 + $0x90] sm:$0xff]  ;;  %v2671_v59 = vld [vmem:[%s2305_s16 + $0xa8] sm:$0xff] }
  0x8b   : > { %v2563_v1 = vpop.permute.xlu1 %347  ;;  %v2565_v3 = vpop.permute.xlu0 %343 }
  0x8c   : > { %3900 = vst [vmem:[#allocation24_spill] sm:$0xff] %v2563_v1  ;;  %3901 = vst [vmem:[#allocation25_spill] sm:$0xff] %v2565_v3  ;;  %v2640_v1 = vld [vmem:[%s2305_s16 + $0x80] sm:$0xff] }
  0x8d   : > { %527 = vrot.lane.b32.xlu1 %v2558_v62, %s2259_s18  ;;  %525 = vrot.lane.b32.xlu0 %v2561_v63, %s2259_s18  ;;  %v2626_v62 = vld [vmem:[%s2305_s16 + $0x68] sm:$0xff] }
  0x8f   : > { %v2573_v14 = vpop.permute.xlu1 %351  ;;  %v2575_v15 = vpop.permute.xlu0 %349 }
  0x91   : > { %531 = vrot.lane.b32.xlu1 %v304_v12, %s2259_s18  ;;  %529 = vrot.lane.b32.xlu0 %v303_v13, %s2259_s18 }
  0x93   : > { %v2579_v16 = vpop.permute.xlu1 %355  ;;  %v2581_v17 = vpop.permute.xlu0 %353 }
  0x95   : > { %599 = vrot.lane.b32.xlu1 %v2587_v30, %s2260_s19  ;;  %597 = vrot.lane.b32.xlu0 %v2584_v28, %s2260_s19 }
  0x97   : > { %v2593_v31 = vpop.permute.xlu1 %359  ;;  %v2595_v32 = vpop.permute.xlu0 %357 }
  0x99   : > { %603 = vrot.lane.b32.xlu1 %v2598_v33, %s2260_s19  ;;  %601 = vrot.lane.b32.xlu0 %v2601_v44, %s2260_s19 }
  0x9b   : > { %v2607_v46 = vpop.permute.xlu1 %363  ;;  %v2609_v47 = vpop.permute.xlu0 %361 }
  0x9d   : > { %607 = vrot.lane.b32.xlu1 %v2612_v48, %s2260_s19  ;;  %605 = vrot.lane.b32.xlu0 %v2615_v49, %s2260_s19 }
  0x9f   : > { %v2621_v12 = vpop.permute.xlu1 %367  ;;  %v2623_v13 = vpop.permute.xlu0 %365 }
  0xa1   : > { %611 = vrot.lane.b32.xlu1 %v2626_v62, %s2260_s19  ;;  %609 = vrot.lane.b32.xlu0 %v2629_v45, %s2260_s19 }
  0xa3   : > { %v2635_v63 = vpop.permute.xlu1 %371  ;;  %v2637_v30 = vpop.permute.xlu0 %369 }
  0xa5   : > { %615 = vrot.lane.b32.xlu1 %v2640_v1, %s2260_s19  ;;  %613 = vrot.lane.b32.xlu0 %v2643_v29, %s2260_s19 }
  0xa7   : > { %v2649_v28 = vpop.permute.xlu1 %375  ;;  %v2651_v60 = vpop.permute.xlu0 %373 }
  0xa8   : > { %3904 = vst [vmem:[#allocation28_spill] sm:$0xff] %v2649_v28  ;;  %3905 = vst [vmem:[#allocation29_spill] sm:$0xff] %v2651_v60  ;;  %v2668_v28 = vld [vmem:[%s2305_s16 + $0xb0] sm:$0xff]  ;;  %v2686_v60 = vld [vmem:[%s2305_s16 + $0xc0] sm:$0xff] }
  0xa9   : > { %619 = vrot.lane.b32.xlu1 %v2654_v42, %s2260_s19  ;;  %617 = vrot.lane.b32.xlu0 %v2657_v58, %s2260_s19  ;;  %3910 = vst [vmem:[#allocation34_spill] sm:$0xff] %v2686_v60 }
  0xab   : > { %v2663_v3 = vpop.permute.xlu1 %379  ;;  %v2665_v43 = vpop.permute.xlu0 %377 }
  0xac   : > { %3906 = vst [vmem:[#allocation30_spill] sm:$0xff] %v2663_v3  ;;  %3907 = vst [vmem:[#allocation31_spill] sm:$0xff] %v2665_v43  ;;  %v2683_v43 = vld [vmem:[%s2305_s16 + $0xc8] sm:$0xff] }
  0xad   : > { %623 = vrot.lane.b32.xlu1 %v2668_v28, %s2260_s19  ;;  %621 = vrot.lane.b32.xlu0 %v2671_v59, %s2260_s19  ;;  %3909 = vst [vmem:[#allocation33_spill] sm:$0xff] %v2683_v43 }
  0xaf   : > { %v2680_v26 = vpop.permute.xlu1 %383  ;;  %v382_v3 = vpop.permute.xlu0 %381 }
  0xb0   : > { %3908 = vst [vmem:[#allocation32_spill] sm:$0xff] %v2680_v26  ;;  %v2690_v61 = vsel %vm1183_vm0, %v2678_v10, %v382_v3 }
  0xb1   : > { %3911 = vst [vmem:[#allocation35_spill] sm:$0xff] %v2690_v61  ;;  %627 = vrot.lane.b32.xlu1 %v2683_v43, %s2260_s19  ;;  %625 = vrot.lane.b32.xlu0 %v2686_v60, %s2260_s19  ;;  %v2715_v60 = vld [vmem:[%s2305_s16 + $0xf8] sm:$0xff] }
  0xb3   : > { %v2696_v11 = vpop.permute.xlu1 %387  ;;  %v2698_v27 = vpop.permute.xlu0 %385 }
  0xb4   : > { %3912 = vst [vmem:[#allocation36_spill] sm:$0xff] %v2696_v11  ;;  %3913 = vst [vmem:[#allocation37_spill] sm:$0xff] %v2698_v27 }
  0xb5   : > { %631 = vrot.lane.b32.xlu1 %v2701_v40, %s2260_s19  ;;  %629 = vrot.lane.b32.xlu0 %v2704_v56, %s2260_s19  ;;  %v2729_v56 = vld [vmem:[%s2305_s16 + $0x108] sm:$0xff] }
  0xb7   : > { %v2710_v3 = vpop.permute.xlu1 %391  ;;  %v2712_v43 = vpop.permute.xlu0 %389 }
  0xb8   : > { %3916 = vst [vmem:[#allocation40_spill] sm:$0xff] %v2710_v3  ;;  %3917 = vst [vmem:[#allocation41_spill] sm:$0xff] %v2712_v43  ;;  %v2754_v43 = vld [vmem:[%s2305_s16 + $0x140] sm:$0xff]  ;;  %v2768_v3 = vld [vmem:[%s2305_s16 + $0x158] sm:$0xff] }
  0xb9   : > { %635 = vrot.lane.b32.xlu1 %v2715_v60, %s2260_s19  ;;  %633 = vrot.lane.b32.xlu0 %v2678_v10, %s2260_s19  ;;  %3926 = vst [vmem:[#allocation50_spill] sm:$0xff] %v2754_v43  ;;  %3930 = vst [vmem:[#allocation54_spill] sm:$0xff] %v2768_v3 }
  0xbb   : > { %v2721_v41 = vpop.permute.xlu1 %395  ;;  %v2723_v40 = vpop.permute.xlu0 %393 }
  0xbc   : > { %3918 = vst [vmem:[#allocation42_spill] sm:$0xff] %v2721_v41  ;;  %3919 = vst [vmem:[#allocation43_spill] sm:$0xff] %v2723_v40 }
  0xbd   : > { %639 = vrot.lane.b32.xlu1 %v2726_v57, %s2260_s19  ;;  %637 = vrot.lane.b32.xlu0 %v2729_v56, %s2260_s19 }
  0xbf   : > { %v2735_v8 = vpop.permute.xlu1 %399  ;;  %v2737_v24 = vpop.permute.xlu0 %397 }
  0xc0   : > { %3920 = vst [vmem:[#allocation44_spill] sm:$0xff] %v2735_v8  ;;  %3921 = vst [vmem:[#allocation45_spill] sm:$0xff] %v2737_v24  ;;  %v2757_v24 = vld [vmem:[%s2305_s16 + $0x138] sm:$0xff] }
  0xc1   : > { %643 = vrot.lane.b32.xlu1 %v2740_v9, %s2260_s19  ;;  %641 = vrot.lane.b32.xlu0 %v2743_v25, %s2260_s19  ;;  %3927 = vst [vmem:[#allocation51_spill] sm:$0xff] %v2757_v24  ;;  %v2782_v25 = vld [vmem:[%s2305_s16 + $0x170] sm:$0xff] }
  0xc2   : > { %3934 = vst [vmem:[#allocation58_spill] sm:$0xff] %v2782_v25 }
  0xc3   : > { %v2749_v40 = vpop.permute.xlu1 %403  ;;  %v2751_v41 = vpop.permute.xlu0 %401 }
  0xc4   : > { %3924 = vst [vmem:[#allocation48_spill] sm:$0xff] %v2749_v40  ;;  %3925 = vst [vmem:[#allocation49_spill] sm:$0xff] %v2751_v41  ;;  %v2771_v40 = vld [vmem:[%s2305_s16 + $0x150] sm:$0xff] }
  0xc5   : > { %647 = vrot.lane.b32.xlu1 %v2754_v43, %s2260_s19  ;;  %645 = vrot.lane.b32.xlu0 %v2757_v24, %s2260_s19  ;;  %3931 = vst [vmem:[#allocation55_spill] sm:$0xff] %v2771_v40  ;;  %v2785_v24 = vld [vmem:[%s2305_s16 + $0x168] sm:$0xff] }
  0xc6   : > { %3935 = vst [vmem:[#allocation59_spill] sm:$0xff] %v2785_v24 }
  0xc7   : > { %v2763_v8 = vpop.permute.xlu1 %471  ;;  %v2765_v9 = vpop.permute.xlu0 %469 }
  0xc8   : > { %3928 = vst [vmem:[#allocation52_spill] sm:$0xff] %v2763_v8  ;;  %3929 = vst [vmem:[#allocation53_spill] sm:$0xff] %v2765_v9  ;;  %v2792_v8 = vld [vmem:[%s2305_s16 + $0x188] sm:$0xff]  ;;  %v2795_v9 = vld [vmem:[%s2305_s16 + $0x180] sm:$0xff] }
  0xc9   : > { %651 = vrot.lane.b32.xlu1 %v2768_v3, %s2260_s19  ;;  %649 = vrot.lane.b32.xlu0 %v2771_v40, %s2260_s19  ;;  %3936 = vst [vmem:[#allocation60_spill] sm:$0xff] %v2792_v8  ;;  %3937 = vst [vmem:[#allocation61_spill] sm:$0xff] %v2795_v9 }
  0xcb   : > { %v2777_v41 = vpop.permute.xlu1 %475  ;;  %v2779_v43 = vpop.permute.xlu0 %473 }
  0xcc   : > { %3932 = vst [vmem:[#allocation56_spill] sm:$0xff] %v2777_v41  ;;  %3933 = vst [vmem:[#allocation57_spill] sm:$0xff] %v2779_v43 }
  0xcd   : > { %655 = vrot.lane.b32.xlu1 %v2782_v25, %s2260_s19  ;;  %653 = vrot.lane.b32.xlu0 %v2785_v24, %s2260_s19 }
  0xcf   : > { %v2797_v3 = vpop.permute.xlu1 %479  ;;  %v2799_v40 = vpop.permute.xlu0 %477 }
  0xd1   : > { %659 = vrot.lane.b32.xlu1 %v2792_v8, %s2260_s19  ;;  %657 = vrot.lane.b32.xlu0 %v2795_v9, %s2260_s19 }
  0xd3   : > { %v2805_v41 = vpop.permute.xlu1 %483  ;;  %v2807_v43 = vpop.permute.xlu0 %481 }
  0xd5   : > { %697 = vrot.lane.b32.xlu1 %v2315_v2, %s2261_s20  ;;  %695 = vrot.lane.b32.xlu0 %v2308_v0, %s2261_s20 }
  0xd7   : > { %v2813_v24 = vpop.permute.xlu1 %487  ;;  %v2815_v25 = vpop.permute.xlu0 %485 }
  0xd9   : > { %701 = vrot.lane.b32.xlu1 %v2322_v4, %s2261_s20  ;;  %699 = vrot.lane.b32.xlu0 %v2325_v5, %s2261_s20 }
  0xdb   : > { %v2821_v8 = vpop.permute.xlu1 %491  ;;  %v2823_v9 = vpop.permute.xlu0 %489 }
  0xdd   : > { %705 = vrot.lane.b32.xlu1 %v2332_v6, %s2261_s20  ;;  %703 = vrot.lane.b32.xlu0 %v2335_v7, %s2261_s20 }
  0xdf   : > { %v2829_v0 = vpop.permute.xlu1 %495  ;;  %v2831_v2 = vpop.permute.xlu0 %493 }
  0xe1   : > { %729 = vrot.lane.b32.xlu1 %v2374_v18, %s2261_s20  ;;  %727 = vrot.lane.b32.xlu0 %v2377_v19, %s2261_s20 }
  0xe3   : > { %v2837_v27 = vpop.permute.xlu1 %499  ;;  %v2839_v11 = vpop.permute.xlu0 %497 }
  0xe5   : > { %825 = vrot.lane.b32.xlu1 %v2507_v51, %s2262_s21  ;;  %793 = vrot.lane.b32.xlu0 %v2442_v35, %s2262_s21 }
  0xe7   : > { %v2845_v61 = vpop.permute.xlu1 %503  ;;  %v2847_v26 = vpop.permute.xlu0 %501 }
  0xe8   : > { %3938 = vst [vmem:[#allocation62_spill] sm:$0xff] %v2845_v61  ;;  %3939 = vst [vmem:[#allocation63_spill] sm:$0xff] %v2847_v26  ;;  %v1449_v61 = vld [vmem:[%s3814_s1 + $0x10] sm:$0xff] }
  0xe9   : > { %827 = vrot.lane.b32.xlu1 %v2504_v50, %s2262_s21  ;;  %795 = vrot.lane.b32.xlu0 %v2439_v34, %s2262_s21  ;;  %v1447_v34 = vld [vmem:[%s3814_s1] sm:$0xff] }
  0xeb   : > { %v2853_v18 = vpop.permute.xlu1 %507  ;;  %v2855_v19 = vpop.permute.xlu0 %505 }
  0xec   : > { %3940 = vst [vmem:[#allocation64_spill] sm:$0xff] %v2853_v18  ;;  %3941 = vst [vmem:[#allocation65_spill] sm:$0xff] %v2855_v19 }
  0xed   : > { %923 = vrot.lane.b32.xlu1 %v2678_v10, %s2263_s22  ;;  %891 = vrot.lane.b32.xlu0 %v2601_v44, %s2263_s22  ;;  %v1448_v10 = vld [vmem:[%s3814_s1 + $0x8] sm:$0xff] }
  0xee   : > { %v2161_v50 = vpack.c.bf16 %v1448_v10, %v1447_v34  ;;  %v1450_v34 = vld [vmem:[%s3814_s1 + $0x18] sm:$0xff] }
  0xef   : > { %v2861_v35 = vpop.permute.xlu1 %511  ;;  %v2863_v51 = vpop.permute.xlu0 %509  ;;  %v2165_v10 = vpack.c.bf16 %v1450_v34, %v1449_v61 }
  0xf0   : > { %2162 = vmatprep.subr.bf16.mxu0 %v2161_v50  ;;  %2169 = vmatprep.subr.bf16.mxu1 %v2161_v50 }
  0xf1   : > { %925 = vrot.lane.b32.xlu1 %v2715_v60, %s2263_s22  ;;  %893 = vrot.lane.b32.xlu0 %v2598_v33, %s2263_s22 }
  0xf2   : > { %2164 = vmatpush3.bf16.msra.mxu0 %v2161_v50  ;;  %2172 = vmatpush3.bf16.msra.mxu1 %v2161_v50 }
  0xf3   : > { %v2875_v18 = vpop.permute.xlu1 %515  ;;  %v2877_v19 = vpop.permute.xlu0 %513  ;;  %2166 = vmatprep.subr.bf16.mxu0 %v2165_v10  ;;  %2170 = vmatprep.subr.bf16.mxu1 %v2165_v10 }
  0xf4   : > { %3942 = vst [vmem:[#allocation66_spill] sm:$0xff] %v2877_v19 }
  0xf5   : > { %1021 = vrot.lane.b32.xlu1 %v2387_v21, %s2264_s27  ;;  %989 = vrot.lane.b32.xlu0 %v2325_v5, %s2264_s27  ;;  %v1451_v5 = vld [vmem:[%s3814_s1 + $0x20] sm:$0xf] }
  0xf6   : > { %2168 = vmatpush3.bf16.msra.mxu0 %v2165_v10  ;;  %2173 = vmatpush3.bf16.msra.mxu1 %v2165_v10 }
  0xf7   : > { %v2889_v26 = vpop.permute.xlu1 %519  ;;  %v2891_v19 = vpop.permute.xlu0 %517  ;;  %2111 = vmatprep.subr.msk.mxu0 %vm1549_vm1, %v1451_v5  ;;  %2171 = vmatprep.subr.msk.mxu1 %vm1549_vm1, %v1451_v5 }
  0xf9   : > { %991 = vrot.lane.b32.xlu1 %v2322_v4, %s2264_s27  ;;  %731 = vrot.lane.b32.xlu0 %v2387_v21, %s2261_s20 }
  0xfa   : > { %2112 = vmatpush3.msk.msra.mxu0 %vm1549_vm1, %v1451_v5  ;;  %2174 = vmatpush3.msk.msra.mxu1 %vm1549_vm1, %v1451_v5 }
  0xfb   : > { %v2900_v61 = vpop.permute.xlu1 %523  ;;  %v2902_v50 = vpop.permute.xlu0 %521 }
  0xfd   : > { %1087 = vrot.lane.b32.xlu1 %v2452_v37, %s2265_s6  ;;  %1023 = vrot.lane.b32.xlu0 %v2384_v20, %s2264_s27 }
  0xff   : > { %v2908_v4 = vpop.permute.xlu1 %527  ;;  %v2910_v21 = vpop.permute.xlu0 %525 }
 0x100   : > { %3943 = vst [vmem:[#allocation67_spill] sm:$0xff] %v2908_v4 }
 0x101   : > { %733 = vrot.lane.b32.xlu1 %v2384_v20, %s2261_s20  ;;  %1119 = vrot.lane.b32.xlu0 %v2517_v53, %s2265_s6 }
 0x103   : > { %v2916_v34 = vpop.permute.xlu1 %531  ;;  %v2918_v10 = vpop.permute.xlu0 %529 }
 0x104   : > { %3944 = vst [vmem:[#allocation68_spill] sm:$0xff] %v2916_v34 }
 0x105   : > { %829 = vrot.lane.b32.xlu1 %v2517_v53, %s2262_s21  ;;  %797 = vrot.lane.b32.xlu0 %v2452_v37, %s2262_s21  ;;  %v1189_v37 = vsel %vm1183_vm0, %v2598_v33, %v2573_v14  ;;  %v1188_v53 = vsel %vm1183_vm0, %v2601_v44, %v2575_v15  ;;  %v1191_v14 = vsel %vm1183_vm0, %v2612_v48, %v2579_v16 }
 0x106   : > { %v1224_v15 = vsel %vm1216_vm2, %v1191_v14, %v2805_v41  ;;  %v1193_v41 = vsel %vm1183_vm0, %v2626_v62, %v2593_v31 }
 0x107   : > { %v2924_v5 = vpop.permute.xlu1 %599  ;;  %v2926_v4 = vpop.permute.xlu0 %597  ;;  %v1226_v16 = vsel %vm1216_vm2, %v1193_v41, %v2813_v24  ;;  %v1195_v24 = vsel %vm1183_vm0, %v2640_v1, %v2607_v46 }
 0x108   : > { %3945 = vst [vmem:[#allocation69_spill] sm:$0xff] %v2924_v5  ;;  %3946 = vst [vmem:[#allocation70_spill] sm:$0xff] %v2926_v4  ;;  %v1228_v31 = vsel %vm1216_vm2, %v1195_v24, %v2821_v8  ;;  %v1197_v8 = vsel %vm1183_vm0, %v2654_v42, %v2621_v12  ;;  %v1199_v12 = vsel %vm1183_vm0, %v2668_v28, %v2635_v63 }
 0x109   : > { %1121 = vrot.lane.b32.xlu1 %v2514_v52, %s2265_s6  ;;  %1089 = vrot.lane.b32.xlu0 %v2449_v36, %s2265_s6  ;;  %v1230_v46 = vsel %vm1216_vm2, %v1197_v8, %v2829_v0  ;;  %v1232_v0 = vsel %vm1216_vm2, %v1199_v12, %v2837_v27 }
 0x10b   : > { %v2932_v20 = vpop.permute.xlu1 %603  ;;  %v2934_v34 = vpop.permute.xlu0 %601 }
 0x10c   : > { %3947 = vst [vmem:[#allocation71_spill] sm:$0xff] %v2932_v20  ;;  %3948 = vst [vmem:[#allocation72_spill] sm:$0xff] %v2934_v34  ;;  %v1222_v20 = vsel %vm1216_vm2, %v1189_v37, %v2797_v3  ;;  %v1221_v34 = vsel %vm1216_vm2, %v1188_v53, %v2799_v40  ;;  %v1190_v40 = vsel %vm1183_vm0, %v2615_v49, %v2581_v17 }
 0x10d   : > { %831 = vrot.lane.b32.xlu1 %v2514_v52, %s2262_s21  ;;  %799 = vrot.lane.b32.xlu0 %v2449_v36, %s2262_s21  ;;  %v1223_v33 = vsel %vm1216_vm2, %v1190_v40, %v2807_v43  ;;  %v1192_v43 = vsel %vm1183_vm0, %v2629_v45, %v2595_v32 }
 0x10e   : > { %v1225_v17 = vsel %vm1216_vm2, %v1192_v43, %v2815_v25  ;;  %v1194_v25 = vsel %vm1183_vm0, %v2643_v29, %v2609_v47 }
 0x10f   : > { %v608_v52 = vpop.permute.xlu1 %607  ;;  %v606_v5 = vpop.permute.xlu0 %605  ;;  %v1227_v32 = vsel %vm1216_vm2, %v1194_v25, %v2823_v9  ;;  %v1196_v9 = vsel %vm1183_vm0, %v2657_v58, %v2623_v13  ;;  %v1198_v13 = vsel %vm1183_vm0, %v2671_v59, %v2637_v30  ;;  %v3955_v25 = vld [vmem:[#allocation37_spill] sm:$0xff] }
 0x110   : > { %v2951_v36 = vsel %vm1249_vm3, %v1222_v20, %v608_v52  ;;  %v2954_v4 = vsel %vm1249_vm3, %v1221_v34, %v606_v5  ;;  %v1229_v47 = vsel %vm1216_vm2, %v1196_v9, %v2831_v2  ;;  %v1231_v2 = vsel %vm1216_vm2, %v1198_v13, %v2839_v11  ;;  %v3959_v9 = vld [vmem:[#allocation46_spill] sm:$0xff] }
 0x111   : > { %927 = vrot.lane.b32.xlu1 %v2729_v56, %s2263_s22  ;;  %895 = vrot.lane.b32.xlu0 %v2615_v49, %s2263_s22 }
 0x113   : > { %v612_v44 = vpop.permute.xlu1 %611  ;;  %v610_v3 = vpop.permute.xlu0 %609 }
 0x114   : > { %v2971_v34 = vsel %vm1249_vm3, %v1224_v15, %v612_v44  ;;  %v2974_v5 = vsel %vm1249_vm3, %v1223_v33, %v610_v3 }
 0x115   : > { %929 = vrot.lane.b32.xlu1 %v2726_v57, %s2263_s22  ;;  %897 = vrot.lane.b32.xlu0 %v2612_v48, %s2263_s22 }
 0x117   : > { %v616_v49 = vpop.permute.xlu1 %615  ;;  %v614_v20 = vpop.permute.xlu0 %613 }
 0x118   : > { %v2991_v37 = vsel %vm1249_vm3, %v1226_v16, %v616_v49  ;;  %v2994_v48 = vsel %vm1249_vm3, %v1225_v17, %v614_v20  ;;  %v3953_v16 = vld [vmem:[#allocation35_spill] sm:$0xff] }
 0x119   : > { %1025 = vrot.lane.b32.xlu1 %v2397_v23, %s2264_s27  ;;  %993 = vrot.lane.b32.xlu0 %v2335_v7, %s2264_s27 }
 0x11b   : > { %v620_v53 = vpop.permute.xlu1 %619  ;;  %v618_v52 = vpop.permute.xlu0 %617 }
 0x11c   : > { %v3011_v14 = vsel %vm1249_vm3, %v1228_v31, %v620_v53  ;;  %v3014_v7 = vsel %vm1249_vm3, %v1227_v32, %v618_v52  ;;  %v3956_v32 = vld [vmem:[#allocation66_spill] sm:$0xff] }
 0x11d   : > { %995 = vrot.lane.b32.xlu1 %v2332_v6, %s2264_s27  ;;  %735 = vrot.lane.b32.xlu0 %v2397_v23, %s2261_s20 }
 0x11f   : > { %v624_v40 = vpop.permute.xlu1 %623  ;;  %v622_v15 = vpop.permute.xlu0 %621 }
 0x120   : > { %v3031_v6 = vsel %vm1249_vm3, %v1230_v46, %v624_v40  ;;  %v3034_v23 = vsel %vm1249_vm3, %v1229_v47, %v622_v15  ;;  %v3960_v46 = vld [vmem:[#allocation41_spill] sm:$0xff] }
 0x121   : > { %3949 = vst [vmem:[#allocation73_spill] sm:$0xff] %v3031_v6  ;;  %1091 = vrot.lane.b32.xlu1 %v2462_v39, %s2265_s6  ;;  %1027 = vrot.lane.b32.xlu0 %v2394_v22, %s2264_s27  ;;  %v3995_v6 = vld [vmem:[#allocation19_spill] sm:$0xff] }
 0x123   : > { %v628_v33 = vpop.permute.xlu1 %627  ;;  %v626_v44 = vpop.permute.xlu0 %625 }
 0x124   : > { %v3051_v3 = vsel %vm1249_vm3, %v1232_v0, %v628_v33  ;;  %v3054_v41 = vsel %vm1249_vm3, %v1231_v2, %v626_v44  ;;  %v3961_v2 = vld [vmem:[#allocation42_spill] sm:$0xff]  ;;  %v3963_v44 = vld [vmem:[#allocation43_spill] sm:$0xff] }
 0x125   : > { %3950 = vst [vmem:[#allocation74_spill] sm:$0xff] %v3051_v3  ;;  %3951 = vst [vmem:[#allocation75_spill] sm:$0xff] %v3054_v41  ;;  %737 = vrot.lane.b32.xlu1 %v2394_v22, %s2261_s20  ;;  %1123 = vrot.lane.b32.xlu0 %v2527_v55, %s2265_s6  ;;  %v3952_v22 = vld [vmem:[#allocation32_spill] sm:$0xff]  ;;  %v3962_v33 = vld [vmem:[#allocation50_spill] sm:$0xff] }
 0x126   : > { %v1205_v43 = vsel %vm1183_vm0, %v2715_v60, %v3952_v22  ;;  %v3954_v60 = vld [vmem:[#allocation36_spill] sm:$0xff] }
 0x127   : > { %v3060_v63 = vpop.permute.xlu1 %631  ;;  %v3062_v27 = vpop.permute.xlu0 %629  ;;  %v3992_v41 = vld [vmem:[#allocation8_spill] sm:$0xff] }
 0x129   : > { %833 = vrot.lane.b32.xlu1 %v2527_v55, %s2262_s21  ;;  %801 = vrot.lane.b32.xlu0 %v2462_v39, %s2262_s21  ;;  %v1238_v55 = vsel %vm1216_vm2, %v1205_v43, %v2861_v35  ;;  %v1237_v39 = vsel %vm1216_vm2, %v3953_v16, %v2863_v51  ;;  %v1207_v35 = vsel %vm1183_vm0, %v2726_v57, %v3954_v60  ;;  %v3957_v57 = vld [vmem:[#allocation47_spill] sm:$0xff] }
 0x12a   : > { %v1206_v51 = vsel %vm1183_vm0, %v2729_v56, %v3955_v25  ;;  %v1240_v31 = vsel %vm1216_vm2, %v1207_v35, %v2875_v18  ;;  %v3958_v56 = vld [vmem:[#allocation40_spill] sm:$0xff]  ;;  %v1208_v47 = vsel %vm1183_vm0, %v3957_v57, %v3960_v46  ;;  %v3966_v60 = vld [vmem:[#allocation3_spill] sm:$0xff]  ;;  %v3968_v25 = vld [vmem:[#allocation54_spill] sm:$0xff] }
 0x12b   : > { %v3068_v11 = vpop.permute.xlu1 %635  ;;  %v3070_v30 = vpop.permute.xlu0 %633  ;;  %v1239_v53 = vsel %vm1216_vm2, %v1206_v51, %v3956_v32  ;;  %v1209_v18 = vsel %vm1183_vm0, %v3959_v9, %v3958_v56  ;;  %v1241_v15 = vsel %vm1216_vm2, %v1208_v47, %v2891_v19  ;;  %v3964_v19 = vld [vmem:[#allocation51_spill] sm:$0xff]  ;;  %v3967_v35 = vld [vmem:[#allocation44_spill] sm:$0xff]  ;;  %v3969_v51 = vld [vmem:[#allocation45_spill] sm:$0xff] }
 0x12c   : > { %v1242_v40 = vsel %vm1216_vm2, %v1209_v18, %v2889_v26  ;;  %v1211_v26 = vsel %vm1183_vm0, %v3962_v33, %v3961_v2  ;;  %v1210_v22 = vsel %vm1183_vm0, %v3964_v19, %v3963_v44  ;;  %v3971_v32 = vld [vmem:[#allocation67_spill] sm:$0xff]  ;;  %v3972_v18 = vld [vmem:[#allocation48_spill] sm:$0xff]  ;;  %v3973_v46 = vld [vmem:[#allocation58_spill] sm:$0xff] }
 0x12d   : > { %1125 = vrot.lane.b32.xlu1 %v2524_v54, %s2265_s6  ;;  %1093 = vrot.lane.b32.xlu0 %v2459_v38, %s2265_s6  ;;  %v1244_v43 = vsel %vm1216_vm2, %v1211_v26, %v2900_v61  ;;  %v1213_v61 = vsel %vm1183_vm0, %v3968_v25, %v3967_v35  ;;  %v1215_v47 = vsel %vm1183_vm0, %v3973_v46, %v3972_v18 }
 0x12f   : > { %v640_v17 = vpop.permute.xlu1 %639  ;;  %v638_v49 = vpop.permute.xlu0 %637 }
 0x130   : > { %v3085_v20 = vsel %vm1249_vm3, %v1238_v55, %v640_v17  ;;  %v3088_v24 = vsel %vm1249_vm3, %v1237_v39, %v638_v49  ;;  %v1243_v55 = vsel %vm1216_vm2, %v1210_v22, %v2902_v50  ;;  %v3965_v49 = vld [vmem:[#allocation7_spill] sm:$0xff] }
 0x131   : > { %835 = vrot.lane.b32.xlu1 %v2524_v54, %s2262_s21  ;;  %803 = vrot.lane.b32.xlu0 %v2459_v38, %s2262_s21  ;;  %v3970_v50 = vld [vmem:[#allocation55_spill] sm:$0xff] }
 0x133   : > { %v644_v52 = vpop.permute.xlu1 %643  ;;  %v642_v8 = vpop.permute.xlu0 %641 }
 0x134   : > { %v3105_v54 = vsel %vm1249_vm3, %v1240_v31, %v644_v52  ;;  %v3108_v38 = vsel %vm1249_vm3, %v1239_v53, %v642_v8  ;;  %v1212_v31 = vsel %vm1183_vm0, %v3970_v50, %v3969_v51  ;;  %v1246_v53 = vsel %vm1216_vm2, %v1213_v61, %v3971_v32 }
 0x135   : > { %931 = vrot.lane.b32.xlu1 %v3957_v57, %s2263_s22  ;;  %899 = vrot.lane.b32.xlu0 %v2629_v45, %s2263_s22  ;;  %v1245_v52 = vsel %vm1216_vm2, %v1212_v31, %v2910_v21  ;;  %v3975_v21 = vld [vmem:[#allocation59_spill] sm:$0xff] }
 0x137   : > { %v648_v12 = vpop.permute.xlu1 %647  ;;  %v646_v13 = vpop.permute.xlu0 %645 }
 0x138   : > { %v3125_v0 = vsel %vm1249_vm3, %v1242_v40, %v648_v12  ;;  %v3128_v45 = vsel %vm1249_vm3, %v1241_v15, %v646_v13  ;;  %v3974_v40 = vld [vmem:[#allocation49_spill] sm:$0xff]  ;;  %v3976_v12 = vld [vmem:[#allocation68_spill] sm:$0xff] }
 0x139   : > { %933 = vrot.lane.b32.xlu1 %v3959_v9, %s2263_s22  ;;  %901 = vrot.lane.b32.xlu0 %v2626_v62, %s2263_s22  ;;  %v1214_v15 = vsel %vm1183_vm0, %v3975_v21, %v3974_v40  ;;  %v1248_v13 = vsel %vm1216_vm2, %v1215_v47, %v3976_v12 }
 0x13a   : > { %v1247_v2 = vsel %vm1216_vm2, %v1214_v15, %v2918_v10  ;;  %v3982_v10 = vld [vmem:[#allocation12_spill] sm:$0xff] }
 0x13b   : > { %v652_v16 = vpop.permute.xlu1 %651  ;;  %v650_v39 = vpop.permute.xlu0 %649 }
 0x13c   : > { %v3145_v17 = vsel %vm1249_vm3, %v1244_v43, %v652_v16  ;;  %v3148_v62 = vsel %vm1249_vm3, %v1243_v55, %v650_v39  ;;  %v3979_v55 = vld [vmem:[#allocation6_spill] sm:$0xff] }
 0x13d   : > { %1029 = vrot.lane.b32.xlu1 %v3965_v49, %s2264_s27  ;;  %997 = vrot.lane.b32.xlu0 %v3966_v60, %s2264_s27  ;;  %v3980_v16 = vld [vmem:[#allocation2_spill] sm:$0xff] }
 0x13f   : > { %v656_v8 = vpop.permute.xlu1 %655  ;;  %v654_v57 = vpop.permute.xlu0 %653 }
 0x140   : > { %v3165_v56 = vsel %vm1249_vm3, %v1246_v53, %v656_v8  ;;  %v3168_v9 = vsel %vm1249_vm3, %v1245_v52, %v654_v57  ;;  %v3983_v52 = vld [vmem:[#allocation16_spill] sm:$0xff]  ;;  %v3984_v8 = vld [vmem:[#allocation11_spill] sm:$0xff] }
 0x141   : > { %739 = vrot.lane.b32.xlu1 %v3965_v49, %s2261_s20  ;;  %707 = vrot.lane.b32.xlu0 %v3966_v60, %s2261_s20  ;;  %v3981_v60 = vld [vmem:[#allocation17_spill] sm:$0xff] }
 0x143   : > { %v660_v26 = vpop.permute.xlu1 %659  ;;  %v658_v44 = vpop.permute.xlu0 %657 }
 0x144   : > { %v3185_v22 = vsel %vm1249_vm3, %v1248_v13, %v660_v26  ;;  %v3188_v43 = vsel %vm1249_vm3, %v1247_v2, %v658_v44  ;;  %v3985_v26 = vld [vmem:[#allocation9_spill] sm:$0xff] }
 0x145   : > { %3977 = vst [vmem:[#allocation32_spill] sm:$0xff] %v3185_v22  ;;  %3978 = vst [vmem:[#allocation35_spill] sm:$0xff] %v3188_v43  ;;  %1031 = vrot.lane.b32.xlu1 %v3979_v55, %s2264_s27  ;;  %999 = vrot.lane.b32.xlu0 %v3980_v16, %s2264_s27  ;;  %v3986_v44 = vld [vmem:[#allocation5_spill] sm:$0xff]  ;;  %v3991_v22 = vld [vmem:[#allocation34_spill] sm:$0xff] }
 0x147   : > { %v3194_v39 = vpop.permute.xlu1 %697  ;;  %v696_v49 = vpop.permute.xlu0 %695 }
 0x149   : > { %1127 = vrot.lane.b32.xlu1 %v3981_v60, %s2265_s6  ;;  %1095 = vrot.lane.b32.xlu0 %v3982_v10, %s2265_s6 }
 0x14b   : > { %v3200_v35 = vpop.permute.xlu1 %701  ;;  %v3202_v61 = vpop.permute.xlu0 %699 }
 0x14d   : > { %741 = vrot.lane.b32.xlu1 %v3979_v55, %s2261_s20  ;;  %709 = vrot.lane.b32.xlu0 %v3980_v16, %s2261_s20 }
 0x14f   : > { %v3208_v51 = vpop.permute.xlu1 %705  ;;  %v3210_v31 = vpop.permute.xlu0 %703 }
 0x151   : > { %837 = vrot.lane.b32.xlu1 %v3981_v60, %s2262_s21  ;;  %805 = vrot.lane.b32.xlu0 %v3982_v10, %s2262_s21  ;;  %v3989_v10 = vld [vmem:[#allocation70_spill] sm:$0xff] }
 0x153   : > { %v3216_v32 = vpop.permute.xlu1 %729  ;;  %v728_v53 = vpop.permute.xlu0 %727 }
 0x155   : > { %1129 = vrot.lane.b32.xlu1 %v3983_v52, %s2265_s6  ;;  %1097 = vrot.lane.b32.xlu0 %v3984_v8, %s2265_s6 }
 0x157   : > { %v826_v57 = vpop.permute.xlu1 %825  ;;  %v794_v18 = vpop.permute.xlu0 %793 }
 0x159   : > { %839 = vrot.lane.b32.xlu1 %v3983_v52, %s2262_s21  ;;  %807 = vrot.lane.b32.xlu0 %v3984_v8, %s2262_s21 }
 0x15b   : > { %v3226_v47 = vpop.permute.xlu1 %827  ;;  %v3228_v40 = vpop.permute.xlu0 %795 }
 0x15d   : > { %935 = vrot.lane.b32.xlu1 %v3964_v19, %s2263_s22  ;;  %903 = vrot.lane.b32.xlu0 %v2643_v29, %s2263_s22  ;;  %v201_v19 = vld [vmem:[%s2305_s16] sm:$0xff]  ;;  %v3987_v29 = vld [vmem:[#allocation21_spill] sm:$0xff] }
 0x15e   : > { %v1184_v60 = vsel %vm1183_vm0, %v201_v19, %v3987_v29  ;;  %v3990_v29 = vld [vmem:[#allocation29_spill] sm:$0xff] }
 0x15f   : > { %v924_v15 = vpop.permute.xlu1 %923  ;;  %v892_v12 = vpop.permute.xlu0 %891 }
 0x161   : > { %937 = vrot.lane.b32.xlu1 %v3962_v33, %s2263_s22  ;;  %905 = vrot.lane.b32.xlu0 %v2640_v1, %s2263_s22  ;;  %v3988_v1 = vld [vmem:[#allocation53_spill] sm:$0xff] }
 0x162   : > { %v1217_v33 = vsel %vm1216_vm2, %v1184_v60, %v3988_v1  ;;  %v3993_v60 = vld [vmem:[#allocation4_spill] sm:$0xff]  ;;  %v3994_v1 = vld [vmem:[#allocation63_spill] sm:$0xff] }
 0x163   : > { %v926_v13 = vpop.permute.xlu1 %925  ;;  %v894_v2 = vpop.permute.xlu0 %893  ;;  %v1250_v52 = vsel %vm1249_vm3, %v1217_v33, %v3989_v10 }
 0x164   : > { %v1283_v19 = vsel %vm1282_vm4, %v1250_v52, %v696_v49 }
 0x165   : > { %1033 = vrot.lane.b32.xlu1 %v3985_v26, %s2264_s27  ;;  %1001 = vrot.lane.b32.xlu0 %v3986_v44, %s2264_s27 }
 0x167   : > { %v1022_v55 = vpop.permute.xlu1 %1021  ;;  %v990_v16 = vpop.permute.xlu0 %989 }
 0x169   : > { %743 = vrot.lane.b32.xlu1 %v3985_v26, %s2261_s20  ;;  %711 = vrot.lane.b32.xlu0 %v3986_v44, %s2261_s20  ;;  %v1200_v26 = vsel %vm1183_vm0, %v3991_v22, %v3990_v29  ;;  %v1316_v44 = vsel %vm1315_vm5, %v1283_v19, %v794_v18 }
 0x16a   : > { %v1233_v33 = vsel %vm1216_vm2, %v1200_v26, %v3994_v1  ;;  %v1349_v49 = vsel %vm1348_vm6, %v1316_v44, %v892_v12  ;;  %v3996_v26 = vld [vmem:[#allocation14_spill] sm:$0xff]  ;;  %v202_v12 = vld [vmem:[%s2305_s16 + $0x8] sm:$0xff] }
 0x16b   : > { %v992_v8 = vpop.permute.xlu1 %991  ;;  %v3253_v3 = vpop.permute.xlu0 %731  ;;  %v1266_v10 = vsel %vm1249_vm3, %v1233_v33, %v3062_v27  ;;  %v1382_v22 = vsel %vm1381_vm7, %v1349_v49, %v990_v16  ;;  %v3997_v33 = vld [vmem:[#allocation25_spill] sm:$0xff]  ;;  %v3998_v49 = vld [vmem:[#allocation28_spill] sm:$0xff] }
 0x16c   : > { %v1299_v19 = vsel %vm1282_vm4, %v1266_v10, %v728_v53  ;;  %v3999_v10 = vld [vmem:[#allocation33_spill] sm:$0xff] }
 0x16d   : > { %1035 = vrot.lane.b32.xlu1 %v3992_v41, %s2264_s27  ;;  %1003 = vrot.lane.b32.xlu0 %v3993_v60, %s2264_s27  ;;  %v1332_v43 = vsel %vm1315_vm5, %v1299_v19, %v826_v57  ;;  %v1185_v57 = vsel %vm1183_vm0, %v202_v12, %v3997_v33  ;;  %v4002_v19 = vld [vmem:[#allocation69_spill] sm:$0xff] }
 0x16e   : > { %v1365_v27 = vsel %vm1348_vm6, %v1332_v43, %v924_v15  ;;  %v4000_v43 = vld [vmem:[#allocation52_spill] sm:$0xff] }
 0x16f   : > { %v1088_v52 = vpop.permute.xlu1 %1087  ;;  %v1024_v18 = vpop.permute.xlu0 %1023  ;;  %v1398_v16 = vsel %vm1381_vm7, %v1365_v27, %v1022_v55  ;;  %v1218_v15 = vsel %vm1216_vm2, %v1185_v57, %v4000_v43  ;;  %v4001_v55 = vld [vmem:[#allocation62_spill] sm:$0xff] }
 0x170   : > { %v1415_v29 = vsel %vm1414_vm8, %v1382_v22, %v1088_v52  ;;  %v1201_v22 = vsel %vm1183_vm0, %v3999_v10, %v3998_v49  ;;  %v4003_v10 = vld [vmem:[#allocation18_spill] sm:$0xff] }
 0x171   : > { %1131 = vrot.lane.b32.xlu1 %v3995_v6, %s2265_s6  ;;  %1099 = vrot.lane.b32.xlu0 %v3996_v26, %s2265_s6  ;;  %v1234_v52 = vsel %vm1216_vm2, %v1201_v22, %v4001_v55  ;;  %v4005_v55 = vld [vmem:[#allocation20_spill] sm:$0xff] }
 0x172   : > { %2113 = vmatprep.mubr.msk.f32.mxu0 %vm1452_vm9, %v1415_v29  ;;  %v1251_v29 = vsel %vm1249_vm3, %v1218_v15, %v4002_v19  ;;  %v1267_v12 = vsel %vm1249_vm3, %v1234_v52, %v3060_v63  ;;  %v4006_v52 = vld [vmem:[#allocation26_spill] sm:$0xff] }
 0x173   : > { %v3281_v44 = vpop.permute.xlu1 %733  ;;  %v1120_v53 = vpop.permute.xlu0 %1119  ;;  %v1186_v19 = vsel %vm1183_vm0, %v4006_v52, %v4005_v55 }
 0x174   : > { %v1431_v1 = vsel %vm1414_vm8, %v1398_v16, %v1120_v53 }
 0x175   : > { %745 = vrot.lane.b32.xlu1 %v3992_v41, %s2261_s20  ;;  %713 = vrot.lane.b32.xlu0 %v3993_v60, %s2261_s20  ;;  %v1284_v41 = vsel %vm1282_vm4, %v1251_v29, %v3194_v39  ;;  %v1300_v60 = vsel %vm1282_vm4, %v1267_v12, %v3216_v32  ;;  %v2208_v29 = vld [vmem:[%s2305_s16 + $0x91] sm:$0xff] }
 0x176   : > { %2137 = vmatprep.mubr.msk.f32.mxu1 %vm1452_vm9, %v1431_v1  ;;  %v1333_v53 = vsel %vm1315_vm5, %v1300_v60, %v3226_v47  ;;  %v1317_v1 = vsel %vm1315_vm5, %v1284_v41, %v3228_v40  ;;  %v4009_v41 = vld [vmem:[#allocation72_spill] sm:$0xff] }
 0x177   : > { %v830_v27 = vpop.permute.xlu1 %829  ;;  %v798_v16 = vpop.permute.xlu0 %797  ;;  %v1366_v63 = vsel %vm1348_vm6, %v1333_v53, %v926_v13  ;;  %v1350_v33 = vsel %vm1348_vm6, %v1317_v1, %v894_v2  ;;  %v4010_v1 = vld [vmem:[#allocation31_spill] sm:$0xff] }
 0x178   : > { %v1383_v39 = vsel %vm1381_vm7, %v1350_v33, %v992_v8  ;;  %v1399_v32 = vsel %vm1381_vm7, %v1366_v63, %v1024_v18  ;;  %v4011_v63 = vld [vmem:[#allocation39_spill] sm:$0xff] }
 0x179   : > { %841 = vrot.lane.b32.xlu1 %v3995_v6, %s2262_s21  ;;  %809 = vrot.lane.b32.xlu0 %v3996_v26, %s2262_s21  ;;  %v4004_v6 = vld [vmem:[#allocation13_spill] sm:$0xff]  ;;  %v1202_v33 = vsel %vm1183_vm0, %v4011_v63, %v4010_v1  ;;  %v4017_v1 = vld [vmem:[#allocation23_spill] sm:$0xff] }
 0x17b   : > { %v1122_v57 = vpop.permute.xlu1 %1121  ;;  %v1090_v49 = vpop.permute.xlu0 %1089 }
 0x17c   : > { %v1432_v47 = vsel %vm1414_vm8, %v1399_v32, %v1122_v57  ;;  %v1416_v40 = vsel %vm1414_vm8, %v1383_v39, %v1090_v49  ;;  %v2209_v32 = vld [vmem:[%s2305_s16 + $0x151] sm:$0xff] }
 0x17d   : > { %1133 = vrot.lane.b32.xlu1 %v4003_v10, %s2265_s6  ;;  %1101 = vrot.lane.b32.xlu0 %v4004_v6, %s2265_s6  ;;  %v4012_v57 = vld [vmem:[#allocation65_spill] sm:$0xff] }
 0x17e   : > { %2114 = vmatmul.mubr.msk.f32.vlgmr.msra.gmra.mrb[0].mxu0 %vm1452_vm9, %v1416_v40  ;;  %2138 = vmatmul.mubr.msk.f32.vlgmr.msra.gmra.mrb[0].mxu1 %vm1452_vm9, %v1432_v47  ;;  %v1235_v49 = vsel %vm1216_vm2, %v1202_v33, %v4012_v57  ;;  %v4020_v33 = vld [vmem:[#allocation64_spill] sm:$0xff] }
 0x17f   : > { %v832_v13 = vpop.permute.xlu1 %831  ;;  %v800_v2 = vpop.permute.xlu0 %799 }
 0x181   : > { %843 = vrot.lane.b32.xlu1 %v4003_v10, %s2262_s21  ;;  %811 = vrot.lane.b32.xlu0 %v4004_v6, %s2262_s21 }
 0x183   : > { %v928_v8 = vpop.permute.xlu1 %927  ;;  %v896_v18 = vpop.permute.xlu0 %895 }
 0x185   : > { %939 = vrot.lane.b32.xlu1 %v3970_v50, %s2263_s22  ;;  %907 = vrot.lane.b32.xlu0 %v2657_v58, %s2263_s22  ;;  %v4007_v50 = vld [vmem:[#allocation10_spill] sm:$0xff]  ;;  %v4008_v58 = vld [vmem:[#allocation57_spill] sm:$0xff] }
 0x186   : > { %v1219_v12 = vsel %vm1216_vm2, %v1186_v19, %v4008_v58  ;;  %v2210_v19 = vld [vmem:[%s2305_s16 + $0x159] sm:$0xff]  ;;  %v4013_v58 = vld [vmem:[#allocation24_spill] sm:$0xff] }
 0x187   : > { %v930_v26 = vpop.permute.xlu1 %929  ;;  %v898_v22 = vpop.permute.xlu0 %897 }
 0x189   : > { %941 = vrot.lane.b32.xlu1 %v3968_v25, %s2263_s22  ;;  %909 = vrot.lane.b32.xlu0 %v2654_v42, %s2263_s22  ;;  %v1252_v25 = vsel %vm1249_vm3, %v1219_v12, %v4009_v41  ;;  %v4014_v12 = vld [vmem:[#allocation27_spill] sm:$0xff]  ;;  %v4015_v41 = vld [vmem:[#allocation30_spill] sm:$0xff] }
 0x18a   : > { %v1285_v53 = vsel %vm1282_vm4, %v1252_v25, %v3202_v61  ;;  %v1268_v61 = vsel %vm1249_vm3, %v1235_v49, %v3070_v30  ;;  %v4016_v25 = vld [vmem:[#allocation38_spill] sm:$0xff] }
 0x18b   : > { %v1026_v43 = vpop.permute.xlu1 %1025  ;;  %v994_v15 = vpop.permute.xlu0 %993  ;;  %v1318_v39 = vsel %vm1315_vm5, %v1285_v53, %v798_v16  ;;  %v1301_v16 = vsel %vm1282_vm4, %v1268_v61, %v3253_v3  ;;  %v1203_v53 = vsel %vm1183_vm0, %v4016_v25, %v4015_v41 }
 0x18c   : > { %v1351_v47 = vsel %vm1348_vm6, %v1318_v39, %v896_v18  ;;  %v1334_v52 = vsel %vm1315_vm5, %v1301_v16, %v830_v27  ;;  %v1187_v27 = vsel %vm1183_vm0, %v4014_v12, %v4013_v58  ;;  %v1236_v39 = vsel %vm1216_vm2, %v1203_v53, %v4020_v33  ;;  %v2214_v53 = vld [vmem:[%s2305_s16 + $0x169] sm:$0xff] }
 0x18d   : > { %1037 = vrot.lane.b32.xlu1 %v4007_v50, %s2264_s27  ;;  %1005 = vrot.lane.b32.xlu0 %v2208_v29, %s2264_s27  ;;  %v1384_v40 = vsel %vm1381_vm7, %v1351_v47, %v994_v15  ;;  %v2211_v50 = vld [vmem:[%s2305_s16 + $0x99] sm:$0xff]  ;;  %v1367_v18 = vsel %vm1348_vm6, %v1334_v52, %v928_v8  ;;  %v4018_v8 = vld [vmem:[#allocation15_spill] sm:$0xff]  ;;  %v1269_v49 = vsel %vm1249_vm3, %v1236_v39, %v3068_v11 }
 0x18e   : > { %v1400_v30 = vsel %vm1381_vm7, %v1367_v18, %v1026_v43  ;;  %v4019_v43 = vld [vmem:[#allocation56_spill] sm:$0xff] }
 0x18f   : > { %v996_v60 = vpop.permute.xlu1 %995  ;;  %v3349_v42 = vpop.permute.xlu0 %735  ;;  %v1220_v63 = vsel %vm1216_vm2, %v1187_v27, %v4019_v43 }
 0x191   : > { %747 = vrot.lane.b32.xlu1 %v2209_v32, %s2261_s20  ;;  %715 = vrot.lane.b32.xlu0 %v2208_v29, %s2261_s20  ;;  %v4021_v32 = vld [vmem:[#allocation71_spill] sm:$0xff] }
 0x192   : > { %v1253_v57 = vsel %vm1249_vm3, %v1220_v63, %v4021_v32 }
 0x193   : > { %v1092_v10 = vpop.permute.xlu1 %1091  ;;  %v1028_v6 = vpop.permute.xlu0 %1027 }
 0x194   : > { %v1417_v55 = vsel %vm1414_vm8, %v1384_v40, %v1092_v10  ;;  %v1286_v40 = vsel %vm1282_vm4, %v1253_v57, %v3200_v35  ;;  %v1302_v10 = vsel %vm1282_vm4, %v1269_v49, %v3281_v44  ;;  %v2216_v57 = vld [vmem:[%s2305_s16 + $0x171] sm:$0xff] }
 0x195   : > { %1039 = vrot.lane.b32.xlu1 %v2210_v19, %s2264_s27  ;;  %1007 = vrot.lane.b32.xlu0 %v2211_v50, %s2264_s27  ;;  %v1335_v16 = vsel %vm1315_vm5, %v1302_v10, %v832_v13  ;;  %v2217_v49 = vld [vmem:[%s2305_s16 + $0xb1] sm:$0xff] }
 0x196   : > { %2116 = vmatprep.mubr.msk.f32.mxu0 %vm1452_vm9, %v1417_v55  ;;  %v1319_v55 = vsel %vm1315_vm5, %v1286_v40, %v800_v2  ;;  %v1368_v52 = vsel %vm1348_vm6, %v1335_v16, %v930_v26  ;;  %v2212_v2 = vld [vmem:[%s2305_s16 + $0x92] sm:$0xff]  ;;  %v2218_v40 = vld [vmem:[%s2305_s16 + $0x16a] sm:$0xff] }
 0x197   : > { %v3377_v15 = vpop.permute.xlu1 %737  ;;  %v1124_v29 = vpop.permute.xlu0 %1123  ;;  %v1352_v11 = vsel %vm1348_vm6, %v1319_v55, %v898_v22  ;;  %v1401_v35 = vsel %vm1381_vm7, %v1368_v52, %v1028_v6  ;;  %v2213_v6 = vld [vmem:[%s2305_s16 + $0x9a] sm:$0xff]  ;;  %v2219_v10 = vld [vmem:[%s2305_s16 + $0xaa] sm:$0xff]  ;;  %v1288_v52 = vsel %vm1282_vm4, %v2951_v36, %v3208_v51 }
 0x198   : > { %v1433_v3 = vsel %vm1414_vm8, %v1400_v30, %v1124_v29  ;;  %v1385_v18 = vsel %vm1381_vm7, %v1352_v11, %v996_v60  ;;  %v4022_v60 = vld [vmem:[#allocation22_spill] sm:$0xff]  ;;  %v1304_v11 = vsel %vm1282_vm4, %v3085_v20, %v3377_v15 }
 0x199   : > { %1135 = vrot.lane.b32.xlu1 %v4017_v1, %s2265_s6  ;;  %1103 = vrot.lane.b32.xlu0 %v4018_v8, %s2265_s6 }
 0x19a   : > { %2140 = vmatprep.mubr.msk.f32.mxu1 %vm1452_vm9, %v1433_v3 }
 0x19b   : > { %v834_v47 = vpop.permute.xlu1 %833  ;;  %v802_v61 = vpop.permute.xlu0 %801 }
 0x19d   : > { %749 = vrot.lane.b32.xlu1 %v2210_v19, %s2261_s20  ;;  %717 = vrot.lane.b32.xlu0 %v2211_v50, %s2261_s20 }
 0x19f   : > { %v1126_v30 = vpop.permute.xlu1 %1125  ;;  %v1094_v29 = vpop.permute.xlu0 %1093 }
 0x1a0   : > { %v1434_v44 = vsel %vm1414_vm8, %v1401_v35, %v1126_v30  ;;  %v1418_v13 = vsel %vm1414_vm8, %v1385_v18, %v1094_v29 }
 0x1a1   : > { %845 = vrot.lane.b32.xlu1 %v4017_v1, %s2262_s21  ;;  %813 = vrot.lane.b32.xlu0 %v2212_v2, %s2262_s21  ;;  %v2215_v1 = vld [vmem:[%s2305_s16 + $0xa9] sm:$0xff] }
 0x1a2   : > { %2117 = vmatmul.mubr.msk.f32.gmra.mrb[2].mxu0 %vm1452_vm9, %v1418_v13  ;;  %2141 = vmatmul.mubr.msk.f32.gmra.mrb[2].mxu1 %vm1452_vm9, %v1434_v44 }
 0x1a3   : > { %v836_v26 = vpop.permute.xlu1 %835  ;;  %v804_v22 = vpop.permute.xlu0 %803 }
 0x1a4   : > { %v1337_v18 = vsel %vm1315_vm5, %v1304_v11, %v836_v26  ;;  %v1321_v35 = vsel %vm1315_vm5, %v1288_v52, %v804_v22  ;;  %v2220_v22 = vld [vmem:[%s2305_s16 + $0x172] sm:$0xff]  ;;  %v2226_v52 = vld [vmem:[%s2305_s16 + $0xc2] sm:$0xff] }
 0x1a5   : > { %1137 = vrot.lane.b32.xlu1 %v4022_v60, %s2265_s6  ;;  %1105 = vrot.lane.b32.xlu0 %v2213_v6, %s2265_s6 }
 0x1a7   : > { %v932_v19 = vpop.permute.xlu1 %931  ;;  %v900_v50 = vpop.permute.xlu0 %899 }
 0x1a9   : > { %847 = vrot.lane.b32.xlu1 %v4022_v60, %s2262_s21  ;;  %815 = vrot.lane.b32.xlu0 %v2213_v6, %s2262_s21  ;;  %v2221_v60 = vld [vmem:[%s2305_s16 + $0xb2] sm:$0xff] }
 0x1ab   : > { %v934_v3 = vpop.permute.xlu1 %933  ;;  %v902_v58 = vpop.permute.xlu0 %901 }
 0x1ac   : > { %v1370_v30 = vsel %vm1348_vm6, %v1337_v18, %v934_v3  ;;  %v1354_v29 = vsel %vm1348_vm6, %v1321_v35, %v902_v58  ;;  %v4023_v58 = vld [vmem:[#allocation61_spill] sm:$0xff] }
 0x1ad   : > { %943 = vrot.lane.b32.xlu1 %v3975_v21, %s2263_s22  ;;  %911 = vrot.lane.b32.xlu0 %v2671_v59, %s2263_s22 }
 0x1af   : > { %v1030_v12 = vpop.permute.xlu1 %1029  ;;  %v998_v27 = vpop.permute.xlu0 %997 }
 0x1b1   : > { %945 = vrot.lane.b32.xlu1 %v3973_v46, %s2263_s22  ;;  %913 = vrot.lane.b32.xlu0 %v2668_v28, %s2263_s22  ;;  %v1287_v46 = vsel %vm1282_vm4, %v2954_v4, %v3210_v31  ;;  %v1303_v28 = vsel %vm1282_vm4, %v3088_v24, %v3349_v42 }
 0x1b2   : > { %v1336_v8 = vsel %vm1315_vm5, %v1303_v28, %v834_v47  ;;  %v1320_v43 = vsel %vm1315_vm5, %v1287_v46, %v802_v61 }
 0x1b3   : > { %v3434_v41 = vpop.permute.xlu1 %739  ;;  %v3436_v25 = vpop.permute.xlu0 %707  ;;  %v1369_v63 = vsel %vm1348_vm6, %v1336_v8, %v932_v19  ;;  %v1353_v33 = vsel %vm1348_vm6, %v1320_v43, %v900_v50  ;;  %v2224_v8 = vld [vmem:[%s2305_s16 + $0xc1] sm:$0xff] }
 0x1b4   : > { %v1402_v4 = vsel %vm1381_vm7, %v1369_v63, %v1030_v12  ;;  %v1386_v31 = vsel %vm1381_vm7, %v1353_v33, %v998_v27  ;;  %v2222_v12 = vld [vmem:[%s2305_s16 + $0xc0] sm:$0xff]  ;;  %v1305_v33 = vsel %vm1282_vm4, %v3108_v38, %v3434_v41 }
 0x1b5   : > { %1041 = vrot.lane.b32.xlu1 %v2214_v53, %s2264_s27  ;;  %1009 = vrot.lane.b32.xlu0 %v2215_v1, %s2264_s27 }
 0x1b7   : > { %v1032_v21 = vpop.permute.xlu1 %1031  ;;  %v1000_v59 = vpop.permute.xlu0 %999 }
 0x1b8   : > { %v1403_v36 = vsel %vm1381_vm7, %v1370_v30, %v1032_v21  ;;  %v1387_v51 = vsel %vm1381_vm7, %v1354_v29, %v1000_v59  ;;  %v2223_v21 = vld [vmem:[%s2305_s16 + $0xc8] sm:$0xff] }
 0x1b9   : > { %751 = vrot.lane.b32.xlu1 %v2214_v53, %s2261_s20  ;;  %719 = vrot.lane.b32.xlu0 %v2215_v1, %s2261_s20  ;;  %v4024_v1 = vld [vmem:[#allocation60_spill] sm:$0xff]  ;;  %v269_v59 = vld [vmem:[%s2305_s16 + $0x181] sm:$0xff] }
 0x1bb   : > { %v1128_v39 = vpop.permute.xlu1 %1127  ;;  %v1096_v24 = vpop.permute.xlu0 %1095 }
 0x1bc   : > { %v1435_v42 = vsel %vm1414_vm8, %v1402_v4, %v1128_v39  ;;  %v1419_v32 = vsel %vm1414_vm8, %v1386_v31, %v1096_v24  ;;  %v1289_v4 = vsel %vm1282_vm4, %v2974_v5, %v3436_v25 }
 0x1bd   : > { %1043 = vrot.lane.b32.xlu1 %v2216_v57, %s2264_s27  ;;  %1011 = vrot.lane.b32.xlu0 %v2217_v49, %s2264_s27 }
 0x1be   : > { %2119 = vmatprep.mubr.msk.f32.mxu0 %vm1452_vm9, %v1419_v32  ;;  %2143 = vmatprep.mubr.msk.f32.mxu1 %vm1452_vm9, %v1435_v42  ;;  %v270_v32 = vld [vmem:[%s2305_s16 + $0x189] sm:$0xff] }
 0x1bf   : > { %v3464_v47 = vpop.permute.xlu1 %741  ;;  %v3466_v61 = vpop.permute.xlu0 %709 }
 0x1c0   : > { %v1306_v35 = vsel %vm1282_vm4, %v3105_v54, %v3464_v47  ;;  %v1290_v30 = vsel %vm1282_vm4, %v2971_v34, %v3466_v61 }
 0x1c1   : > { %1139 = vrot.lane.b32.xlu1 %v2218_v40, %s2265_s6  ;;  %1107 = vrot.lane.b32.xlu0 %v2219_v10, %s2265_s6 }
 0x1c3   : > { %v838_v16 = vpop.permute.xlu1 %837  ;;  %v806_v55 = vpop.permute.xlu0 %805 }
 0x1c4   : > { %v1338_v31 = vsel %vm1315_vm5, %v1305_v33, %v838_v16  ;;  %v1322_v39 = vsel %vm1315_vm5, %v1289_v4, %v806_v55 }
 0x1c5   : > { %753 = vrot.lane.b32.xlu1 %v2216_v57, %s2261_s20  ;;  %721 = vrot.lane.b32.xlu0 %v2217_v49, %s2261_s20 }
 0x1c7   : > { %v1130_v44 = vpop.permute.xlu1 %1129  ;;  %v1098_v20 = vpop.permute.xlu0 %1097 }
 0x1c8   : > { %v1436_v15 = vsel %vm1414_vm8, %v1403_v36, %v1130_v44  ;;  %v1420_v13 = vsel %vm1414_vm8, %v1387_v51, %v1098_v20 }
 0x1c9   : > { %849 = vrot.lane.b32.xlu1 %v2218_v40, %s2262_s21  ;;  %817 = vrot.lane.b32.xlu0 %v2219_v10, %s2262_s21  ;;  %v2225_v40 = vld [vmem:[%s2305_s16 + $0xc9] sm:$0xff] }
 0x1ca   : > { %2120 = vmatmul.mubr.msk.f32.gmra.mrb[4].mxu0 %vm1452_vm9, %v1420_v13  ;;  %2144 = vmatmul.mubr.msk.f32.gmra.mrb[4].mxu1 %vm1452_vm9, %v1436_v15  ;;  %v305_v10 = vld [vmem:[%s2305_s16 + $0x182] sm:$0xff]  ;;  %v306_v13 = vld [vmem:[%s2305_s16 + $0x18a] sm:$0xff] }
 0x1cb   : > { %v840_v2 = vpop.permute.xlu1 %839  ;;  %v808_v26 = vpop.permute.xlu0 %807 }
 0x1cc   : > { %v1339_v29 = vsel %vm1315_vm5, %v1306_v35, %v840_v2  ;;  %v1323_v36 = vsel %vm1315_vm5, %v1290_v30, %v808_v26 }
 0x1cd   : > { %1141 = vrot.lane.b32.xlu1 %v2220_v22, %s2265_s6  ;;  %1109 = vrot.lane.b32.xlu0 %v2221_v60, %s2265_s6 }
 0x1cf   : > { %v936_v6 = vpop.permute.xlu1 %935  ;;  %v904_v19 = vpop.permute.xlu0 %903 }
 0x1d0   : > { %v1371_v24 = vsel %vm1348_vm6, %v1338_v31, %v936_v6  ;;  %v1355_v42 = vsel %vm1348_vm6, %v1322_v39, %v904_v19  ;;  %v235_v19 = vld [vmem:[%s2305_s16 + $0x198] sm:$0xff] }
 0x1d1   : > { %851 = vrot.lane.b32.xlu1 %v2220_v22, %s2262_s21  ;;  %819 = vrot.lane.b32.xlu0 %v2221_v60, %s2262_s21  ;;  %v2227_v22 = vld [vmem:[%s2305_s16 + $0xca] sm:$0xff] }
 0x1d3   : > { %v938_v50 = vpop.permute.xlu1 %937  ;;  %v906_v3 = vpop.permute.xlu0 %905 }
 0x1d4   : > { %v1372_v51 = vsel %vm1348_vm6, %v1339_v29, %v938_v50  ;;  %v1356_v44 = vsel %vm1348_vm6, %v1323_v36, %v906_v3 }
 0x1d5   : > { %947 = vrot.lane.b32.xlu1 %v4023_v58, %s2263_s22  ;;  %915 = vrot.lane.b32.xlu0 %v2222_v12, %s2263_s22  ;;  %v2228_v58 = vld [vmem:[%s2305_s16 + $0xd8] sm:$0xff]  ;;  %v236_v12 = vld [vmem:[%s2305_s16 + $0x1a0] sm:$0xff] }
 0x1d7   : > { %v1034_v27 = vpop.permute.xlu1 %1033  ;;  %v1002_v53 = vpop.permute.xlu0 %1001 }
 0x1d8   : > { %v1404_v38 = vsel %vm1381_vm7, %v1371_v24, %v1034_v27  ;;  %v1388_v41 = vsel %vm1381_vm7, %v1355_v42, %v1002_v53 }
 0x1d9   : > { %949 = vrot.lane.b32.xlu1 %v4024_v1, %s2263_s22  ;;  %917 = vrot.lane.b32.xlu0 %v2223_v21, %s2263_s22  ;;  %v2229_v1 = vld [vmem:[%s2305_s16 + $0xe0] sm:$0xff] }
 0x1da   : > { %v271_v21 = vld [vmem:[%s2305_s16 + $0x199] sm:$0xff] }
 0x1db   : > { %v3507_v46 = vpop.permute.xlu1 %743  ;;  %v3509_v28 = vpop.permute.xlu0 %711 }
 0x1dc   : > { %v1307_v31 = vsel %vm1282_vm4, %v3128_v45, %v3507_v46  ;;  %v1291_v39 = vsel %vm1282_vm4, %v2994_v48, %v3509_v28  ;;  %v307_v45 = vld [vmem:[%s2305_s16 + $0x19a] sm:$0xff] }
 0x1dd   : > { %1045 = vrot.lane.b32.xlu1 %v269_v59, %s2264_s27  ;;  %1013 = vrot.lane.b32.xlu0 %v2224_v8, %s2264_s27 }
 0x1df   : > { %v1036_v43 = vpop.permute.xlu1 %1035  ;;  %v1004_v63 = vpop.permute.xlu0 %1003 }
 0x1e0   : > { %v1405_v54 = vsel %vm1381_vm7, %v1372_v51, %v1036_v43  ;;  %v1389_v47 = vsel %vm1381_vm7, %v1356_v44, %v1004_v63  ;;  %v2230_v43 = vld [vmem:[%s2305_s16 + $0xd9] sm:$0xff]  ;;  %v272_v63 = vld [vmem:[%s2305_s16 + $0x1a1] sm:$0xff] }
 0x1e1   : > { %755 = vrot.lane.b32.xlu1 %v269_v59, %s2261_s20  ;;  %723 = vrot.lane.b32.xlu0 %v2224_v8, %s2261_s20 }
 0x1e3   : > { %v1132_v5 = vpop.permute.xlu1 %1131  ;;  %v1100_v25 = vpop.permute.xlu0 %1099 }
 0x1e4   : > { %v1437_v57 = vsel %vm1414_vm8, %v1404_v38, %v1132_v5  ;;  %v1421_v49 = vsel %vm1414_vm8, %v1388_v41, %v1100_v25  ;;  %v2231_v41 = vld [vmem:[%s2305_s16 + $0xe1] sm:$0xff] }
 0x1e5   : > { %1047 = vrot.lane.b32.xlu1 %v270_v32, %s2264_s27  ;;  %1015 = vrot.lane.b32.xlu0 %v2225_v40, %s2264_s27 }
 0x1e6   : > { %2122 = vmatprep.mubr.msk.f32.mxu0 %vm1452_vm9, %v1421_v49  ;;  %2146 = vmatprep.mubr.msk.f32.mxu1 %vm1452_vm9, %v1437_v57  ;;  %v2232_v49 = vld [vmem:[%s2305_s16 + $0xda] sm:$0xff] }
 0x1e7   : > { %v3537_v16 = vpop.permute.xlu1 %745  ;;  %v3539_v55 = vpop.permute.xlu0 %713 }
 0x1e8   : > { %v1308_v30 = vsel %vm1282_vm4, %v3125_v0, %v3537_v16  ;;  %v1292_v29 = vsel %vm1282_vm4, %v2991_v37, %v3539_v55 }
 0x1e9   : > { %1143 = vrot.lane.b32.xlu1 %v305_v10, %s2265_s6  ;;  %1111 = vrot.lane.b32.xlu0 %v2226_v52, %s2265_s6 }
 0x1eb   : > { %v842_v11 = vpop.permute.xlu1 %841  ;;  %v810_v18 = vpop.permute.xlu0 %809 }
 0x1ec   : > { %v1340_v24 = vsel %vm1315_vm5, %v1307_v31, %v842_v11  ;;  %v1324_v42 = vsel %vm1315_vm5, %v1291_v39, %v810_v18  ;;  %v2233_v11 = vld [vmem:[%s2305_s16 + $0xe2] sm:$0xff] }
 0x1ed   : > { %757 = vrot.lane.b32.xlu1 %v270_v32, %s2261_s20  ;;  %725 = vrot.lane.b32.xlu0 %v2225_v40, %s2261_s20  ;;  %v308_v40 = vld [vmem:[%s2305_s16 + $0x1a2] sm:$0xff] }
 0x1ef   : > { %v1134_v20 = vpop.permute.xlu1 %1133  ;;  %v1102_v34 = vpop.permute.xlu0 %1101 }
 0x1f0   : > { %v1438_v61 = vsel %vm1414_vm8, %v1405_v54, %v1134_v20  ;;  %v1422_v15 = vsel %vm1414_vm8, %v1389_v47, %v1102_v34 }
 0x1f1   : > { %853 = vrot.lane.b32.xlu1 %v305_v10, %s2262_s21  ;;  %2147 = vmatmul.mubr.msk.f32.gmra.mrb[6].mxu1 %vm1452_vm9, %v1438_v61 }
 0x1f2   : > { %821 = vrot.lane.b32.xlu0 %v2226_v52, %s2262_s21  ;;  %2123 = vmatmul.mubr.msk.f32.gmra.mrb[6].mxu0 %vm1452_vm9, %v1422_v15 }
 0x1f3   : > { %v844_v2 = vpop.permute.xlu1 %843  ;;  %v812_v26 = vpop.permute.xlu0 %811 }
 0x1f4   : > { %v1341_v36 = vsel %vm1315_vm5, %v1308_v30, %v844_v2  ;;  %v1325_v51 = vsel %vm1315_vm5, %v1292_v29, %v812_v26 }
 0x1f5   : > { %1145 = vrot.lane.b32.xlu1 %v306_v13, %s2265_s6 }
 0x1f6   : > { %1113 = vrot.lane.b32.xlu0 %v2227_v22, %s2265_s6 }
 0x1f7   : > { %v940_v60 = vpop.permute.xlu1 %939  ;;  %v908_v6 = vpop.permute.xlu0 %907 }
 0x1f8   : > { %v1373_v32 = vsel %vm1348_vm6, %v1340_v24, %v940_v60  ;;  %v1357_v38 = vsel %vm1348_vm6, %v1324_v42, %v908_v6 }
 0x1f9   : > { %855 = vrot.lane.b32.xlu1 %v306_v13, %s2262_s21 }
 0x1fa   : > { %823 = vrot.lane.b32.xlu0 %v2227_v22, %s2262_s21 }
 0x1fb   : > { %v942_v50 = vpop.permute.xlu1 %941  ;;  %v910_v3 = vpop.permute.xlu0 %909 }
 0x1fc   : > { %v1374_v44 = vsel %vm1348_vm6, %v1341_v36, %v942_v50  ;;  %v1358_v54 = vsel %vm1348_vm6, %v1325_v51, %v910_v3 }
 0x1fd   : > { %951 = vrot.lane.b32.xlu1 %v235_v19, %s2263_s22 }
 0x1fe   : > { %919 = vrot.lane.b32.xlu0 %v2228_v58, %s2263_s22 }
 0x1ff   : > { %v1038_v27 = vpop.permute.xlu1 %1037  ;;  %v1006_v53 = vpop.permute.xlu0 %1005 }
 0x200   : > { %v1406_v46 = vsel %vm1381_vm7, %v1373_v32, %v1038_v27  ;;  %v1390_v48 = vsel %vm1381_vm7, %v1357_v38, %v1006_v53 }
 0x201   : > { %953 = vrot.lane.b32.xlu1 %v236_v12, %s2263_s22 }
 0x202   : > { %921 = vrot.lane.b32.xlu0 %v2229_v1, %s2263_s22 }
 0x203   : > { %v3579_v59 = vpop.permute.xlu1 %747  ;;  %v3581_v8 = vpop.permute.xlu0 %715 }
 0x204   : > { %v1309_v58 = vsel %vm1282_vm4, %v3148_v62, %v3579_v59  ;;  %v1293_v12 = vsel %vm1282_vm4, %v3014_v7, %v3581_v8 }
 0x205   : > { %1049 = vrot.lane.b32.xlu1 %v271_v21, %s2264_s27 }
 0x206   : > { %1017 = vrot.lane.b32.xlu0 %v2230_v43, %s2264_s27 }
 0x207   : > { %v1040_v33 = vpop.permute.xlu1 %1039  ;;  %v1008_v4 = vpop.permute.xlu0 %1007 }
 0x208   : > { %v1407_v47 = vsel %vm1381_vm7, %v1374_v44, %v1040_v33  ;;  %v1391_v20 = vsel %vm1381_vm7, %v1358_v54, %v1008_v4 }
 0x209   : > { %1051 = vrot.lane.b32.xlu1 %v272_v63, %s2264_s27 }
 0x20a   : > { %1019 = vrot.lane.b32.xlu0 %v2231_v41, %s2264_s27 }
 0x20b   : > { %v1136_v28 = vpop.permute.xlu1 %1135  ;;  %v1104_v5 = vpop.permute.xlu0 %1103 }
 0x20c   : > { %v1439_v25 = vsel %vm1414_vm8, %v1406_v46, %v1136_v28  ;;  %v1423_v57 = vsel %vm1414_vm8, %v1390_v48, %v1104_v5 }
 0x20d   : > { %1147 = vrot.lane.b32.xlu1 %v307_v45, %s2265_s6  ;;  %2149 = vmatprep.mubr.msk.f32.mxu1 %vm1452_vm9, %v1439_v25 }
 0x20e   : > { %1115 = vrot.lane.b32.xlu0 %v2232_v49, %s2265_s6  ;;  %2125 = vmatprep.mubr.msk.f32.mxu0 %vm1452_vm9, %v1423_v57 }
 0x20f   : > { %v750_v10 = vpop.permute.xlu1 %749  ;;  %v718_v52 = vpop.permute.xlu0 %717 }
 0x210   : > { %v1310_v24 = vsel %vm1282_vm4, %v3145_v17, %v750_v10  ;;  %v1294_v42 = vsel %vm1282_vm4, %v3011_v14, %v718_v52 }
 0x211   : > { %1149 = vrot.lane.b32.xlu1 %v308_v40, %s2265_s6 }
 0x212   : > { %1117 = vrot.lane.b32.xlu0 %v2233_v11, %s2265_s6 }
 0x213   : > { %v846_v18 = vpop.permute.xlu1 %845  ;;  %v814_v35 = vpop.permute.xlu0 %813 }
 0x214   : > { %v1342_v27 = vsel %vm1315_vm5, %v1309_v58, %v846_v18  ;;  %v1326_v53 = vsel %vm1315_vm5, %v1293_v12, %v814_v35 }
 0x217   : > { %v1138_v34 = vpop.permute.xlu1 %1137  ;;  %v1106_v61 = vpop.permute.xlu0 %1105 }
 0x218   : > { %v1440_v0 = vsel %vm1414_vm8, %v1407_v47, %v1138_v34  ;;  %v1424_v16 = vsel %vm1414_vm8, %v1391_v20, %v1106_v61 }
 0x219   : > { %2126 = vmatmul.mubr.msk.f32.gmra.mrb[8].mxu0 %vm1452_vm9, %v1424_v16  ;;  %2150 = vmatmul.mubr.msk.f32.gmra.mrb[8].mxu1 %vm1452_vm9, %v1440_v0 }
 0x21b   : > { %v848_v37 = vpop.permute.xlu1 %847  ;;  %v816_v55 = vpop.permute.xlu0 %815 }
 0x21c   : > { %v1343_v32 = vsel %vm1315_vm5, %v1310_v24, %v848_v37  ;;  %v1327_v38 = vsel %vm1315_vm5, %v1294_v42, %v816_v55 }
 0x21f   : > { %v944_v15 = vpop.permute.xlu1 %943  ;;  %v912_v13 = vpop.permute.xlu0 %911 }
 0x220   : > { %v1375_v1 = vsel %vm1348_vm6, %v1342_v27, %v944_v15  ;;  %v1359_v21 = vsel %vm1348_vm6, %v1326_v53, %v912_v13 }
 0x223   : > { %v946_v2 = vpop.permute.xlu1 %945  ;;  %v914_v26 = vpop.permute.xlu0 %913 }
 0x224   : > { %v1376_v41 = vsel %vm1348_vm6, %v1343_v32, %v946_v2  ;;  %v1360_v45 = vsel %vm1348_vm6, %v1327_v38, %v914_v26 }
 0x227   : > { %v1042_v22 = vpop.permute.xlu1 %1041  ;;  %v1010_v60 = vpop.permute.xlu0 %1009 }
 0x228   : > { %v1408_v43 = vsel %vm1381_vm7, %v1375_v1, %v1042_v22  ;;  %v1392_v63 = vsel %vm1381_vm7, %v1359_v21, %v1010_v60 }
 0x22b   : > { %v3630_v6 = vpop.permute.xlu1 %751  ;;  %v3632_v19 = vpop.permute.xlu0 %719 }
 0x22c   : > { %v1311_v13 = vsel %vm1282_vm4, %v3168_v9, %v3630_v6  ;;  %v1295_v2 = vsel %vm1282_vm4, %v3034_v23, %v3632_v19 }
 0x22f   : > { %v1044_v50 = vpop.permute.xlu1 %1043  ;;  %v1012_v3 = vpop.permute.xlu0 %1011 }
 0x230   : > { %v1409_v46 = vsel %vm1381_vm7, %v1376_v41, %v1044_v50  ;;  %v1393_v48 = vsel %vm1381_vm7, %v1360_v45, %v1012_v3 }
 0x233   : > { %v1140_v33 = vpop.permute.xlu1 %1139  ;;  %v1108_v4 = vpop.permute.xlu0 %1107 }
 0x234   : > { %v1441_v62 = vsel %vm1414_vm8, %v1408_v43, %v1140_v33  ;;  %v1425_v59 = vsel %vm1414_vm8, %v1392_v63, %v1108_v4  ;;  %v4025_v43 = vld [vmem:[#allocation73_spill] sm:$0xff] }
 0x235   : > { %2128 = vmatprep.mubr.msk.f32.mxu0 %vm1452_vm9, %v1425_v59  ;;  %2152 = vmatprep.mubr.msk.f32.mxu1 %vm1452_vm9, %v1441_v62 }
 0x237   : > { %v3650_v7 = vpop.permute.xlu1 %753  ;;  %v3652_v8 = vpop.permute.xlu0 %721 }
 0x238   : > { %v1312_v21 = vsel %vm1282_vm4, %v3165_v56, %v3650_v7  ;;  %v1296_v63 = vsel %vm1282_vm4, %v4025_v43, %v3652_v8 }
 0x23b   : > { %v850_v31 = vpop.permute.xlu1 %849  ;;  %v818_v39 = vpop.permute.xlu0 %817 }
 0x23c   : > { %v1344_v26 = vsel %vm1315_vm5, %v1311_v13, %v850_v31  ;;  %v1328_v22 = vsel %vm1315_vm5, %v1295_v2, %v818_v39  ;;  %v4028_v2 = vld [vmem:[#allocation32_spill] sm:$0xff] }
 0x23f   : > { %v1142_v28 = vpop.permute.xlu1 %1141  ;;  %v1110_v5 = vpop.permute.xlu0 %1109 }
 0x240   : > { %v1442_v17 = vsel %vm1414_vm8, %v1409_v46, %v1142_v28  ;;  %v1426_v25 = vsel %vm1414_vm8, %v1393_v48, %v1110_v5 }
 0x241   : > { %2129 = vmatmul.mubr.msk.f32.gmra.mrb[10].mxu0 %vm1452_vm9, %v1426_v25  ;;  %2153 = vmatmul.mubr.msk.f32.gmra.mrb[10].mxu1 %vm1452_vm9, %v1442_v17 }
 0x243   : > { %v852_v14 = vpop.permute.xlu1 %851  ;;  %v820_v57 = vpop.permute.xlu0 %819 }
 0x244   : > { %v1345_v33 = vsel %vm1315_vm5, %v1312_v21, %v852_v14  ;;  %v1329_v4 = vsel %vm1315_vm5, %v1296_v63, %v820_v57 }
 0x247   : > { %v948_v49 = vpop.permute.xlu1 %947  ;;  %v916_v40 = vpop.permute.xlu0 %915 }
 0x248   : > { %v1377_v60 = vsel %vm1348_vm6, %v1344_v26, %v948_v49  ;;  %v1361_v50 = vsel %vm1348_vm6, %v1328_v22, %v916_v40  ;;  %v4029_v26 = vld [vmem:[#allocation74_spill] sm:$0xff] }
 0x24b   : > { %v950_v10 = vpop.permute.xlu1 %949  ;;  %v918_v52 = vpop.permute.xlu0 %917 }
 0x24c   : > { %v1378_v62 = vsel %vm1348_vm6, %v1345_v33, %v950_v10  ;;  %v1362_v59 = vsel %vm1348_vm6, %v1329_v4, %v918_v52 }
 0x24f   : > { %v1046_v11 = vpop.permute.xlu1 %1045  ;;  %v1014_v18 = vpop.permute.xlu0 %1013 }
 0x250   : > { %v1410_v3 = vsel %vm1381_vm7, %v1377_v60, %v1046_v11  ;;  %v1394_v58 = vsel %vm1381_vm7, %v1361_v50, %v1014_v18 }
 0x251   : > { %v2115_v35 = vpop.f32.mrb[0].mxu0  ;;  %v2139_v30 = vpop.f32.mrb[0].mxu1 }
 0x252   : > { %vm1779_vm10 = vcmp.ge.f32.partialorder %v2115_v35, 0.0  ;;  %v1811_v29 = vmul.f32 0.1, %v2115_v35  ;;  %vm1795_vm11 = vcmp.ge.f32.partialorder %v2139_v30, 0.0  ;;  %v1827_v36 = vmul.f32 0.1, %v2139_v30 }
 0x253   : > { %v1619_v51 = vpop.f32.mrb[1].mxu0  ;;  %v1699_v44 = vpop.f32.mrb[1].mxu1 }
 0x254   : > { %v1843_v54 = vsel %vm1779_vm10, %v2115_v35, %v1811_v29  ;;  %v1859_v47 = vsel %vm1795_vm11, %v2139_v30, %v1827_v36  ;;  %vm1778_vm12 = vcmp.ge.f32.partialorder %v1619_v51, 0.0  ;;  %v1810_v20 = vmul.f32 0.1, %v1619_v51  ;;  %v3674_v34 = vpop.permute.xlu1 %755  ;;  %v3676_v61 = vpop.permute.xlu0 %723  ;;  %v4026_v36 = vld [vmem:[#allocation35_spill] sm:$0xff] }
 0x255   : > { %1875 = vst.msk [vmem:[%s3672_s14 + $0x8] sm:$0xff] %vm1216_vm2, %v1843_v54  ;;  %1891 = vst.msk [vmem:[%s3672_s14 + $0x88] sm:$0xff] %vm1216_vm2, %v1859_v47  ;;  %vm1794_vm13 = vcmp.ge.f32.partialorder %v1699_v44, 0.0  ;;  %v1826_v0 = vmul.f32 0.1, %v1699_v44 }
 0x256   : > { %v1842_v16 = vsel %vm1778_vm12, %v1619_v51, %v1810_v20  ;;  %v1313_v51 = vsel %vm1282_vm4, %v4026_v36, %v3674_v34 }
 0x257   : > { %1874 = vst.msk [vmem:[%s3672_s14] sm:$0xff] %vm1216_vm2, %v1842_v16  ;;  %v1858_v37 = vsel %vm1794_vm13, %v1699_v44, %v1826_v0  ;;  %v4027_v44 = vld [vmem:[#allocation75_spill] sm:$0xff] }
 0x258   : > { %1890 = vst.msk [vmem:[%s3672_s14 + $0x80] sm:$0xff] %vm1216_vm2, %v1858_v37  ;;  %v1048_v55 = vpop.permute.xlu1 %1047  ;;  %v1016_v15 = vpop.permute.xlu0 %1015  ;;  %v1297_v54 = vsel %vm1282_vm4, %v4027_v44, %v3676_v61 }
 0x259   : > { %v1411_v31 = vsel %vm1381_vm7, %v1378_v62, %v1048_v55  ;;  %v1395_v39 = vsel %vm1381_vm7, %v1362_v59, %v1016_v15 }
 0x25c   : > { %v1144_v12 = vpop.permute.xlu1 %1143  ;;  %v1112_v27 = vpop.permute.xlu0 %1111 }
 0x25d   : > { %v1443_v9 = vsel %vm1414_vm8, %v1410_v3, %v1144_v12  ;;  %v1427_v6 = vsel %vm1414_vm8, %v1394_v58, %v1112_v27 }
 0x25e   : > { %2131 = vmatprep.mubr.msk.f32.mxu0 %vm1452_vm9, %v1427_v6  ;;  %2155 = vmatprep.mubr.msk.f32.mxu1 %vm1452_vm9, %v1443_v9 }
 0x260   : > { %v758_v23 = vpop.permute.xlu1 %757  ;;  %v726_v19 = vpop.permute.xlu0 %725 }
 0x261   : > { %v1314_v34 = vsel %vm1282_vm4, %v4028_v2, %v758_v23  ;;  %v1298_v61 = vsel %vm1282_vm4, %v4029_v26, %v726_v19 }
 0x264   : > { %v854_v53 = vpop.permute.xlu1 %853  ;;  %v822_v1 = vpop.permute.xlu0 %821 }
 0x265   : > { %v1346_v47 = vsel %vm1315_vm5, %v1313_v51, %v854_v53  ;;  %v1330_v20 = vsel %vm1315_vm5, %v1297_v54, %v822_v1 }
 0x268   : > { %v1146_v24 = vpop.permute.xlu1 %1145  ;;  %v1114_v42 = vpop.permute.xlu0 %1113 }
 0x269   : > { %v1444_v56 = vsel %vm1414_vm8, %v1411_v31, %v1146_v24  ;;  %v1428_v7 = vsel %vm1414_vm8, %v1395_v39, %v1114_v42 }
 0x26a   : > { %2132 = vmatmul.mubr.msk.f32.gmra.mrb[12].mxu0 %vm1452_vm9, %v1428_v7  ;;  %2156 = vmatmul.mubr.msk.f32.gmra.mrb[12].mxu1 %vm1452_vm9, %v1444_v56 }
 0x26c   : > { %v856_v8 = vpop.permute.xlu1 %855  ;;  %v824_v32 = vpop.permute.xlu0 %823 }
 0x26d   : > { %v1347_v50 = vsel %vm1315_vm5, %v1314_v34, %v856_v8  ;;  %v1331_v3 = vsel %vm1315_vm5, %v1298_v61, %v824_v32 }
 0x270   : > { %v952_v38 = vpop.permute.xlu1 %951  ;;  %v920_v41 = vpop.permute.xlu0 %919 }
 0x271   : > { %v1379_v0 = vsel %vm1348_vm6, %v1346_v47, %v952_v38  ;;  %v1363_v16 = vsel %vm1348_vm6, %v1330_v20, %v920_v41 }
 0x274   : > { %v954_v45 = vpop.permute.xlu1 %953  ;;  %v922_v46 = vpop.permute.xlu0 %921 }
 0x275   : > { %v2118_v48 = vpop.f32.mrb[2].mxu0  ;;  %v2142_v28 = vpop.f32.mrb[2].mxu1  ;;  %v1380_v58 = vsel %vm1348_vm6, %v1347_v50, %v954_v45  ;;  %v1364_v12 = vsel %vm1348_vm6, %v1331_v3, %v922_v46 }
 0x276   : > { %vm1781_vm14 = vcmp.ge.f32.partialorder %v2118_v48, 0.0  ;;  %v1813_v5 = vmul.f32 0.1, %v2118_v48  ;;  %vm1797_vm15 = vcmp.ge.f32.partialorder %v2142_v28, 0.0  ;;  %v1829_v17 = vmul.f32 0.1, %v2142_v28 }
 0x277   : > { %v1629_v25 = vpop.f32.mrb[3].mxu0  ;;  %v1709_v14 = vpop.f32.mrb[3].mxu1 }
 0x278   : > { %v1845_v57 = vsel %vm1781_vm14, %v2118_v48, %v1813_v5  ;;  %v1861_v49 = vsel %vm1797_vm15, %v2142_v28, %v1829_v17  ;;  %vm1780_vm0 = vcmp.ge.f32.partialorder %v1629_v25, 0.0  ;;  %v1812_v40 = vmul.f32 0.1, %v1629_v25  ;;  %v1050_v10 = vpop.permute.xlu1 %1049  ;;  %v1018_v52 = vpop.permute.xlu0 %1017 }
 0x279   : > { %1877 = vst.msk [vmem:[%s3672_s14 + $0x18] sm:$0xff] %vm1216_vm2, %v1845_v57  ;;  %1893 = vst.msk [vmem:[%s3672_s14 + $0x98] sm:$0xff] %vm1216_vm2, %v1861_v49  ;;  %vm1796_vm1 = vcmp.ge.f32.partialorder %v1709_v14, 0.0  ;;  %v1828_v11 = vmul.f32 0.1, %v1709_v14  ;;  %v1412_v37 = vsel %vm1381_vm7, %v1379_v0, %v1050_v10  ;;  %v1396_v55 = vsel %vm1381_vm7, %v1363_v16, %v1018_v52 }
 0x27a   : > { %v1844_v18 = vsel %vm1780_vm0, %v1629_v25, %v1812_v40 }
 0x27b   : > { %1876 = vst.msk [vmem:[%s3672_s14 + $0x10] sm:$0xff] %vm1216_vm2, %v1844_v18  ;;  %v1860_v35 = vsel %vm1796_vm1, %v1709_v14, %v1828_v11 }
 0x27c   : > { %1892 = vst.msk [vmem:[%s3672_s14 + $0x90] sm:$0xff] %vm1216_vm2, %v1860_v35  ;;  %v1052_v30 = vpop.permute.xlu1 %1051  ;;  %v1020_v29 = vpop.permute.xlu0 %1019 }
 0x27d   : > { %v1413_v27 = vsel %vm1381_vm7, %v1380_v58, %v1052_v30  ;;  %v1397_v9 = vsel %vm1381_vm7, %v1364_v12, %v1020_v29 }
 0x280   : > { %v1148_v15 = vpop.permute.xlu1 %1147  ;;  %v1116_v13 = vpop.permute.xlu0 %1115 }
 0x281   : > { %v1445_v22 = vsel %vm1414_vm8, %v1412_v37, %v1148_v15  ;;  %v1429_v60 = vsel %vm1414_vm8, %v1396_v55, %v1116_v13 }
 0x282   : > { %2134 = vmatprep.mubr.msk.f32.mxu0 %vm1452_vm9, %v1429_v60  ;;  %2158 = vmatprep.mubr.msk.f32.mxu1 %vm1452_vm9, %v1445_v22 }
 0x284   : > { %v1150_v6 = vpop.permute.xlu1 %1149  ;;  %v1118_v23 = vpop.permute.xlu0 %1117 }
 0x285   : > { %v1446_v19 = vsel %vm1414_vm8, %v1413_v27, %v1150_v6  ;;  %v1430_v53 = vsel %vm1414_vm8, %v1397_v9, %v1118_v23 }
 0x286   : > { %2135 = vmatmul.mubr.msk.f32.gmra.mrb[14].mxu0 %vm1452_vm9, %v1430_v53  ;;  %2159 = vmatmul.mubr.msk.f32.gmra.mrb[14].mxu1 %vm1452_vm9, %v1446_v19 }
 0x29d   : > { %v2121_v1 = vpop.f32.mrb[4].mxu0  ;;  %v2145_v21 = vpop.f32.mrb[4].mxu1 }
 0x29e   : > { %vm1783_vm3 = vcmp.ge.f32.partialorder %v2121_v1, 0.0  ;;  %v1815_v43 = vmul.f32 0.1, %v2121_v1  ;;  %vm1799_vm4 = vcmp.ge.f32.partialorder %v2145_v21, 0.0  ;;  %v1831_v63 = vmul.f32 0.1, %v2145_v21 }
 0x29f   : > { %v1639_v33 = vpop.f32.mrb[5].mxu0  ;;  %v1719_v4 = vpop.f32.mrb[5].mxu1 }
 0x2a0   : > { %v1847_v62 = vsel %vm1783_vm3, %v2121_v1, %v1815_v43  ;;  %v1863_v59 = vsel %vm1799_vm4, %v2145_v21, %v1831_v63  ;;  %vm1782_vm5 = vcmp.ge.f32.partialorder %v1639_v33, 0.0  ;;  %v1814_v31 = vmul.f32 0.1, %v1639_v33 }
 0x2a1   : > { %1879 = vst.msk [vmem:[%s3672_s14 + $0x28] sm:$0xff] %vm1216_vm2, %v1847_v62  ;;  %1895 = vst.msk [vmem:[%s3672_s14 + $0xa8] sm:$0xff] %vm1216_vm2, %v1863_v59  ;;  %vm1798_vm6 = vcmp.ge.f32.partialorder %v1719_v4, 0.0  ;;  %v1830_v39 = vmul.f32 0.1, %v1719_v4 }
 0x2a2   : > { %v1846_v24 = vsel %vm1782_vm5, %v1639_v33, %v1814_v31 }
 0x2a3   : > { %1878 = vst.msk [vmem:[%s3672_s14 + $0x20] sm:$0xff] %vm1216_vm2, %v1846_v24  ;;  %v1862_v42 = vsel %vm1798_vm6, %v1719_v4, %v1830_v39 }
 0x2a4   : > { %1894 = vst.msk [vmem:[%s3672_s14 + $0xa0] sm:$0xff] %vm1216_vm2, %v1862_v42 }
 0x2c4   : > { %v2148_v56 = vpop.f32.mrb[6].mxu1 }
 0x2c5   : > { %v2124_v7 = vpop.f32.mrb[6].mxu0  ;;  %vm1801_vm7 = vcmp.ge.f32.partialorder %v2148_v56, 0.0  ;;  %v1833_v8 = vmul.f32 0.1, %v2148_v56  ;;  %v1729_v32 = vpop.f32.mrb[7].mxu1 }
 0x2c6   : > { %vm1785_vm8 = vcmp.ge.f32.partialorder %v2124_v7, 0.0  ;;  %v1817_v38 = vmul.f32 0.1, %v2124_v7  ;;  %v1649_v41 = vpop.f32.mrb[7].mxu0  ;;  %vm1800_vm9 = vcmp.ge.f32.partialorder %v1729_v32, 0.0 }
 0x2c7   : > { %v1865_v45 = vsel %vm1801_vm7, %v2148_v56, %v1833_v8  ;;  %vm1784_vm10 = vcmp.ge.f32.partialorder %v1649_v41, 0.0  ;;  %v1816_v46 = vmul.f32 0.1, %v1649_v41  ;;  %v1832_v48 = vmul.f32 0.1, %v1729_v32 }
 0x2c8   : > { %v1849_v28 = vsel %vm1785_vm8, %v2124_v7, %v1817_v38  ;;  %1897 = vst.msk [vmem:[%s3672_s14 + $0xb8] sm:$0xff] %vm1216_vm2, %v1865_v45 }
 0x2c9   : > { %1881 = vst.msk [vmem:[%s3672_s14 + $0x38] sm:$0xff] %vm1216_vm2, %v1849_v28  ;;  %v1848_v5 = vsel %vm1784_vm10, %v1649_v41, %v1816_v46  ;;  %v1864_v17 = vsel %vm1800_vm9, %v1729_v32, %v1832_v48 }
 0x2ca   : > { %1880 = vst.msk [vmem:[%s3672_s14 + $0x30] sm:$0xff] %vm1216_vm2, %v1848_v5  ;;  %1896 = vst.msk [vmem:[%s3672_s14 + $0xb0] sm:$0xff] %vm1216_vm2, %v1864_v17 }
 0x2ec   : > { %v2127_v25 = vpop.f32.mrb[8].mxu0  ;;  %v2151_v14 = vpop.f32.mrb[8].mxu1 }
 0x2ed   : > { %vm1787_vm11 = vcmp.ge.f32.partialorder %v2127_v25, 0.0  ;;  %v1819_v57 = vmul.f32 0.1, %v2127_v25  ;;  %vm1803_vm12 = vcmp.ge.f32.partialorder %v2151_v14, 0.0  ;;  %v1835_v49 = vmul.f32 0.1, %v2151_v14 }
 0x2ee   : > { %v1659_v40 = vpop.f32.mrb[9].mxu0  ;;  %v1739_v10 = vpop.f32.mrb[9].mxu1 }
 0x2ef   : > { %v1851_v52 = vsel %vm1787_vm11, %v2127_v25, %v1819_v57  ;;  %v1867_v11 = vsel %vm1803_vm12, %v2151_v14, %v1835_v49  ;;  %vm1786_vm13 = vcmp.ge.f32.partialorder %v1659_v40, 0.0  ;;  %v1818_v18 = vmul.f32 0.1, %v1659_v40 }
 0x2f0   : > { %1883 = vst.msk [vmem:[%s3672_s14 + $0x48] sm:$0xff] %vm1216_vm2, %v1851_v52  ;;  %1899 = vst.msk [vmem:[%s3672_s14 + $0xc8] sm:$0xff] %vm1216_vm2, %v1867_v11  ;;  %vm1802_vm14 = vcmp.ge.f32.partialorder %v1739_v10, 0.0  ;;  %v1834_v35 = vmul.f32 0.1, %v1739_v10 }
 0x2f1   : > { %v1850_v30 = vsel %vm1786_vm13, %v1659_v40, %v1818_v18 }
 0x2f2   : > { %1882 = vst.msk [vmem:[%s3672_s14 + $0x40] sm:$0xff] %vm1216_vm2, %v1850_v30  ;;  %v1866_v29 = vsel %vm1802_vm14, %v1739_v10, %v1834_v35 }
 0x2f3   : > { %1898 = vst.msk [vmem:[%s3672_s14 + $0xc0] sm:$0xff] %vm1216_vm2, %v1866_v29 }
 0x314   : > { %v2130_v36 = vpop.f32.mrb[10].mxu0  ;;  %v2154_v51 = vpop.f32.mrb[10].mxu1 }
 0x315   : > { %vm1789_vm15 = vcmp.ge.f32.partialorder %v2130_v36, 0.0  ;;  %v1821_v44 = vmul.f32 0.1, %v2130_v36  ;;  %vm1805_vm0 = vcmp.ge.f32.partialorder %v2154_v51, 0.0  ;;  %v1837_v54 = vmul.f32 0.1, %v2154_v51 }
 0x316   : > { %v1669_v47 = vpop.f32.mrb[11].mxu0  ;;  %v1749_v20 = vpop.f32.mrb[11].mxu1 }
 0x317   : > { %v1853_v0 = vsel %vm1789_vm15, %v2130_v36, %v1821_v44  ;;  %v1869_v16 = vsel %vm1805_vm0, %v2154_v51, %v1837_v54  ;;  %vm1788_vm1 = vcmp.ge.f32.partialorder %v1669_v47, 0.0  ;;  %v1820_v37 = vmul.f32 0.1, %v1669_v47 }
 0x318   : > { %1885 = vst.msk [vmem:[%s3672_s14 + $0x58] sm:$0xff] %vm1216_vm2, %v1853_v0  ;;  %1901 = vst.msk [vmem:[%s3672_s14 + $0xd8] sm:$0xff] %vm1216_vm2, %v1869_v16  ;;  %vm1804_vm3 = vcmp.ge.f32.partialorder %v1749_v20, 0.0  ;;  %v1836_v55 = vmul.f32 0.1, %v1749_v20 }
 0x319   : > { %v1852_v15 = vsel %vm1788_vm1, %v1669_v47, %v1820_v37 }
 0x31a   : > { %1884 = vst.msk [vmem:[%s3672_s14 + $0x50] sm:$0xff] %vm1216_vm2, %v1852_v15  ;;  %v1868_v13 = vsel %vm1804_vm3, %v1749_v20, %v1836_v55 }
 0x31b   : > { %1900 = vst.msk [vmem:[%s3672_s14 + $0xd0] sm:$0xff] %vm1216_vm2, %v1868_v13 }
 0x33d   : > { %v2133_v2 = vpop.f32.mrb[12].mxu0  ;;  %v2157_v34 = vpop.f32.mrb[12].mxu1 }
 0x33e   : > { %vm1791_vm4 = vcmp.ge.f32.partialorder %v2133_v2, 0.0  ;;  %v1823_v26 = vmul.f32 0.1, %v2133_v2  ;;  %vm1807_vm5 = vcmp.ge.f32.partialorder %v2157_v34, 0.0  ;;  %v1839_v61 = vmul.f32 0.1, %v2157_v34 }
 0x33f   : > { %v1679_v22 = vpop.f32.mrb[13].mxu0  ;;  %v1759_v60 = vpop.f32.mrb[13].mxu1 }
 0x340   : > { %v1855_v50 = vsel %vm1791_vm4, %v2133_v2, %v1823_v26  ;;  %v1871_v3 = vsel %vm1807_vm5, %v2157_v34, %v1839_v61  ;;  %vm1790_vm6 = vcmp.ge.f32.partialorder %v1679_v22, 0.0  ;;  %v1822_v58 = vmul.f32 0.1, %v1679_v22 }
 0x341   : > { %1887 = vst.msk [vmem:[%s3672_s14 + $0x68] sm:$0xff] %vm1216_vm2, %v1855_v50  ;;  %1903 = vst.msk [vmem:[%s3672_s14 + $0xe8] sm:$0xff] %vm1216_vm2, %v1871_v3  ;;  %vm1806_vm7 = vcmp.ge.f32.partialorder %v1759_v60, 0.0  ;;  %v1838_v12 = vmul.f32 0.1, %v1759_v60 }
 0x342   : > { %v1854_v27 = vsel %vm1790_vm6, %v1679_v22, %v1822_v58 }
 0x343   : > { %1886 = vst.msk [vmem:[%s3672_s14 + $0x60] sm:$0xff] %vm1216_vm2, %v1854_v27  ;;  %v1870_v9 = vsel %vm1806_vm7, %v1759_v60, %v1838_v12 }
 0x344   : > { %1902 = vst.msk [vmem:[%s3672_s14 + $0xe0] sm:$0xff] %vm1216_vm2, %v1870_v9 }
 0x359   : > { %v2136_v6 = vpop.f32.mrb[14].mxu0  ;;  %v2160_v23 = vpop.f32.mrb[14].mxu1 }
 0x35a   : > { %vm1793_vm8 = vcmp.ge.f32.partialorder %v2136_v6, 0.0  ;;  %v1825_v19 = vmul.f32 0.1, %v2136_v6  ;;  %vm1809_vm9 = vcmp.ge.f32.partialorder %v2160_v23, 0.0  ;;  %v1841_v53 = vmul.f32 0.1, %v2160_v23 }
 0x35b   : > { %v1689_v1 = vpop.f32.mrb[15].mxu0  ;;  %v1769_v21 = vpop.f32.mrb[15].mxu1 }
 0x35c   : > { %v1857_v43 = vsel %vm1793_vm8, %v2136_v6, %v1825_v19  ;;  %v1873_v63 = vsel %vm1809_vm9, %v2160_v23, %v1841_v53  ;;  %vm1792_vm10 = vcmp.ge.f32.partialorder %v1689_v1, 0.0  ;;  %v1824_v33 = vmul.f32 0.1, %v1689_v1 }
 0x35d   : > { %1889 = vst.msk [vmem:[%s3672_s14 + $0x78] sm:$0xff] %vm1216_vm2, %v1857_v43  ;;  %1905 = vst.msk [vmem:[%s3672_s14 + $0xf8] sm:$0xff] %vm1216_vm2, %v1873_v63  ;;  %vm1808_vm11 = vcmp.ge.f32.partialorder %v1769_v21, 0.0  ;;  %v1840_v4 = vmul.f32 0.1, %v1769_v21 }
 0x35e   : > { %v1856_v62 = vsel %vm1792_vm10, %v1689_v1, %v1824_v33 }
 0x35f   : > { %1888 = vst.msk [vmem:[%s3672_s14 + $0x70] sm:$0xff] %vm1216_vm2, %v1856_v62  ;;  %v1872_v59 = vsel %vm1808_vm11, %v1769_v21, %v1840_v4 }
 0x360   : > { %1904 = vst.msk [vmem:[%s3672_s14 + $0xf0] sm:$0xff] %vm1216_vm2, %v1872_v59 }
 0x361 PF: > { %s12_s11 = sadd.s32 1, %s2256_s11   ;;  %s4030_s9 = smov %s2252_s10 }
 0x362   : > { %p9_p5 = scmp.ge.s32.totalorder %s12_s11, 4   ;;  %s4031_s10 = smov %s4033_s12 }
 0x364   :  { %11 = sbr.rel (!%p9_p5) target bundleno = 2 (0x2), region = 61 }

// kernel: vgg_block_forward.3
= control target key start
LH: loop header
LB: loop body
LE: loop exit
PB: predicated region body
PF: predicated region fallthrough
CT: control target
= control target key end

     0   :  { %s2306_s9 = smov 0   ;;  %s2308_s10 = smov 0   ;;  %s3838_s0 = inlined_call_operand.vmem [shape: f32[2,18,18,8], index: 0, kind: input, shape index: {}]   ;;  %s3839_s1 = inlined_call_operand.vmem [shape: f32[72,8], index: 1, kind: input, shape index: {}]   ;;  %s3840_s2 = inlined_call_operand.vmem [shape: f32[2,16,16,8], index: 2, kind: output, shape index: {}]  }
   0x1   :  { %s2310_s11 = smov 0  }
   0x2 LB: > { %s27_s12 = sadd.s32 1, %s2277_s10  ;;  %p2026_p0 = scmp.ge.s32.totalorder %s2281_s11, 1  ;;  %s2281_s11 = sphi %s2310_s11, %s12_s11   ;;  %s2277_s10 = sphi %s2308_s10, %s4043_s10   ;;  %s2273_s9 = sphi %s2306_s9, %s4042_s9  }
   0x3   : > { %p29_p1 = scmp.ge.s32.totalorder %s27_s12, 2  ;;  %p144_p2 = scmp.lt.s32.totalorder %s2281_s11, 3 }
   0x5   : > { %s4045_s12 = smov (%p29_p1, %s27_s12), 0  ;;  %p145_p3 = pnand %p2026_p0, %p144_p2 }
   0x7   : > { %148 = sbr.rel (%p145_p3) target bundleno = 865 (0x361), region = 28 }
   0xe   : > { %p178_p4 = scmp.lt.s32.totalorder %s2273_s9, 1  ;;  %s2283_s17 = smov 8   ;;  %vm1183_vm0 = vcmask 64512   ;;  %vm1216_vm1 = vcmask 130048   ;;  %vm1249_vm2 = vcmask 195584   ;;  %vm1282_vm3 = vcmask 261120  }
   0xf   : > { %s2284_s18 = smov 16   ;;  %s2285_s19 = smov 24   ;;  %vm1315_vm4 = vcmask 326656   ;;  %vm1348_vm5 = vcmask 392192   ;;  %vm1381_vm6 = vcmask 457728   ;;  %vm1414_vm7 = vcmask 523264  }
  0x10   : > { %s4047_s9 = smov (!%p178_p4, %s2273_s9), 1  ;;  %s2286_s20 = smov 32   ;;  %vm1456_vm8 = vcmask 588800  }
  0x11   : > { %s2198_s13 = smul.u32 432, %s4047_s9  ;;  %s2287_s21 = smov 40  }
  0x12   : > { %s2288_s30 = smov 48   ;;  %s2289_s7 = smov 56  }
  0x13   : > { %s2330_s16 = scalar_lea.vmem %s3838_s0, %s2198_s13 }
  0x14   : > { %v2333_v0 = vld [vmem:[%s2330_s16 + $0x19] sm:$0xff]  ;;  %v237_v1 = vld [vmem:[%s2330_s16 + $0x1] sm:$0xff]  ;;  %v238_v3 = vld [vmem:[%s2330_s16 + $0x9] sm:$0xff] }
  0x15   : > { %345 = vrot.lane.b32.xlu1 %v2333_v0, %s2283_s17  ;;  %341 = vrot.lane.b32.xlu0 %v237_v1, %s2283_s17  ;;  %v2340_v2 = vld [vmem:[%s2330_s16 + $0x21] sm:$0xff]  ;;  %v2347_v4 = vld [vmem:[%s2330_s16 + $0x39] sm:$0xff] }
  0x16   : > { %v2350_v5 = vld [vmem:[%s2330_s16 + $0x31] sm:$0xff]  ;;  %v2360_v7 = vld [vmem:[%s2330_s16 + $0x49] sm:$0xff]  ;;  %v2370_v9 = vld [vmem:[%s2330_s16 + $0x61] sm:$0xff] }
  0x17   : > { %v2357_v6 = vld [vmem:[%s2330_s16 + $0x51] sm:$0xff]  ;;  %v2367_v8 = vld [vmem:[%s2330_s16 + $0x69] sm:$0xff]  ;;  %3901 = vst [vmem:[#allocation3_spill] sm:$0xff] %v2370_v9  ;;  %v2377_v10 = vld [vmem:[%s2330_s16 + $0x81] sm:$0xff] }
  0x18   : > { %3900 = vst [vmem:[#allocation2_spill] sm:$0xff] %v2367_v8  ;;  %3902 = vst [vmem:[#allocation4_spill] sm:$0xff] %v2377_v10  ;;  %v2380_v11 = vld [vmem:[%s2330_s16 + $0x79] sm:$0xff]  ;;  %v249_v13 = vld [vmem:[%s2330_s16 + $0x91] sm:$0xff] }
  0x19   : > { %347 = vrot.lane.b32.xlu1 %v2340_v2, %s2283_s17  ;;  %343 = vrot.lane.b32.xlu0 %v238_v3, %s2283_s17  ;;  %3903 = vst [vmem:[#allocation5_spill] sm:$0xff] %v2380_v11  ;;  %v250_v12 = vld [vmem:[%s2330_s16 + $0x99] sm:$0xff]  ;;  %v252_v14 = vld [vmem:[%s2330_s16 + $0xb1] sm:$0xff] }
  0x1a   : > { %v251_v15 = vld [vmem:[%s2330_s16 + $0xa9] sm:$0xff]  ;;  %v253_v17 = vld [vmem:[%s2330_s16 + $0xc1] sm:$0xff]  ;;  %v2402_v19 = vld [vmem:[%s2330_s16 + $0xd9] sm:$0xff] }
  0x1b   : > { %v254_v16 = vld [vmem:[%s2330_s16 + $0xc9] sm:$0xff]  ;;  %v2399_v18 = vld [vmem:[%s2330_s16 + $0xe1] sm:$0xff]  ;;  %v2409_v20 = vld [vmem:[%s2330_s16 + $0xf9] sm:$0xff] }
  0x1c   : > { %v2412_v21 = vld [vmem:[%s2330_s16 + $0xf1] sm:$0xff]  ;;  %v2422_v23 = vld [vmem:[%s2330_s16 + $0x109] sm:$0xff]  ;;  %v2432_v25 = vld [vmem:[%s2330_s16 + $0x121] sm:$0xff] }
  0x1d   : > { %351 = vrot.lane.b32.xlu1 %v2347_v4, %s2283_s17  ;;  %349 = vrot.lane.b32.xlu0 %v2350_v5, %s2283_s17  ;;  %v2419_v22 = vld [vmem:[%s2330_s16 + $0x111] sm:$0xff]  ;;  %v2429_v24 = vld [vmem:[%s2330_s16 + $0x129] sm:$0xff]  ;;  %3905 = vst [vmem:[#allocation7_spill] sm:$0xff] %v2432_v25 }
  0x1e   : > { %3904 = vst [vmem:[#allocation6_spill] sm:$0xff] %v2429_v24  ;;  %v2439_v26 = vld [vmem:[%s2330_s16 + $0x141] sm:$0xff]  ;;  %v2442_v27 = vld [vmem:[%s2330_s16 + $0x139] sm:$0xff]  ;;  %v265_v29 = vld [vmem:[%s2330_s16 + $0x151] sm:$0xff] }
  0x1f   : > { %3906 = vst [vmem:[#allocation8_spill] sm:$0xff] %v2439_v26  ;;  %3907 = vst [vmem:[#allocation9_spill] sm:$0xff] %v2442_v27  ;;  %v266_v28 = vld [vmem:[%s2330_s16 + $0x159] sm:$0xff]  ;;  %v268_v30 = vld [vmem:[%s2330_s16 + $0x171] sm:$0xff] }
  0x20   : > { %v267_v31 = vld [vmem:[%s2330_s16 + $0x169] sm:$0xff]  ;;  %v2464_v35 = vld [vmem:[%s2330_s16 + $0x1a] sm:$0xff]  ;;  %v2474_v37 = vld [vmem:[%s2330_s16 + $0x32] sm:$0xff] }
  0x21   : > { %355 = vrot.lane.b32.xlu1 %v2357_v6, %s2283_s17  ;;  %353 = vrot.lane.b32.xlu0 %v2360_v7, %s2283_s17  ;;  %v274_v32 = vld [vmem:[%s2330_s16 + $0xa] sm:$0xff]  ;;  %v273_v33 = vld [vmem:[%s2330_s16 + $0x2] sm:$0xff] }
  0x22   : > { %v2461_v34 = vld [vmem:[%s2330_s16 + $0x22] sm:$0xff]  ;;  %v2471_v36 = vld [vmem:[%s2330_s16 + $0x3a] sm:$0xff]  ;;  %v2481_v38 = vld [vmem:[%s2330_s16 + $0x52] sm:$0xff] }
  0x23   : > { %3908 = vst [vmem:[#allocation10_spill] sm:$0xff] %v2481_v38  ;;  %v2484_v39 = vld [vmem:[%s2330_s16 + $0x4a] sm:$0xff]  ;;  %v2494_v41 = vld [vmem:[%s2330_s16 + $0x62] sm:$0xff]  ;;  %v2504_v43 = vld [vmem:[%s2330_s16 + $0x7a] sm:$0xff] }
  0x24   : > { %v2491_v40 = vld [vmem:[%s2330_s16 + $0x6a] sm:$0xff]  ;;  %3910 = vst [vmem:[#allocation12_spill] sm:$0xff] %v2494_v41  ;;  %v2501_v42 = vld [vmem:[%s2330_s16 + $0x82] sm:$0xff]  ;;  %3912 = vst [vmem:[#allocation14_spill] sm:$0xff] %v2504_v43 }
  0x25   : > { %359 = vrot.lane.b32.xlu1 %v2367_v8, %s2283_s17  ;;  %357 = vrot.lane.b32.xlu0 %v2370_v9, %s2283_s17  ;;  %3909 = vst [vmem:[#allocation11_spill] sm:$0xff] %v2491_v40  ;;  %3911 = vst [vmem:[#allocation13_spill] sm:$0xff] %v2501_v42  ;;  %v286_v44 = vld [vmem:[%s2330_s16 + $0x9a] sm:$0xff]  ;;  %v285_v45 = vld [vmem:[%s2330_s16 + $0x92] sm:$0xff] }
  0x26   : > { %v288_v46 = vld [vmem:[%s2330_s16 + $0xb2] sm:$0xff]  ;;  %v287_v47 = vld [vmem:[%s2330_s16 + $0xaa] sm:$0xff]  ;;  %v289_v49 = vld [vmem:[%s2330_s16 + $0xc2] sm:$0xff] }
  0x27   : > { %v290_v48 = vld [vmem:[%s2330_s16 + $0xca] sm:$0xff]  ;;  %v2523_v50 = vld [vmem:[%s2330_s16 + $0xe2] sm:$0xff]  ;;  %v2526_v51 = vld [vmem:[%s2330_s16 + $0xda] sm:$0xff] }
  0x28   : > { %v2533_v52 = vld [vmem:[%s2330_s16 + $0xfa] sm:$0xff]  ;;  %v2536_v53 = vld [vmem:[%s2330_s16 + $0xf2] sm:$0xff]  ;;  %v2546_v55 = vld [vmem:[%s2330_s16 + $0x10a] sm:$0xff] }
  0x29   : > { %363 = vrot.lane.b32.xlu1 %v2377_v10, %s2283_s17  ;;  %361 = vrot.lane.b32.xlu0 %v2380_v11, %s2283_s17  ;;  %v2543_v54 = vld [vmem:[%s2330_s16 + $0x112] sm:$0xff]  ;;  %v2553_v56 = vld [vmem:[%s2330_s16 + $0x12a] sm:$0xff] }
  0x2a   : > { %3913 = vst [vmem:[#allocation15_spill] sm:$0xff] %v2553_v56  ;;  %v2556_v57 = vld [vmem:[%s2330_s16 + $0x122] sm:$0xff]  ;;  %v2566_v59 = vld [vmem:[%s2330_s16 + $0x13a] sm:$0xff]  ;;  %v2578_v63 = vld [vmem:[%s2330_s16 + $0x152] sm:$0xff] }
  0x2b   : > { %3914 = vst [vmem:[#allocation16_spill] sm:$0xff] %v2556_v57  ;;  %v2563_v58 = vld [vmem:[%s2330_s16 + $0x142] sm:$0xff]  ;;  %3916 = vst [vmem:[#allocation18_spill] sm:$0xff] %v2566_v59  ;;  %v302_v62 = vld [vmem:[%s2330_s16 + $0x15a] sm:$0xff] }
  0x2c   : > { %3915 = vst [vmem:[#allocation17_spill] sm:$0xff] %v2563_v58  ;;  %3919 = vst [vmem:[#allocation21_spill] sm:$0xff] %v2578_v63  ;;  %v2712_v11 = vld [vmem:[%s2330_s16 + $0xe0] sm:$0xff]  ;;  %v2754_v9 = vld [vmem:[%s2330_s16 + $0x128] sm:$0xff] }
  0x2d   : > { %367 = vrot.lane.b32.xlu1 %v250_v12, %s2283_s17  ;;  %365 = vrot.lane.b32.xlu0 %v249_v13, %s2283_s17  ;;  %v304_v12 = vld [vmem:[%s2330_s16 + $0x172] sm:$0xff]  ;;  %v303_v13 = vld [vmem:[%s2330_s16 + $0x16a] sm:$0xff]  ;;  %3933 = vst [vmem:[#allocation35_spill] sm:$0xff] %v2712_v11  ;;  %3941 = vst [vmem:[#allocation43_spill] sm:$0xff] %v2754_v9 }
  0x31   : > { %371 = vrot.lane.b32.xlu1 %v252_v14, %s2283_s17  ;;  %369 = vrot.lane.b32.xlu0 %v251_v15, %s2283_s17 }
  0x35   : > { %375 = vrot.lane.b32.xlu1 %v254_v16, %s2283_s17  ;;  %373 = vrot.lane.b32.xlu0 %v253_v17, %s2283_s17 }
  0x39   : > { %379 = vrot.lane.b32.xlu1 %v2399_v18, %s2283_s17  ;;  %377 = vrot.lane.b32.xlu0 %v2402_v19, %s2283_s17 }
  0x3d   : > { %383 = vrot.lane.b32.xlu1 %v2409_v20, %s2283_s17  ;;  %381 = vrot.lane.b32.xlu0 %v2412_v21, %s2283_s17 }
  0x41   : > { %387 = vrot.lane.b32.xlu1 %v2419_v22, %s2283_s17  ;;  %385 = vrot.lane.b32.xlu0 %v2422_v23, %s2283_s17 }
  0x45   : > { %391 = vrot.lane.b32.xlu1 %v2429_v24, %s2283_s17  ;;  %389 = vrot.lane.b32.xlu0 %v2432_v25, %s2283_s17  ;;  %v2757_v25 = vld [vmem:[%s2330_s16 + $0x120] sm:$0xff] }
  0x46   : > { %3942 = vst [vmem:[#allocation44_spill] sm:$0xff] %v2757_v25 }
  0x49   : > { %395 = vrot.lane.b32.xlu1 %v2439_v26, %s2283_s17  ;;  %393 = vrot.lane.b32.xlu0 %v2442_v27, %s2283_s17  ;;  %v2715_v27 = vld [vmem:[%s2330_s16 + $0xd8] sm:$0xff] }
  0x4a   : > { %3934 = vst [vmem:[#allocation36_spill] sm:$0xff] %v2715_v27 }
  0x4d   : > { %399 = vrot.lane.b32.xlu1 %v266_v28, %s2283_s17  ;;  %397 = vrot.lane.b32.xlu0 %v265_v29, %s2283_s17  ;;  %v2600_v28 = vld [vmem:[%s2330_s16 + $0x18] sm:$0xff]  ;;  %v2603_v29 = vld [vmem:[%s2330_s16 + $0x20] sm:$0xff] }
  0x4e   : > { %3922 = vst [vmem:[#allocation24_spill] sm:$0xff] %v2600_v28  ;;  %3923 = vst [vmem:[#allocation25_spill] sm:$0xff] %v2603_v29 }
  0x51   : > { %403 = vrot.lane.b32.xlu1 %v268_v30, %s2283_s17  ;;  %401 = vrot.lane.b32.xlu0 %v267_v31, %s2283_s17 }
  0x55   : > { %471 = vrot.lane.b32.xlu1 %v274_v32, %s2284_s18  ;;  %469 = vrot.lane.b32.xlu0 %v273_v33, %s2284_s18  ;;  %v2614_v32 = vld [vmem:[%s2330_s16 + $0x38] sm:$0xff]  ;;  %v2617_v33 = vld [vmem:[%s2330_s16 + $0x30] sm:$0xff] }
  0x59   : > { %475 = vrot.lane.b32.xlu1 %v2461_v34, %s2284_s18  ;;  %473 = vrot.lane.b32.xlu0 %v2464_v35, %s2284_s18 }
  0x5d   : > { %479 = vrot.lane.b32.xlu1 %v2471_v36, %s2284_s18  ;;  %477 = vrot.lane.b32.xlu0 %v2474_v37, %s2284_s18 }
  0x61   : > { %483 = vrot.lane.b32.xlu1 %v2481_v38, %s2284_s18  ;;  %481 = vrot.lane.b32.xlu0 %v2484_v39, %s2284_s18 }
  0x65   : > { %487 = vrot.lane.b32.xlu1 %v2491_v40, %s2284_s18  ;;  %485 = vrot.lane.b32.xlu0 %v2494_v41, %s2284_s18  ;;  %v2726_v40 = vld [vmem:[%s2330_s16 + $0xf8] sm:$0xff]  ;;  %v2740_v41 = vld [vmem:[%s2330_s16 + $0x110] sm:$0xff] }
  0x69   : > { %491 = vrot.lane.b32.xlu1 %v2501_v42, %s2284_s18  ;;  %489 = vrot.lane.b32.xlu0 %v2504_v43, %s2284_s18  ;;  %v2670_v42 = vld [vmem:[%s2330_s16 + $0x98] sm:$0xff] }
  0x6d   : > { %495 = vrot.lane.b32.xlu1 %v286_v44, %s2284_s18  ;;  %493 = vrot.lane.b32.xlu0 %v285_v45, %s2284_s18 }
  0x71   : > { %499 = vrot.lane.b32.xlu1 %v288_v46, %s2284_s18  ;;  %497 = vrot.lane.b32.xlu0 %v287_v47, %s2284_s18  ;;  %v2628_v46 = vld [vmem:[%s2330_s16 + $0x50] sm:$0xff]  ;;  %v2631_v47 = vld [vmem:[%s2330_s16 + $0x48] sm:$0xff] }
  0x75   : > { %503 = vrot.lane.b32.xlu1 %v290_v48, %s2284_s18  ;;  %501 = vrot.lane.b32.xlu0 %v289_v49, %s2284_s18 }
  0x79   : > { %507 = vrot.lane.b32.xlu1 %v2523_v50, %s2284_s18  ;;  %505 = vrot.lane.b32.xlu0 %v2526_v51, %s2284_s18 }
  0x7d   : > { %511 = vrot.lane.b32.xlu1 %v2533_v52, %s2284_s18  ;;  %509 = vrot.lane.b32.xlu0 %v2536_v53, %s2284_s18 }
  0x81   : > { %515 = vrot.lane.b32.xlu1 %v2543_v54, %s2284_s18  ;;  %513 = vrot.lane.b32.xlu0 %v2546_v55, %s2284_s18 }
  0x85   : > { %519 = vrot.lane.b32.xlu1 %v2553_v56, %s2284_s18  ;;  %517 = vrot.lane.b32.xlu0 %v2556_v57, %s2284_s18  ;;  %v2729_v56 = vld [vmem:[%s2330_s16 + $0xf0] sm:$0xff]  ;;  %v2743_v57 = vld [vmem:[%s2330_s16 + $0x108] sm:$0xff] }
  0x87   : > { %v2568_v60 = vpop.permute.xlu1 %345  ;;  %v2570_v61 = vpop.permute.xlu0 %341 }
  0x88   : > { %3917 = vst [vmem:[#allocation19_spill] sm:$0xff] %v2568_v60  ;;  %3918 = vst [vmem:[#allocation20_spill] sm:$0xff] %v2570_v61 }
  0x89   : > { %523 = vrot.lane.b32.xlu1 %v2563_v58, %s2284_s18  ;;  %521 = vrot.lane.b32.xlu0 %v2566_v59, %s2284_s18  ;;  %v2673_v58 = vld [vmem:[%s2330_s16 + $0x90] sm:$0xff] }
  0x8a   : > { %v2684_v59 = vld [vmem:[%s2330_s16 + $0xb0] sm:$0xff] }
  0x8b   : > { %v2580_v1 = vpop.permute.xlu1 %347  ;;  %v2582_v3 = vpop.permute.xlu0 %343 }
  0x8c   : > { %3920 = vst [vmem:[#allocation22_spill] sm:$0xff] %v2580_v1  ;;  %3921 = vst [vmem:[#allocation23_spill] sm:$0xff] %v2582_v3  ;;  %v2659_v1 = vld [vmem:[%s2330_s16 + $0x78] sm:$0xff] }
  0x8d   : > { %527 = vrot.lane.b32.xlu1 %v302_v62, %s2284_s18  ;;  %525 = vrot.lane.b32.xlu0 %v2578_v63, %s2284_s18  ;;  %v2642_v62 = vld [vmem:[%s2330_s16 + $0x68] sm:$0xff] }
  0x8f   : > { %v2589_v14 = vpop.permute.xlu1 %351  ;;  %v2591_v15 = vpop.permute.xlu0 %349 }
  0x91   : > { %531 = vrot.lane.b32.xlu1 %v304_v12, %s2284_s18  ;;  %529 = vrot.lane.b32.xlu0 %v303_v13, %s2284_s18  ;;  %v2645_v12 = vld [vmem:[%s2330_s16 + $0x60] sm:$0xff] }
  0x93   : > { %v2595_v16 = vpop.permute.xlu1 %355  ;;  %v2597_v17 = vpop.permute.xlu0 %353 }
  0x95   : > { %599 = vrot.lane.b32.xlu1 %v2603_v29, %s2285_s19  ;;  %597 = vrot.lane.b32.xlu0 %v2600_v28, %s2285_s19  ;;  %v2656_v29 = vld [vmem:[%s2330_s16 + $0x80] sm:$0xff] }
  0x97   : > { %v2609_v30 = vpop.permute.xlu1 %359  ;;  %v2611_v31 = vpop.permute.xlu0 %357 }
  0x99   : > { %603 = vrot.lane.b32.xlu1 %v2614_v32, %s2285_s19  ;;  %601 = vrot.lane.b32.xlu0 %v2617_v33, %s2285_s19 }
  0x9b   : > { %v2623_v44 = vpop.permute.xlu1 %363  ;;  %v2625_v45 = vpop.permute.xlu0 %361 }
  0x9d   : > { %607 = vrot.lane.b32.xlu1 %v2628_v46, %s2285_s19  ;;  %605 = vrot.lane.b32.xlu0 %v2631_v47, %s2285_s19 }
  0x9f   : > { %v2637_v48 = vpop.permute.xlu1 %367  ;;  %v2639_v49 = vpop.permute.xlu0 %365 }
  0xa1   : > { %611 = vrot.lane.b32.xlu1 %v2642_v62, %s2285_s19  ;;  %609 = vrot.lane.b32.xlu0 %v2645_v12, %s2285_s19 }
  0xa3   : > { %v2651_v13 = vpop.permute.xlu1 %371  ;;  %v2653_v63 = vpop.permute.xlu0 %369 }
  0xa5   : > { %615 = vrot.lane.b32.xlu1 %v2656_v29, %s2285_s19  ;;  %613 = vrot.lane.b32.xlu0 %v2659_v1, %s2285_s19 }
  0xa7   : > { %v2665_v28 = vpop.permute.xlu1 %375  ;;  %v2667_v60 = vpop.permute.xlu0 %373 }
  0xa8   : > { %3924 = vst [vmem:[#allocation26_spill] sm:$0xff] %v2665_v28  ;;  %3925 = vst [vmem:[#allocation27_spill] sm:$0xff] %v2667_v60  ;;  %v2687_v28 = vld [vmem:[%s2330_s16 + $0xa8] sm:$0xff] }
  0xa9   : > { %619 = vrot.lane.b32.xlu1 %v2670_v42, %s2285_s19  ;;  %617 = vrot.lane.b32.xlu0 %v2673_v58, %s2285_s19  ;;  %v2698_v60 = vld [vmem:[%s2330_s16 + $0xc8] sm:$0xff] }
  0xaa   : > { %3929 = vst [vmem:[#allocation31_spill] sm:$0xff] %v2698_v60 }
  0xab   : > { %v2679_v3 = vpop.permute.xlu1 %379  ;;  %v2681_v43 = vpop.permute.xlu0 %377 }
  0xac   : > { %3926 = vst [vmem:[#allocation28_spill] sm:$0xff] %v2679_v3  ;;  %3927 = vst [vmem:[#allocation29_spill] sm:$0xff] %v2681_v43  ;;  %v2701_v3 = vld [vmem:[%s2330_s16 + $0xc0] sm:$0xff] }
  0xad   : > { %623 = vrot.lane.b32.xlu1 %v2684_v59, %s2285_s19  ;;  %621 = vrot.lane.b32.xlu0 %v2687_v28, %s2285_s19  ;;  %3930 = vst [vmem:[#allocation32_spill] sm:$0xff] %v2701_v3 }
  0xaf   : > { %v2693_v10 = vpop.permute.xlu1 %383  ;;  %v2695_v26 = vpop.permute.xlu0 %381 }
  0xb0   : > { %3928 = vst [vmem:[#allocation30_spill] sm:$0xff] %v2693_v10 }
  0xb1   : > { %627 = vrot.lane.b32.xlu1 %v2698_v60, %s2285_s19  ;;  %625 = vrot.lane.b32.xlu0 %v2701_v3, %s2285_s19 }
  0xb3   : > { %v2707_v43 = vpop.permute.xlu1 %387  ;;  %v2709_v61 = vpop.permute.xlu0 %385 }
  0xb4   : > { %3931 = vst [vmem:[#allocation33_spill] sm:$0xff] %v2707_v43  ;;  %3932 = vst [vmem:[#allocation34_spill] sm:$0xff] %v2709_v61 }
  0xb5   : > { %631 = vrot.lane.b32.xlu1 %v2712_v11, %s2285_s19  ;;  %629 = vrot.lane.b32.xlu0 %v2715_v27, %s2285_s19 }
  0xb7   : > { %v2721_v60 = vpop.permute.xlu1 %391  ;;  %v2723_v3 = vpop.permute.xlu0 %389 }
  0xb8   : > { %3935 = vst [vmem:[#allocation37_spill] sm:$0xff] %v2721_v60  ;;  %3936 = vst [vmem:[#allocation38_spill] sm:$0xff] %v2723_v3  ;;  %v2768_v3 = vld [vmem:[%s2330_s16 + $0x140] sm:$0xff]  ;;  %v2782_v60 = vld [vmem:[%s2330_s16 + $0x158] sm:$0xff] }
  0xb9   : > { %635 = vrot.lane.b32.xlu1 %v2726_v40, %s2285_s19  ;;  %633 = vrot.lane.b32.xlu0 %v2729_v56, %s2285_s19  ;;  %3945 = vst [vmem:[#allocation47_spill] sm:$0xff] %v2768_v3  ;;  %3949 = vst [vmem:[#allocation51_spill] sm:$0xff] %v2782_v60 }
  0xbb   : > { %v2735_v11 = vpop.permute.xlu1 %395  ;;  %v2737_v27 = vpop.permute.xlu0 %393 }
  0xbc   : > { %3937 = vst [vmem:[#allocation39_spill] sm:$0xff] %v2735_v11  ;;  %3938 = vst [vmem:[#allocation40_spill] sm:$0xff] %v2737_v27 }
  0xbd   : > { %639 = vrot.lane.b32.xlu1 %v2740_v41, %s2285_s19  ;;  %637 = vrot.lane.b32.xlu0 %v2743_v57, %s2285_s19 }
  0xbf   : > { %v2749_v8 = vpop.permute.xlu1 %399  ;;  %v2751_v24 = vpop.permute.xlu0 %397 }
  0xc0   : > { %3939 = vst [vmem:[#allocation41_spill] sm:$0xff] %v2749_v8  ;;  %3940 = vst [vmem:[#allocation42_spill] sm:$0xff] %v2751_v24  ;;  %v2771_v24 = vld [vmem:[%s2330_s16 + $0x138] sm:$0xff] }
  0xc1   : > { %643 = vrot.lane.b32.xlu1 %v2754_v9, %s2285_s19  ;;  %641 = vrot.lane.b32.xlu0 %v2757_v25, %s2285_s19  ;;  %3946 = vst [vmem:[#allocation48_spill] sm:$0xff] %v2771_v24  ;;  %v2796_v25 = vld [vmem:[%s2330_s16 + $0x170] sm:$0xff] }
  0xc2   : > { %3953 = vst [vmem:[#allocation55_spill] sm:$0xff] %v2796_v25 }
  0xc3   : > { %v2763_v27 = vpop.permute.xlu1 %403  ;;  %v2765_v11 = vpop.permute.xlu0 %401 }
  0xc4   : > { %3943 = vst [vmem:[#allocation45_spill] sm:$0xff] %v2763_v27  ;;  %3944 = vst [vmem:[#allocation46_spill] sm:$0xff] %v2765_v11  ;;  %v2785_v27 = vld [vmem:[%s2330_s16 + $0x150] sm:$0xff] }
  0xc5   : > { %647 = vrot.lane.b32.xlu1 %v2768_v3, %s2285_s19  ;;  %645 = vrot.lane.b32.xlu0 %v2771_v24, %s2285_s19  ;;  %3950 = vst [vmem:[#allocation52_spill] sm:$0xff] %v2785_v27  ;;  %v2799_v24 = vld [vmem:[%s2330_s16 + $0x168] sm:$0xff] }
  0xc6   : > { %3954 = vst [vmem:[#allocation56_spill] sm:$0xff] %v2799_v24 }
  0xc7   : > { %v2777_v8 = vpop.permute.xlu1 %471  ;;  %v2779_v9 = vpop.permute.xlu0 %469 }
  0xc8   : > { %3947 = vst [vmem:[#allocation49_spill] sm:$0xff] %v2777_v8  ;;  %3948 = vst [vmem:[#allocation50_spill] sm:$0xff] %v2779_v9  ;;  %v2806_v8 = vld [vmem:[%s2330_s16 + $0x188] sm:$0xff]  ;;  %v2809_v9 = vld [vmem:[%s2330_s16 + $0x180] sm:$0xff] }
  0xc9   : > { %651 = vrot.lane.b32.xlu1 %v2782_v60, %s2285_s19  ;;  %649 = vrot.lane.b32.xlu0 %v2785_v27, %s2285_s19  ;;  %3955 = vst [vmem:[#allocation57_spill] sm:$0xff] %v2806_v8  ;;  %3956 = vst [vmem:[#allocation58_spill] sm:$0xff] %v2809_v9 }
  0xcb   : > { %v2791_v11 = vpop.permute.xlu1 %475  ;;  %v2793_v3 = vpop.permute.xlu0 %473 }
  0xcc   : > { %3951 = vst [vmem:[#allocation53_spill] sm:$0xff] %v2791_v11  ;;  %3952 = vst [vmem:[#allocation54_spill] sm:$0xff] %v2793_v3 }
  0xcd   : > { %655 = vrot.lane.b32.xlu1 %v2796_v25, %s2285_s19  ;;  %653 = vrot.lane.b32.xlu0 %v2799_v24, %s2285_s19 }
  0xcf   : > { %v2811_v60 = vpop.permute.xlu1 %479  ;;  %v2813_v27 = vpop.permute.xlu0 %477 }
  0xd1   : > { %659 = vrot.lane.b32.xlu1 %v2806_v8, %s2285_s19  ;;  %657 = vrot.lane.b32.xlu0 %v2809_v9, %s2285_s19  ;;  %s2290_s19 = smov 64  }
  0xd3   : > { %v2819_v11 = vpop.permute.xlu1 %483  ;;  %v2821_v3 = vpop.permute.xlu0 %481 }
  0xd5   : > { %697 = vrot.lane.b32.xlu1 %v2340_v2, %s2286_s20  ;;  %695 = vrot.lane.b32.xlu0 %v2333_v0, %s2286_s20 }
  0xd7   : > { %v2827_v24 = vpop.permute.xlu1 %487  ;;  %v2829_v25 = vpop.permute.xlu0 %485 }
  0xd9   : > { %701 = vrot.lane.b32.xlu1 %v2347_v4, %s2286_s20  ;;  %699 = vrot.lane.b32.xlu0 %v2350_v5, %s2286_s20 }
  0xdb   : > { %v2835_v8 = vpop.permute.xlu1 %491  ;;  %v2837_v9 = vpop.permute.xlu0 %489 }
  0xdd   : > { %705 = vrot.lane.b32.xlu1 %v2357_v6, %s2286_s20  ;;  %703 = vrot.lane.b32.xlu0 %v2360_v7, %s2286_s20 }
  0xdf   : > { %v2843_v0 = vpop.permute.xlu1 %495  ;;  %v2845_v2 = vpop.permute.xlu0 %493 }
  0xe1   : > { %729 = vrot.lane.b32.xlu1 %v2399_v18, %s2286_s20  ;;  %727 = vrot.lane.b32.xlu0 %v2402_v19, %s2286_s20  ;;  %v1447_v18 = vld [vmem:[%s3839_s1] sm:$0xff]  ;;  %v1448_v19 = vld [vmem:[%s3839_s1 + $0x8] sm:$0xff] }
  0xe3   : > { %v2851_v61 = vpop.permute.xlu1 %499  ;;  %v2853_v43 = vpop.permute.xlu0 %497 }
  0xe5   : > { %825 = vrot.lane.b32.xlu1 %v2526_v51, %s2287_s21  ;;  %793 = vrot.lane.b32.xlu0 %v2464_v35, %s2287_s21  ;;  %v2172_v51 = vpack.c.bf16 %v1448_v19, %v1447_v18  ;;  %v1204_v18 = vsel %vm1183_vm0, %v2729_v56, %v2695_v26  ;;  %v1451_v26 = vld [vmem:[%s3839_s1 + $0x20] sm:$0xff] }
  0xe7   : > { %v2859_v10 = vpop.permute.xlu1 %503  ;;  %v2861_v38 = vpop.permute.xlu0 %501  ;;  %2173 = vmatprep.subr.bf16.mxu0 %v2172_v51  ;;  %2188 = vmatprep.subr.bf16.mxu1 %v2172_v51 }
  0xe8   : > { %3957 = vst [vmem:[#allocation59_spill] sm:$0xff] %v2859_v10  ;;  %3958 = vst [vmem:[#allocation60_spill] sm:$0xff] %v2861_v38  ;;  %2175 = vmatpush3.bf16.msra.mxu0 %v2172_v51  ;;  %2193 = vmatpush3.bf16.msra.mxu1 %v2172_v51  ;;  %v1449_v38 = vld [vmem:[%s3839_s1 + $0x10] sm:$0xff] }
  0xe9   : > { %827 = vrot.lane.b32.xlu1 %v2523_v50, %s2287_s21  ;;  %795 = vrot.lane.b32.xlu0 %v2461_v34, %s2287_s21  ;;  %v1450_v50 = vld [vmem:[%s3839_s1 + $0x18] sm:$0xff] }
  0xea   : > { %v2176_v34 = vpack.c.bf16 %v1450_v50, %v1449_v38  ;;  %v1452_v38 = vld [vmem:[%s3839_s1 + $0x28] sm:$0xff] }
  0xeb   : > { %v2873_v35 = vpop.permute.xlu1 %507  ;;  %v2875_v10 = vpop.permute.xlu0 %505 }
  0xec   : > { %3959 = vst [vmem:[#allocation61_spill] sm:$0xff] %v2873_v35  ;;  %3960 = vst [vmem:[#allocation62_spill] sm:$0xff] %v2875_v10  ;;  %2177 = vmatprep.subr.bf16.mxu0 %v2176_v34  ;;  %2189 = vmatprep.subr.bf16.mxu1 %v2176_v34 }
  0xed   : > { %923 = vrot.lane.b32.xlu1 %v2729_v56, %s2288_s30  ;;  %891 = vrot.lane.b32.xlu0 %v2617_v33, %s2288_s30  ;;  %v2180_v56 = vpack.c.bf16 %v1452_v38, %v1451_v26 }
  0xee   : > { %2179 = vmatpush3.bf16.msra.mxu0 %v2176_v34  ;;  %2194 = vmatpush3.bf16.msra.mxu1 %v2176_v34  ;;  %v1453_v34 = vld [vmem:[%s3839_s1 + $0x30] sm:$0xff] }
  0xef   : > { %v2890_v19 = vpop.permute.xlu1 %511  ;;  %v510_v51 = vpop.permute.xlu0 %509  ;;  %2181 = vmatprep.subr.bf16.mxu0 %v2180_v56  ;;  %2190 = vmatprep.subr.bf16.mxu1 %v2180_v56 }
  0xf0   : > { %v2893_v35 = vsel %vm1216_vm1, %v1204_v18, %v510_v51  ;;  %v1454_v51 = vld [vmem:[%s3839_s1 + $0x38] sm:$0xff] }
  0xf1   : > { %925 = vrot.lane.b32.xlu1 %v2726_v40, %s2288_s30  ;;  %893 = vrot.lane.b32.xlu0 %v2614_v32, %s2288_s30  ;;  %v2184_v26 = vpack.c.bf16 %v1454_v51, %v1453_v34 }
  0xf2   : > { %2183 = vmatpush3.bf16.msra.mxu0 %v2180_v56  ;;  %2195 = vmatpush3.bf16.msra.mxu1 %v2180_v56 }
  0xf3   : > { %v2905_v50 = vpop.permute.xlu1 %515  ;;  %v2907_v18 = vpop.permute.xlu0 %513  ;;  %2185 = vmatprep.subr.bf16.mxu0 %v2184_v26  ;;  %2191 = vmatprep.subr.bf16.mxu1 %v2184_v26 }
  0xf5   : > { %1021 = vrot.lane.b32.xlu1 %v2412_v21, %s2289_s7  ;;  %989 = vrot.lane.b32.xlu0 %v2350_v5, %s2289_s7  ;;  %v1455_v5 = vld [vmem:[%s3839_s1 + $0x40] sm:$0xff] }
  0xf6   : > { %2187 = vmatpush3.bf16.msra.mxu0 %v2184_v26  ;;  %2196 = vmatpush3.bf16.msra.mxu1 %v2184_v26 }
  0xf7   : > { %v2919_v38 = vpop.permute.xlu1 %519  ;;  %v2921_v10 = vpop.permute.xlu0 %517  ;;  %2122 = vmatprep.subr.mxu0 %v1455_v5  ;;  %2192 = vmatprep.subr.mxu1 %v1455_v5 }
  0xf9   : > { %991 = vrot.lane.b32.xlu1 %v2347_v4, %s2289_s7  ;;  %731 = vrot.lane.b32.xlu0 %v2412_v21, %s2286_s20 }
  0xfa   : > { %2123 = vmatpush3.msra.mxu0 %v1455_v5  ;;  %2197 = vmatpush3.msra.mxu1 %v1455_v5 }
  0xfb   : > { %v2930_v56 = vpop.permute.xlu1 %523  ;;  %v2932_v34 = vpop.permute.xlu0 %521 }
  0xfd   : > { %1087 = vrot.lane.b32.xlu1 %v2474_v37, %s2290_s19  ;;  %1023 = vrot.lane.b32.xlu0 %v2409_v20, %s2289_s7 }
  0xff   : > { %v2938_v4 = vpop.permute.xlu1 %527  ;;  %v2940_v21 = vpop.permute.xlu0 %525 }
 0x100   : > { %3961 = vst [vmem:[#allocation63_spill] sm:$0xff] %v2938_v4 }
 0x101   : > { %733 = vrot.lane.b32.xlu1 %v2409_v20, %s2286_s20  ;;  %1119 = vrot.lane.b32.xlu0 %v2536_v53, %s2290_s19 }
 0x103   : > { %v2946_v51 = vpop.permute.xlu1 %531  ;;  %v2948_v26 = vpop.permute.xlu0 %529 }
 0x104   : > { %3962 = vst [vmem:[#allocation64_spill] sm:$0xff] %v2946_v51 }
 0x105   : > { %829 = vrot.lane.b32.xlu1 %v2536_v53, %s2287_s21  ;;  %797 = vrot.lane.b32.xlu0 %v2474_v37, %s2287_s21  ;;  %v1189_v37 = vsel %vm1183_vm0, %v2614_v32, %v2589_v14  ;;  %v1188_v53 = vsel %vm1183_vm0, %v2617_v33, %v2591_v15 }
 0x107   : > { %v2954_v5 = vpop.permute.xlu1 %599  ;;  %v2956_v4 = vpop.permute.xlu0 %597 }
 0x108   : > { %3963 = vst [vmem:[#allocation65_spill] sm:$0xff] %v2954_v5  ;;  %3964 = vst [vmem:[#allocation66_spill] sm:$0xff] %v2956_v4  ;;  %v1222_v5 = vsel %vm1216_vm1, %v1189_v37, %v2811_v60  ;;  %v1191_v60 = vsel %vm1183_vm0, %v2628_v46, %v2595_v16 }
 0x109   : > { %1121 = vrot.lane.b32.xlu1 %v2533_v52, %s2290_s19  ;;  %1089 = vrot.lane.b32.xlu0 %v2471_v36, %s2290_s19  ;;  %v1224_v14 = vsel %vm1216_vm1, %v1191_v60, %v2819_v11  ;;  %v1193_v11 = vsel %vm1183_vm0, %v2642_v62, %v2609_v30 }
 0x10a   : > { %v1226_v16 = vsel %vm1216_vm1, %v1193_v11, %v2827_v24  ;;  %v1195_v24 = vsel %vm1183_vm0, %v2656_v29, %v2623_v44 }
 0x10b   : > { %v2962_v20 = vpop.permute.xlu1 %603  ;;  %v2964_v51 = vpop.permute.xlu0 %601  ;;  %v1228_v30 = vsel %vm1216_vm1, %v1195_v24, %v2835_v8  ;;  %v1197_v8 = vsel %vm1183_vm0, %v2670_v42, %v2637_v48  ;;  %v1199_v48 = vsel %vm1183_vm0, %v2684_v59, %v2651_v13  ;;  %v3971_v24 = vld [vmem:[#allocation33_spill] sm:$0xff] }
 0x10c   : > { %3965 = vst [vmem:[#allocation67_spill] sm:$0xff] %v2962_v20  ;;  %3966 = vst [vmem:[#allocation68_spill] sm:$0xff] %v2964_v51  ;;  %v1221_v20 = vsel %vm1216_vm1, %v1188_v53, %v2813_v27  ;;  %v1190_v27 = vsel %vm1183_vm0, %v2631_v47, %v2597_v17  ;;  %v1230_v44 = vsel %vm1216_vm1, %v1197_v8, %v2843_v0  ;;  %v3975_v8 = vld [vmem:[#allocation43_spill] sm:$0xff] }
 0x10d   : > { %831 = vrot.lane.b32.xlu1 %v2533_v52, %s2287_s21  ;;  %799 = vrot.lane.b32.xlu0 %v2471_v36, %s2287_s21  ;;  %v1223_v15 = vsel %vm1216_vm1, %v1190_v27, %v2821_v3  ;;  %v1192_v3 = vsel %vm1183_vm0, %v2645_v12, %v2611_v31  ;;  %v1232_v0 = vsel %vm1216_vm1, %v1199_v48, %v2851_v61 }
 0x10e   : > { %v1225_v17 = vsel %vm1216_vm1, %v1192_v3, %v2829_v25  ;;  %v1194_v25 = vsel %vm1183_vm0, %v2659_v1, %v2625_v45  ;;  %v3970_v3 = vld [vmem:[#allocation30_spill] sm:$0xff] }
 0x10f   : > { %v608_v51 = vpop.permute.xlu1 %607  ;;  %v606_v52 = vpop.permute.xlu0 %605  ;;  %v1227_v31 = vsel %vm1216_vm1, %v1194_v25, %v2837_v9  ;;  %v1196_v9 = vsel %vm1183_vm0, %v2673_v58, %v2639_v49  ;;  %v1198_v49 = vsel %vm1183_vm0, %v2687_v28, %v2653_v63 }
 0x110   : > { %v2981_v4 = vsel %vm1249_vm2, %v1222_v5, %v608_v51  ;;  %v2984_v36 = vsel %vm1249_vm2, %v1221_v20, %v606_v52  ;;  %v1229_v45 = vsel %vm1216_vm1, %v1196_v9, %v2845_v2  ;;  %v1231_v2 = vsel %vm1216_vm1, %v1198_v49, %v2853_v43  ;;  %v3976_v9 = vld [vmem:[#allocation38_spill] sm:$0xff]  ;;  %v3977_v49 = vld [vmem:[#allocation39_spill] sm:$0xff] }
 0x111   : > { %927 = vrot.lane.b32.xlu1 %v2743_v57, %s2288_s30  ;;  %895 = vrot.lane.b32.xlu0 %v2631_v47, %s2288_s30 }
 0x113   : > { %v612_v32 = vpop.permute.xlu1 %611  ;;  %v610_v33 = vpop.permute.xlu0 %609 }
 0x114   : > { %v3001_v51 = vsel %vm1249_vm2, %v1224_v14, %v612_v32  ;;  %v3004_v5 = vsel %vm1249_vm2, %v1223_v15, %v610_v33 }
 0x115   : > { %929 = vrot.lane.b32.xlu1 %v2740_v41, %s2288_s30  ;;  %897 = vrot.lane.b32.xlu0 %v2628_v46, %s2288_s30 }
 0x117   : > { %v616_v47 = vpop.permute.xlu1 %615  ;;  %v614_v20 = vpop.permute.xlu0 %613 }
 0x118   : > { %v3021_v37 = vsel %vm1249_vm2, %v1226_v16, %v616_v47  ;;  %v3024_v46 = vsel %vm1249_vm2, %v1225_v17, %v614_v20  ;;  %v1205_v16 = vsel %vm1183_vm0, %v2726_v40, %v3970_v3  ;;  %v1207_v40 = vsel %vm1183_vm0, %v2740_v41, %v3971_v24  ;;  %v3973_v41 = vld [vmem:[#allocation44_spill] sm:$0xff]  ;;  %v3983_v24 = vld [vmem:[#allocation41_spill] sm:$0xff] }
 0x119   : > { %1025 = vrot.lane.b32.xlu1 %v2422_v23, %s2289_s7  ;;  %993 = vrot.lane.b32.xlu0 %v2360_v7, %s2289_s7 }
 0x11b   : > { %v620_v53 = vpop.permute.xlu1 %619  ;;  %v618_v52 = vpop.permute.xlu0 %617 }
 0x11c   : > { %v3041_v60 = vsel %vm1249_vm2, %v1228_v30, %v620_v53  ;;  %v3044_v7 = vsel %vm1249_vm2, %v1227_v31, %v618_v52  ;;  %v1240_v30 = vsel %vm1216_vm1, %v1207_v40, %v2905_v50  ;;  %v3984_v40 = vld [vmem:[#allocation51_spill] sm:$0xff] }
 0x11d   : > { %995 = vrot.lane.b32.xlu1 %v2357_v6, %s2289_s7  ;;  %735 = vrot.lane.b32.xlu0 %v2422_v23, %s2286_s20 }
 0x11f   : > { %v624_v27 = vpop.permute.xlu1 %623  ;;  %v622_v14 = vpop.permute.xlu0 %621 }
 0x120   : > { %v3061_v6 = vsel %vm1249_vm2, %v1230_v44, %v624_v27  ;;  %v3064_v23 = vsel %vm1249_vm2, %v1229_v45, %v622_v14 }
 0x121   : > { %1091 = vrot.lane.b32.xlu1 %v2484_v39, %s2290_s19  ;;  %1027 = vrot.lane.b32.xlu0 %v2419_v22, %s2289_s7 }
 0x123   : > { %v628_v15 = vpop.permute.xlu1 %627  ;;  %v626_v32 = vpop.permute.xlu0 %625 }
 0x124   : > { %v3081_v33 = vsel %vm1249_vm2, %v1232_v0, %v628_v15  ;;  %v3084_v11 = vsel %vm1249_vm2, %v1231_v2, %v626_v32  ;;  %v3978_v0 = vld [vmem:[#allocation47_spill] sm:$0xff]  ;;  %v3979_v2 = vld [vmem:[#allocation40_spill] sm:$0xff] }
 0x125   : > { %3967 = vst [vmem:[#allocation69_spill] sm:$0xff] %v3081_v33  ;;  %3968 = vst [vmem:[#allocation70_spill] sm:$0xff] %v3084_v11  ;;  %737 = vrot.lane.b32.xlu1 %v2419_v22, %s2286_s20  ;;  %1123 = vrot.lane.b32.xlu0 %v2546_v55, %s2290_s19  ;;  %v3969_v22 = vld [vmem:[#allocation10_spill] sm:$0xff]  ;;  %v4008_v11 = vld [vmem:[#allocation8_spill] sm:$0xff] }
 0x127   : > { %v3090_v63 = vpop.permute.xlu1 %631  ;;  %v3092_v61 = vpop.permute.xlu0 %629 }
 0x129   : > { %833 = vrot.lane.b32.xlu1 %v2546_v55, %s2287_s21  ;;  %801 = vrot.lane.b32.xlu0 %v2484_v39, %s2287_s21  ;;  %v1238_v55 = vsel %vm1216_vm1, %v1205_v16, %v2890_v19  ;;  %v3972_v19 = vld [vmem:[#allocation34_spill] sm:$0xff] }
 0x12a   : > { %v1206_v25 = vsel %vm1183_vm0, %v2743_v57, %v3972_v19  ;;  %v3974_v57 = vld [vmem:[#allocation37_spill] sm:$0xff]  ;;  %v3985_v19 = vld [vmem:[#allocation42_spill] sm:$0xff] }
 0x12b   : > { %v3098_v43 = vpop.permute.xlu1 %635  ;;  %v3100_v13 = vpop.permute.xlu0 %633  ;;  %v1209_v50 = vsel %vm1183_vm0, %v3975_v8, %v3974_v57 }
 0x12c   : > { %v1242_v44 = vsel %vm1216_vm1, %v1209_v50, %v2919_v38  ;;  %v1211_v38 = vsel %vm1183_vm0, %v3978_v0, %v3977_v49  ;;  %v3988_v50 = vld [vmem:[#allocation45_spill] sm:$0xff] }
 0x12d   : > { %1125 = vrot.lane.b32.xlu1 %v2543_v54, %s2290_s19  ;;  %1093 = vrot.lane.b32.xlu0 %v3969_v22, %s2290_s19  ;;  %v1244_v32 = vsel %vm1216_vm1, %v1211_v38, %v2930_v56  ;;  %v1213_v56 = vsel %vm1183_vm0, %v3984_v40, %v3983_v24 }
 0x12f   : > { %v640_v17 = vpop.permute.xlu1 %639  ;;  %v638_v47 = vpop.permute.xlu0 %637 }
 0x130   : > { %v3112_v39 = vsel %vm1249_vm2, %v1238_v55, %v640_v17  ;;  %v3116_v20 = vsel %vm1249_vm2, %v2893_v35, %v638_v47  ;;  %v1239_v35 = vsel %vm1216_vm1, %v1206_v25, %v2907_v18  ;;  %v1208_v18 = vsel %vm1183_vm0, %v3973_v41, %v3976_v9  ;;  %v3981_v17 = vld [vmem:[#allocation7_spill] sm:$0xff] }
 0x131   : > { %835 = vrot.lane.b32.xlu1 %v2543_v54, %s2287_s21  ;;  %803 = vrot.lane.b32.xlu0 %v3969_v22, %s2287_s21  ;;  %v1241_v45 = vsel %vm1216_vm1, %v1208_v18, %v2921_v10  ;;  %v3980_v10 = vld [vmem:[#allocation48_spill] sm:$0xff]  ;;  %v3982_v47 = vld [vmem:[#allocation3_spill] sm:$0xff] }
 0x132   : > { %v1210_v15 = vsel %vm1183_vm0, %v3980_v10, %v3979_v2  ;;  %v3989_v9 = vld [vmem:[#allocation55_spill] sm:$0xff] }
 0x133   : > { %v644_v31 = vpop.permute.xlu1 %643  ;;  %v642_v53 = vpop.permute.xlu0 %641  ;;  %v1243_v22 = vsel %vm1216_vm1, %v1210_v15, %v2932_v34  ;;  %v3986_v34 = vld [vmem:[#allocation52_spill] sm:$0xff]  ;;  %v1215_v18 = vsel %vm1183_vm0, %v3989_v9, %v3988_v50 }
 0x134   : > { %v3133_v54 = vsel %vm1249_vm2, %v1240_v30, %v644_v31  ;;  %v3136_v52 = vsel %vm1249_vm2, %v1239_v35, %v642_v53  ;;  %v1212_v25 = vsel %vm1183_vm0, %v3986_v34, %v3985_v19  ;;  %v3987_v30 = vld [vmem:[#allocation63_spill] sm:$0xff] }
 0x135   : > { %931 = vrot.lane.b32.xlu1 %v3973_v41, %s2288_s30  ;;  %899 = vrot.lane.b32.xlu0 %v2645_v12, %s2288_s30  ;;  %v1246_v35 = vsel %vm1216_vm1, %v1213_v56, %v3987_v30  ;;  %v1245_v31 = vsel %vm1216_vm1, %v1212_v25, %v2940_v21  ;;  %v3991_v21 = vld [vmem:[#allocation56_spill] sm:$0xff] }
 0x137   : > { %v648_v27 = vpop.permute.xlu1 %647  ;;  %v646_v14 = vpop.permute.xlu0 %645 }
 0x138   : > { %v3153_v48 = vsel %vm1249_vm2, %v1242_v44, %v648_v27  ;;  %v3156_v12 = vsel %vm1249_vm2, %v1241_v45, %v646_v14  ;;  %v3990_v44 = vld [vmem:[#allocation46_spill] sm:$0xff]  ;;  %v3992_v27 = vld [vmem:[#allocation64_spill] sm:$0xff] }
 0x139   : > { %933 = vrot.lane.b32.xlu1 %v3975_v8, %s2288_s30  ;;  %901 = vrot.lane.b32.xlu0 %v2642_v62, %s2288_s30  ;;  %v1214_v45 = vsel %vm1183_vm0, %v3991_v21, %v3990_v44  ;;  %v1248_v14 = vsel %vm1216_vm1, %v1215_v18, %v3992_v27 }
 0x13a   : > { %v1247_v49 = vsel %vm1216_vm1, %v1214_v45, %v2948_v26  ;;  %v3998_v26 = vld [vmem:[#allocation12_spill] sm:$0xff] }
 0x13b   : > { %v652_v3 = vpop.permute.xlu1 %651  ;;  %v650_v16 = vpop.permute.xlu0 %649 }
 0x13c   : > { %v3173_v55 = vsel %vm1249_vm2, %v1244_v32, %v652_v3  ;;  %v3176_v62 = vsel %vm1249_vm2, %v1243_v22, %v650_v16  ;;  %v3995_v22 = vld [vmem:[#allocation6_spill] sm:$0xff] }
 0x13d   : > { %1029 = vrot.lane.b32.xlu1 %v3981_v17, %s2289_s7  ;;  %997 = vrot.lane.b32.xlu0 %v3982_v47, %s2289_s7  ;;  %v3996_v3 = vld [vmem:[#allocation2_spill] sm:$0xff] }
 0x13f   : > { %v656_v53 = vpop.permute.xlu1 %655  ;;  %v654_v41 = vpop.permute.xlu0 %653 }
 0x140   : > { %v3193_v57 = vsel %vm1249_vm2, %v1246_v35, %v656_v53  ;;  %v3196_v8 = vsel %vm1249_vm2, %v1245_v31, %v654_v41  ;;  %v3999_v31 = vld [vmem:[#allocation15_spill] sm:$0xff] }
 0x141   : > { %739 = vrot.lane.b32.xlu1 %v3981_v17, %s2286_s20  ;;  %707 = vrot.lane.b32.xlu0 %v3982_v47, %s2286_s20  ;;  %v3997_v47 = vld [vmem:[#allocation16_spill] sm:$0xff]  ;;  %v4000_v53 = vld [vmem:[#allocation11_spill] sm:$0xff] }
 0x143   : > { %v660_v38 = vpop.permute.xlu1 %659  ;;  %v658_v2 = vpop.permute.xlu0 %657 }
 0x144   : > { %v3213_v15 = vsel %vm1249_vm2, %v1248_v14, %v660_v38  ;;  %v3216_v32 = vsel %vm1249_vm2, %v1247_v49, %v658_v2  ;;  %v4001_v38 = vld [vmem:[#allocation9_spill] sm:$0xff] }
 0x145   : > { %3993 = vst [vmem:[#allocation10_spill] sm:$0xff] %v3213_v15  ;;  %3994 = vst [vmem:[#allocation30_spill] sm:$0xff] %v3216_v32  ;;  %1031 = vrot.lane.b32.xlu1 %v3995_v22, %s2289_s7  ;;  %999 = vrot.lane.b32.xlu0 %v3996_v3, %s2289_s7  ;;  %v4002_v2 = vld [vmem:[#allocation5_spill] sm:$0xff]  ;;  %v4007_v15 = vld [vmem:[#allocation32_spill] sm:$0xff] }
 0x146   : > { %v4011_v32 = vld [vmem:[#allocation18_spill] sm:$0xff] }
 0x147   : > { %v3222_v16 = vpop.permute.xlu1 %697  ;;  %v696_v17 = vpop.permute.xlu0 %695 }
 0x149   : > { %1127 = vrot.lane.b32.xlu1 %v3997_v47, %s2290_s19  ;;  %1095 = vrot.lane.b32.xlu0 %v3998_v26, %s2290_s19 }
 0x14b   : > { %v3228_v24 = vpop.permute.xlu1 %701  ;;  %v3230_v56 = vpop.permute.xlu0 %699 }
 0x14d   : > { %741 = vrot.lane.b32.xlu1 %v3995_v22, %s2286_s20  ;;  %709 = vrot.lane.b32.xlu0 %v3996_v3, %s2286_s20 }
 0x14f   : > { %v3236_v19 = vpop.permute.xlu1 %705  ;;  %v3238_v25 = vpop.permute.xlu0 %703 }
 0x151   : > { %837 = vrot.lane.b32.xlu1 %v3997_v47, %s2287_s21  ;;  %805 = vrot.lane.b32.xlu0 %v3998_v26, %s2287_s21  ;;  %v4005_v26 = vld [vmem:[#allocation66_spill] sm:$0xff] }
 0x153   : > { %v3244_v30 = vpop.permute.xlu1 %729  ;;  %v728_v35 = vpop.permute.xlu0 %727 }
 0x155   : > { %1129 = vrot.lane.b32.xlu1 %v3999_v31, %s2290_s19  ;;  %1097 = vrot.lane.b32.xlu0 %v4000_v53, %s2290_s19 }
 0x157   : > { %v826_v41 = vpop.permute.xlu1 %825  ;;  %v794_v50 = vpop.permute.xlu0 %793 }
 0x159   : > { %839 = vrot.lane.b32.xlu1 %v3999_v31, %s2287_s21  ;;  %807 = vrot.lane.b32.xlu0 %v4000_v53, %s2287_s21 }
 0x15b   : > { %v3254_v18 = vpop.permute.xlu1 %827  ;;  %v3256_v44 = vpop.permute.xlu0 %795 }
 0x15d   : > { %935 = vrot.lane.b32.xlu1 %v3980_v10, %s2288_s30  ;;  %903 = vrot.lane.b32.xlu0 %v2659_v1, %s2288_s30  ;;  %v201_v10 = vld [vmem:[%s2330_s16] sm:$0xff]  ;;  %v4003_v1 = vld [vmem:[#allocation20_spill] sm:$0xff] }
 0x15e   : > { %v1184_v47 = vsel %vm1183_vm0, %v201_v10, %v4003_v1  ;;  %v4006_v1 = vld [vmem:[#allocation27_spill] sm:$0xff] }
 0x15f   : > { %v924_v45 = vpop.permute.xlu1 %923  ;;  %v892_v27 = vpop.permute.xlu0 %891 }
 0x161   : > { %937 = vrot.lane.b32.xlu1 %v3978_v0, %s2288_s30  ;;  %905 = vrot.lane.b32.xlu0 %v2656_v29, %s2288_s30  ;;  %v4004_v29 = vld [vmem:[#allocation50_spill] sm:$0xff] }
 0x162   : > { %v1217_v0 = vsel %vm1216_vm1, %v1184_v47, %v4004_v29  ;;  %v4009_v47 = vld [vmem:[#allocation4_spill] sm:$0xff] }
 0x163   : > { %v926_v14 = vpop.permute.xlu1 %925  ;;  %v894_v49 = vpop.permute.xlu0 %893  ;;  %v1250_v31 = vsel %vm1249_vm2, %v1217_v0, %v4005_v26  ;;  %v4010_v29 = vld [vmem:[#allocation60_spill] sm:$0xff] }
 0x164   : > { %v1283_v10 = vsel %vm1282_vm3, %v1250_v31, %v696_v17 }
 0x165   : > { %1033 = vrot.lane.b32.xlu1 %v4001_v38, %s2289_s7  ;;  %1001 = vrot.lane.b32.xlu0 %v4002_v2, %s2289_s7 }
 0x167   : > { %v1022_v22 = vpop.permute.xlu1 %1021  ;;  %v990_v3 = vpop.permute.xlu0 %989 }
 0x169   : > { %743 = vrot.lane.b32.xlu1 %v4001_v38, %s2286_s20  ;;  %711 = vrot.lane.b32.xlu0 %v4002_v2, %s2286_s20  ;;  %v1200_v38 = vsel %vm1183_vm0, %v4007_v15, %v4006_v1  ;;  %v1316_v2 = vsel %vm1315_vm4, %v1283_v10, %v794_v50 }
 0x16a   : > { %v1233_v0 = vsel %vm1216_vm1, %v1200_v38, %v4010_v29  ;;  %v1349_v17 = vsel %vm1348_vm5, %v1316_v2, %v892_v27  ;;  %v4012_v27 = vld [vmem:[#allocation14_spill] sm:$0xff]  ;;  %v202_v38 = vld [vmem:[%s2330_s16 + $0x8] sm:$0xff] }
 0x16b   : > { %v992_v53 = vpop.permute.xlu1 %991  ;;  %v3281_v33 = vpop.permute.xlu0 %731  ;;  %v1266_v26 = vsel %vm1249_vm2, %v1233_v0, %v3092_v61  ;;  %v1382_v15 = vsel %vm1381_vm6, %v1349_v17, %v990_v3  ;;  %v4013_v0 = vld [vmem:[#allocation23_spill] sm:$0xff]  ;;  %v4014_v17 = vld [vmem:[#allocation26_spill] sm:$0xff] }
 0x16c   : > { %v1299_v10 = vsel %vm1282_vm3, %v1266_v26, %v728_v35  ;;  %v4015_v26 = vld [vmem:[#allocation31_spill] sm:$0xff] }
 0x16d   : > { %1035 = vrot.lane.b32.xlu1 %v4008_v11, %s2289_s7  ;;  %1003 = vrot.lane.b32.xlu0 %v4009_v47, %s2289_s7  ;;  %v1332_v47 = vsel %vm1315_vm4, %v1299_v10, %v826_v41  ;;  %v1185_v41 = vsel %vm1183_vm0, %v202_v38, %v4013_v0  ;;  %v4017_v10 = vld [vmem:[#allocation59_spill] sm:$0xff] }
 0x16e   : > { %v1365_v61 = vsel %vm1348_vm5, %v1332_v47, %v924_v45  ;;  %v2231_v45 = vld [vmem:[%s2330_s16 + $0x81] sm:$0xff]  ;;  %v4018_v47 = vld [vmem:[#allocation65_spill] sm:$0xff] }
 0x16f   : > { %v1088_v31 = vpop.permute.xlu1 %1087  ;;  %v1024_v50 = vpop.permute.xlu0 %1023  ;;  %v1398_v3 = vsel %vm1381_vm6, %v1365_v61, %v1022_v22 }
 0x170   : > { %v1415_v1 = vsel %vm1414_vm7, %v1382_v15, %v1088_v31  ;;  %v1201_v15 = vsel %vm1183_vm0, %v4015_v26, %v4014_v17  ;;  %v4016_v31 = vld [vmem:[#allocation49_spill] sm:$0xff] }
 0x171   : > { %1131 = vrot.lane.b32.xlu1 %v4011_v32, %s2290_s19  ;;  %1099 = vrot.lane.b32.xlu0 %v4012_v27, %s2290_s19  ;;  %v1218_v22 = vsel %vm1216_vm1, %v1185_v41, %v4016_v31 }
 0x172   : > { %2124 = vmatprep.mubr.msk.f32.mxu0 %vm1456_vm8, %v1415_v1  ;;  %v1234_v1 = vsel %vm1216_vm1, %v1201_v15, %v4017_v10  ;;  %v1251_v38 = vsel %vm1249_vm2, %v1218_v22, %v4018_v47  ;;  %v4022_v47 = vld [vmem:[#allocation24_spill] sm:$0xff] }
 0x173   : > { %v3309_v2 = vpop.permute.xlu1 %733  ;;  %v1120_v35 = vpop.permute.xlu0 %1119  ;;  %v1267_v61 = vsel %vm1249_vm2, %v1234_v1, %v3090_v63  ;;  %v4021_v1 = vld [vmem:[#allocation19_spill] sm:$0xff] }
 0x174   : > { %v1431_v29 = vsel %vm1414_vm7, %v1398_v3, %v1120_v35  ;;  %v1300_v0 = vsel %vm1282_vm3, %v1267_v61, %v3244_v30  ;;  %v2232_v61 = vld [vmem:[%s2330_s16 + $0x151] sm:$0xff] }
 0x175   : > { %745 = vrot.lane.b32.xlu1 %v4008_v11, %s2286_s20  ;;  %713 = vrot.lane.b32.xlu0 %v2231_v45, %s2286_s20  ;;  %v1284_v11 = vsel %vm1282_vm3, %v1251_v38, %v3222_v16  ;;  %v1333_v41 = vsel %vm1315_vm4, %v1300_v0, %v3254_v18  ;;  %v4019_v45 = vld [vmem:[#allocation17_spill] sm:$0xff]  ;;  %v1186_v38 = vsel %vm1183_vm0, %v4022_v47, %v4021_v1  ;;  %v4024_v0 = vld [vmem:[#allocation68_spill] sm:$0xff] }
 0x176   : > { %2148 = vmatprep.mubr.msk.f32.mxu1 %vm1456_vm8, %v1431_v29  ;;  %v1317_v29 = vsel %vm1315_vm4, %v1284_v11, %v3256_v44  ;;  %v1366_v63 = vsel %vm1348_vm5, %v1333_v41, %v926_v14 }
 0x177   : > { %v830_v3 = vpop.permute.xlu1 %829  ;;  %v798_v35 = vpop.permute.xlu0 %797  ;;  %v1350_v17 = vsel %vm1348_vm5, %v1317_v29, %v894_v49  ;;  %v1399_v30 = vsel %vm1381_vm6, %v1366_v63, %v1024_v50  ;;  %v4025_v63 = vld [vmem:[#allocation29_spill] sm:$0xff] }
 0x178   : > { %v1383_v16 = vsel %vm1381_vm6, %v1350_v17, %v992_v53  ;;  %v4026_v17 = vld [vmem:[#allocation36_spill] sm:$0xff] }
 0x179   : > { %841 = vrot.lane.b32.xlu1 %v4011_v32, %s2287_s21  ;;  %809 = vrot.lane.b32.xlu0 %v4012_v27, %s2287_s21  ;;  %v4020_v32 = vld [vmem:[#allocation13_spill] sm:$0xff] }
 0x17b   : > { %v1122_v26 = vpop.permute.xlu1 %1121  ;;  %v1090_v15 = vpop.permute.xlu0 %1089 }
 0x17c   : > { %v1432_v18 = vsel %vm1414_vm7, %v1399_v30, %v1122_v26  ;;  %v1416_v44 = vsel %vm1414_vm7, %v1383_v16, %v1090_v15  ;;  %v1202_v16 = vsel %vm1183_vm0, %v4026_v17, %v4025_v63  ;;  %v4027_v26 = vld [vmem:[#allocation62_spill] sm:$0xff]  ;;  %v4032_v63 = vld [vmem:[#allocation21_spill] sm:$0xff] }
 0x17d   : > { %1133 = vrot.lane.b32.xlu1 %v4019_v45, %s2290_s19  ;;  %1101 = vrot.lane.b32.xlu0 %v4020_v32, %s2290_s19  ;;  %v1235_v15 = vsel %vm1216_vm1, %v1202_v16, %v4027_v26  ;;  %v4034_v16 = vld [vmem:[#allocation61_spill] sm:$0xff]  ;;  %v4035_v26 = vld [vmem:[#allocation67_spill] sm:$0xff] }
 0x17e   : > { %2125 = vmatmul.mubr.msk.f32.vlgmr.msra.gmra.mrb[0].mxu0 %vm1456_vm8, %v1416_v44  ;;  %2149 = vmatmul.mubr.msk.f32.vlgmr.msra.gmra.mrb[0].mxu1 %vm1456_vm8, %v1432_v18  ;;  %v1268_v44 = vsel %vm1249_vm2, %v1235_v15, %v3100_v13 }
 0x17f   : > { %v832_v14 = vpop.permute.xlu1 %831  ;;  %v800_v49 = vpop.permute.xlu0 %799  ;;  %v1301_v1 = vsel %vm1282_vm3, %v1268_v44, %v3281_v33 }
 0x180   : > { %v1334_v47 = vsel %vm1315_vm4, %v1301_v1, %v830_v3 }
 0x181   : > { %843 = vrot.lane.b32.xlu1 %v4019_v45, %s2287_s21  ;;  %811 = vrot.lane.b32.xlu0 %v4020_v32, %s2287_s21 }
 0x183   : > { %v928_v53 = vpop.permute.xlu1 %927  ;;  %v896_v50 = vpop.permute.xlu0 %895 }
 0x184   : > { %v1367_v13 = vsel %vm1348_vm5, %v1334_v47, %v928_v53  ;;  %v2236_v53 = vld [vmem:[%s2330_s16 + $0x92] sm:$0xff] }
 0x185   : > { %939 = vrot.lane.b32.xlu1 %v3986_v34, %s2288_s30  ;;  %907 = vrot.lane.b32.xlu0 %v2673_v58, %s2288_s30  ;;  %v2233_v34 = vld [vmem:[%s2330_s16 + $0x91] sm:$0xff]  ;;  %v4023_v58 = vld [vmem:[#allocation54_spill] sm:$0xff] }
 0x186   : > { %v1219_v11 = vsel %vm1216_vm1, %v1186_v38, %v4023_v58  ;;  %v2234_v38 = vld [vmem:[%s2330_s16 + $0x159] sm:$0xff] }
 0x187   : > { %v930_v27 = vpop.permute.xlu1 %929  ;;  %v898_v31 = vpop.permute.xlu0 %897  ;;  %v4028_v58 = vld [vmem:[#allocation22_spill] sm:$0xff] }
 0x189   : > { %941 = vrot.lane.b32.xlu1 %v3984_v40, %s2288_s30  ;;  %909 = vrot.lane.b32.xlu0 %v2670_v42, %s2288_s30  ;;  %v1252_v40 = vsel %vm1249_vm2, %v1219_v11, %v4024_v0  ;;  %v4029_v11 = vld [vmem:[#allocation25_spill] sm:$0xff]  ;;  %v4030_v0 = vld [vmem:[#allocation28_spill] sm:$0xff] }
 0x18a   : > { %v1285_v29 = vsel %vm1282_vm3, %v1252_v40, %v3230_v56  ;;  %v1187_v3 = vsel %vm1183_vm0, %v4029_v11, %v4028_v58  ;;  %v4031_v40 = vld [vmem:[#allocation35_spill] sm:$0xff] }
 0x18b   : > { %v1026_v22 = vpop.permute.xlu1 %1025  ;;  %v994_v10 = vpop.permute.xlu0 %993  ;;  %v1318_v30 = vsel %vm1315_vm4, %v1285_v29, %v798_v35  ;;  %v1203_v29 = vsel %vm1183_vm0, %v4031_v40, %v4030_v0 }
 0x18c   : > { %v1351_v18 = vsel %vm1348_vm5, %v1318_v30, %v896_v50  ;;  %v1400_v50 = vsel %vm1381_vm6, %v1367_v13, %v1026_v22  ;;  %v4033_v22 = vld [vmem:[#allocation53_spill] sm:$0xff]  ;;  %v1236_v30 = vsel %vm1216_vm1, %v1203_v29, %v4034_v16  ;;  %v2239_v29 = vld [vmem:[%s2330_s16 + $0x169] sm:$0xff] }
 0x18d   : > { %1037 = vrot.lane.b32.xlu1 %v2232_v61, %s2289_s7  ;;  %1005 = vrot.lane.b32.xlu0 %v2233_v34, %s2289_s7  ;;  %v1384_v56 = vsel %vm1381_vm6, %v1351_v18, %v994_v10  ;;  %v1220_v17 = vsel %vm1216_vm1, %v1187_v3, %v4033_v22  ;;  %v1269_v18 = vsel %vm1249_vm2, %v1236_v30, %v3098_v43 }
 0x18e   : > { %v1253_v15 = vsel %vm1249_vm2, %v1220_v17, %v4035_v26  ;;  %v1302_v1 = vsel %vm1282_vm3, %v1269_v18, %v3309_v2  ;;  %v2242_v18 = vld [vmem:[%s2330_s16 + $0xb1] sm:$0xff] }
 0x18f   : > { %v996_v41 = vpop.permute.xlu1 %995  ;;  %v3377_v42 = vpop.permute.xlu0 %735 }
 0x191   : > { %747 = vrot.lane.b32.xlu1 %v2232_v61, %s2286_s20  ;;  %715 = vrot.lane.b32.xlu0 %v2233_v34, %s2286_s20  ;;  %v2235_v61 = vld [vmem:[%s2330_s16 + $0x99] sm:$0xff] }
 0x193   : > { %v1092_v45 = vpop.permute.xlu1 %1091  ;;  %v1028_v32 = vpop.permute.xlu0 %1027 }
 0x194   : > { %v1417_v35 = vsel %vm1414_vm7, %v1384_v56, %v1092_v45  ;;  %v1286_v45 = vsel %vm1282_vm3, %v1253_v15, %v3228_v24  ;;  %v2241_v15 = vld [vmem:[%s2330_s16 + $0x171] sm:$0xff] }
 0x195   : > { %1039 = vrot.lane.b32.xlu1 %v2234_v38, %s2289_s7  ;;  %1007 = vrot.lane.b32.xlu0 %v2235_v61, %s2289_s7  ;;  %v1319_v47 = vsel %vm1315_vm4, %v1286_v45, %v800_v49  ;;  %v2243_v45 = vld [vmem:[%s2330_s16 + $0x16a] sm:$0xff] }
 0x196   : > { %2127 = vmatprep.mubr.msk.f32.mxu0 %vm1456_vm8, %v1417_v35  ;;  %v1335_v35 = vsel %vm1315_vm4, %v1302_v1, %v832_v14  ;;  %v1352_v43 = vsel %vm1348_vm5, %v1319_v47, %v898_v31  ;;  %v2244_v1 = vld [vmem:[%s2330_s16 + $0xaa] sm:$0xff] }
 0x197   : > { %v3404_v10 = vpop.permute.xlu1 %737  ;;  %v1124_v33 = vpop.permute.xlu0 %1123  ;;  %v1368_v13 = vsel %vm1348_vm5, %v1335_v35, %v930_v27 }
 0x198   : > { %v1433_v34 = vsel %vm1414_vm7, %v1400_v50, %v1124_v33  ;;  %v1385_v50 = vsel %vm1381_vm6, %v1352_v43, %v996_v41  ;;  %v1401_v24 = vsel %vm1381_vm6, %v1368_v13, %v1028_v32  ;;  %v2237_v41 = vld [vmem:[%s2330_s16 + $0x15a] sm:$0xff]  ;;  %v1288_v13 = vsel %vm1282_vm3, %v2981_v4, %v3236_v19 }
 0x199   : > { %1135 = vrot.lane.b32.xlu1 %v4032_v63, %s2290_s19  ;;  %1103 = vrot.lane.b32.xlu0 %v2236_v53, %s2290_s19  ;;  %v2238_v32 = vld [vmem:[%s2330_s16 + $0x9a] sm:$0xff]  ;;  %v1304_v43 = vsel %vm1282_vm3, %v3112_v39, %v3404_v10 }
 0x19a   : > { %2151 = vmatprep.mubr.msk.f32.mxu1 %vm1456_vm8, %v1433_v34 }
 0x19b   : > { %v834_v44 = vpop.permute.xlu1 %833  ;;  %v802_v56 = vpop.permute.xlu0 %801 }
 0x19d   : > { %749 = vrot.lane.b32.xlu1 %v2234_v38, %s2286_s20  ;;  %717 = vrot.lane.b32.xlu0 %v2235_v61, %s2286_s20 }
 0x19f   : > { %v1126_v33 = vpop.permute.xlu1 %1125  ;;  %v1094_v2 = vpop.permute.xlu0 %1093 }
 0x1a0   : > { %v1434_v14 = vsel %vm1414_vm7, %v1401_v24, %v1126_v33  ;;  %v1418_v49 = vsel %vm1414_vm7, %v1385_v50, %v1094_v2 }
 0x1a1   : > { %845 = vrot.lane.b32.xlu1 %v4032_v63, %s2287_s21  ;;  %813 = vrot.lane.b32.xlu0 %v2236_v53, %s2287_s21  ;;  %v2240_v63 = vld [vmem:[%s2330_s16 + $0xa9] sm:$0xff] }
 0x1a2   : > { %2128 = vmatmul.mubr.msk.f32.gmra.mrb[2].mxu0 %vm1456_vm8, %v1418_v49  ;;  %2152 = vmatmul.mubr.msk.f32.gmra.mrb[2].mxu1 %vm1456_vm8, %v1434_v14 }
 0x1a3   : > { %v836_v27 = vpop.permute.xlu1 %835  ;;  %v804_v31 = vpop.permute.xlu0 %803 }
 0x1a4   : > { %v1337_v50 = vsel %vm1315_vm4, %v1304_v43, %v836_v27  ;;  %v1321_v24 = vsel %vm1315_vm4, %v1288_v13, %v804_v31  ;;  %v2251_v43 = vld [vmem:[%s2330_s16 + $0xc2] sm:$0xff] }
 0x1a5   : > { %1137 = vrot.lane.b32.xlu1 %v2237_v41, %s2290_s19  ;;  %1105 = vrot.lane.b32.xlu0 %v2238_v32, %s2290_s19 }
 0x1a7   : > { %v932_v38 = vpop.permute.xlu1 %931  ;;  %v900_v61 = vpop.permute.xlu0 %899 }
 0x1a9   : > { %847 = vrot.lane.b32.xlu1 %v2237_v41, %s2287_s21  ;;  %815 = vrot.lane.b32.xlu0 %v2238_v32, %s2287_s21  ;;  %v2245_v41 = vld [vmem:[%s2330_s16 + $0x172] sm:$0xff] }
 0x1aa   : > { %v2246_v32 = vld [vmem:[%s2330_s16 + $0xb2] sm:$0xff] }
 0x1ab   : > { %v934_v34 = vpop.permute.xlu1 %933  ;;  %v902_v58 = vpop.permute.xlu0 %901 }
 0x1ac   : > { %v1370_v33 = vsel %vm1348_vm5, %v1337_v50, %v934_v34  ;;  %v1354_v2 = vsel %vm1348_vm5, %v1321_v24, %v902_v58 }
 0x1ad   : > { %943 = vrot.lane.b32.xlu1 %v3991_v21, %s2288_s30  ;;  %911 = vrot.lane.b32.xlu0 %v2687_v28, %s2288_s30 }
 0x1af   : > { %v1030_v11 = vpop.permute.xlu1 %1029  ;;  %v998_v3 = vpop.permute.xlu0 %997 }
 0x1b1   : > { %945 = vrot.lane.b32.xlu1 %v3989_v9, %s2288_s30  ;;  %913 = vrot.lane.b32.xlu0 %v2684_v59, %s2288_s30  ;;  %v1287_v9 = vsel %vm1282_vm3, %v2984_v36, %v3238_v25  ;;  %v1303_v59 = vsel %vm1282_vm3, %v3116_v20, %v3377_v42 }
 0x1b2   : > { %v1336_v53 = vsel %vm1315_vm4, %v1303_v59, %v834_v44  ;;  %v1320_v22 = vsel %vm1315_vm4, %v1287_v9, %v802_v56  ;;  %v269_v9 = vld [vmem:[%s2330_s16 + $0x181] sm:$0xff] }
 0x1b3   : > { %v3459_v0 = vpop.permute.xlu1 %739  ;;  %v3461_v40 = vpop.permute.xlu0 %707  ;;  %v1369_v17 = vsel %vm1348_vm5, %v1336_v53, %v932_v38  ;;  %v1353_v16 = vsel %vm1348_vm5, %v1320_v22, %v900_v61  ;;  %v2249_v22 = vld [vmem:[%s2330_s16 + $0xc1] sm:$0xff] }
 0x1b4   : > { %v1402_v36 = vsel %vm1381_vm6, %v1369_v17, %v1030_v11  ;;  %v1386_v25 = vsel %vm1381_vm6, %v1353_v16, %v998_v3  ;;  %v4036_v11 = vld [vmem:[#allocation58_spill] sm:$0xff] }
 0x1b5   : > { %1041 = vrot.lane.b32.xlu1 %v2239_v29, %s2289_s7  ;;  %1009 = vrot.lane.b32.xlu0 %v2240_v63, %s2289_s7  ;;  %v2247_v3 = vld [vmem:[%s2330_s16 + $0xc0] sm:$0xff] }
 0x1b7   : > { %v1032_v21 = vpop.permute.xlu1 %1031  ;;  %v1000_v28 = vpop.permute.xlu0 %999 }
 0x1b8   : > { %v1403_v4 = vsel %vm1381_vm6, %v1370_v33, %v1032_v21  ;;  %v1387_v19 = vsel %vm1381_vm6, %v1354_v2, %v1000_v28  ;;  %v4037_v21 = vld [vmem:[#allocation57_spill] sm:$0xff]  ;;  %v2248_v28 = vld [vmem:[%s2330_s16 + $0xc8] sm:$0xff] }
 0x1b9   : > { %751 = vrot.lane.b32.xlu1 %v2239_v29, %s2286_s20  ;;  %719 = vrot.lane.b32.xlu0 %v2240_v63, %s2286_s20 }
 0x1bb   : > { %v1128_v30 = vpop.permute.xlu1 %1127  ;;  %v1096_v20 = vpop.permute.xlu0 %1095 }
 0x1bc   : > { %v1435_v42 = vsel %vm1414_vm7, %v1402_v36, %v1128_v30  ;;  %v1419_v26 = vsel %vm1414_vm7, %v1386_v25, %v1096_v20  ;;  %v1305_v36 = vsel %vm1282_vm3, %v3136_v52, %v3459_v0  ;;  %v1289_v25 = vsel %vm1282_vm3, %v3004_v5, %v3461_v40 }
 0x1bd   : > { %1043 = vrot.lane.b32.xlu1 %v2241_v15, %s2289_s7  ;;  %1011 = vrot.lane.b32.xlu0 %v2242_v18, %s2289_s7 }
 0x1be   : > { %2130 = vmatprep.mubr.msk.f32.mxu0 %vm1456_vm8, %v1419_v26  ;;  %2154 = vmatprep.mubr.msk.f32.mxu1 %vm1456_vm8, %v1435_v42 }
 0x1bf   : > { %v3489_v44 = vpop.permute.xlu1 %741  ;;  %v3491_v56 = vpop.permute.xlu0 %709 }
 0x1c0   : > { %v1306_v33 = vsel %vm1282_vm3, %v3133_v54, %v3489_v44  ;;  %v1290_v2 = vsel %vm1282_vm3, %v3001_v51, %v3491_v56 }
 0x1c1   : > { %1139 = vrot.lane.b32.xlu1 %v2243_v45, %s2290_s19  ;;  %1107 = vrot.lane.b32.xlu0 %v2244_v1, %s2290_s19 }
 0x1c3   : > { %v838_v35 = vpop.permute.xlu1 %837  ;;  %v806_v47 = vpop.permute.xlu0 %805 }
 0x1c4   : > { %v1338_v30 = vsel %vm1315_vm4, %v1305_v36, %v838_v35  ;;  %v1322_v20 = vsel %vm1315_vm4, %v1289_v25, %v806_v47  ;;  %v305_v35 = vld [vmem:[%s2330_s16 + $0x182] sm:$0xff] }
 0x1c5   : > { %753 = vrot.lane.b32.xlu1 %v2241_v15, %s2286_s20  ;;  %721 = vrot.lane.b32.xlu0 %v2242_v18, %s2286_s20  ;;  %v270_v15 = vld [vmem:[%s2330_s16 + $0x189] sm:$0xff]  ;;  %v272_v36 = vld [vmem:[%s2330_s16 + $0x1a1] sm:$0xff] }
 0x1c7   : > { %v1130_v14 = vpop.permute.xlu1 %1129  ;;  %v1098_v39 = vpop.permute.xlu0 %1097 }
 0x1c8   : > { %v1436_v10 = vsel %vm1414_vm7, %v1403_v4, %v1130_v14  ;;  %v1420_v49 = vsel %vm1414_vm7, %v1387_v19, %v1098_v39 }
 0x1c9   : > { %849 = vrot.lane.b32.xlu1 %v2243_v45, %s2287_s21  ;;  %817 = vrot.lane.b32.xlu0 %v2244_v1, %s2287_s21  ;;  %v2250_v1 = vld [vmem:[%s2330_s16 + $0xc9] sm:$0xff] }
 0x1ca   : > { %2131 = vmatmul.mubr.msk.f32.gmra.mrb[4].mxu0 %vm1456_vm8, %v1420_v49  ;;  %2155 = vmatmul.mubr.msk.f32.gmra.mrb[4].mxu1 %vm1456_vm8, %v1436_v10 }
 0x1cb   : > { %v840_v27 = vpop.permute.xlu1 %839  ;;  %v808_v31 = vpop.permute.xlu0 %807 }
 0x1cc   : > { %v1339_v4 = vsel %vm1315_vm4, %v1306_v33, %v840_v27  ;;  %v1323_v19 = vsel %vm1315_vm4, %v1290_v2, %v808_v31  ;;  %v306_v27 = vld [vmem:[%s2330_s16 + $0x18a] sm:$0xff] }
 0x1cd   : > { %1141 = vrot.lane.b32.xlu1 %v2245_v41, %s2290_s19  ;;  %1109 = vrot.lane.b32.xlu0 %v2246_v32, %s2290_s19 }
 0x1cf   : > { %v936_v38 = vpop.permute.xlu1 %935  ;;  %v904_v61 = vpop.permute.xlu0 %903 }
 0x1d0   : > { %v1371_v42 = vsel %vm1348_vm5, %v1338_v30, %v936_v38  ;;  %v1355_v26 = vsel %vm1348_vm5, %v1322_v20, %v904_v61 }
 0x1d1   : > { %851 = vrot.lane.b32.xlu1 %v2245_v41, %s2287_s21  ;;  %819 = vrot.lane.b32.xlu0 %v2246_v32, %s2287_s21  ;;  %v2252_v32 = vld [vmem:[%s2330_s16 + $0xca] sm:$0xff] }
 0x1d3   : > { %v938_v34 = vpop.permute.xlu1 %937  ;;  %v906_v58 = vpop.permute.xlu0 %905 }
 0x1d4   : > { %v1372_v14 = vsel %vm1348_vm5, %v1339_v4, %v938_v34  ;;  %v1356_v39 = vsel %vm1348_vm5, %v1323_v19, %v906_v58  ;;  %v235_v34 = vld [vmem:[%s2330_s16 + $0x198] sm:$0xff] }
 0x1d5   : > { %947 = vrot.lane.b32.xlu1 %v4036_v11, %s2288_s30  ;;  %915 = vrot.lane.b32.xlu0 %v2247_v3, %s2288_s30  ;;  %v2253_v3 = vld [vmem:[%s2330_s16 + $0xd8] sm:$0xff] }
 0x1d7   : > { %v1034_v29 = vpop.permute.xlu1 %1033  ;;  %v1002_v63 = vpop.permute.xlu0 %1001 }
 0x1d8   : > { %v1404_v52 = vsel %vm1381_vm6, %v1371_v42, %v1034_v29  ;;  %v1388_v0 = vsel %vm1381_vm6, %v1355_v26, %v1002_v63  ;;  %v236_v29 = vld [vmem:[%s2330_s16 + $0x1a0] sm:$0xff] }
 0x1d9   : > { %949 = vrot.lane.b32.xlu1 %v4037_v21, %s2288_s30  ;;  %917 = vrot.lane.b32.xlu0 %v2248_v28, %s2288_s30  ;;  %v2254_v28 = vld [vmem:[%s2330_s16 + $0xe0] sm:$0xff] }
 0x1db   : > { %v3532_v59 = vpop.permute.xlu1 %743  ;;  %v3534_v53 = vpop.permute.xlu0 %711 }
 0x1dc   : > { %v1307_v20 = vsel %vm1282_vm3, %v3156_v12, %v3532_v59  ;;  %v1291_v42 = vsel %vm1282_vm3, %v3024_v46, %v3534_v53  ;;  %v307_v12 = vld [vmem:[%s2330_s16 + $0x19a] sm:$0xff] }
 0x1dd   : > { %1045 = vrot.lane.b32.xlu1 %v269_v9, %s2289_s7  ;;  %1013 = vrot.lane.b32.xlu0 %v2249_v22, %s2289_s7 }
 0x1df   : > { %v1036_v17 = vpop.permute.xlu1 %1035  ;;  %v1004_v16 = vpop.permute.xlu0 %1003 }
 0x1e0   : > { %v1405_v54 = vsel %vm1381_vm6, %v1372_v14, %v1036_v17  ;;  %v1389_v44 = vsel %vm1381_vm6, %v1356_v39, %v1004_v16  ;;  %v2255_v16 = vld [vmem:[%s2330_s16 + $0xd9] sm:$0xff] }
 0x1e1   : > { %755 = vrot.lane.b32.xlu1 %v269_v9, %s2286_s20  ;;  %723 = vrot.lane.b32.xlu0 %v2249_v22, %s2286_s20  ;;  %v271_v9 = vld [vmem:[%s2330_s16 + $0x199] sm:$0xff] }
 0x1e3   : > { %v1132_v5 = vpop.permute.xlu1 %1131  ;;  %v1100_v40 = vpop.permute.xlu0 %1099 }
 0x1e4   : > { %v1437_v18 = vsel %vm1414_vm7, %v1404_v52, %v1132_v5  ;;  %v1421_v45 = vsel %vm1414_vm7, %v1388_v0, %v1100_v40  ;;  %v2256_v5 = vld [vmem:[%s2330_s16 + $0xe1] sm:$0xff] }
 0x1e5   : > { %1047 = vrot.lane.b32.xlu1 %v270_v15, %s2289_s7  ;;  %1015 = vrot.lane.b32.xlu0 %v2250_v1, %s2289_s7 }
 0x1e6   : > { %2133 = vmatprep.mubr.msk.f32.mxu0 %vm1456_vm8, %v1421_v45  ;;  %2157 = vmatprep.mubr.msk.f32.mxu1 %vm1456_vm8, %v1437_v18 }
 0x1e7   : > { %v3562_v47 = vpop.permute.xlu1 %745  ;;  %v3564_v13 = vpop.permute.xlu0 %713 }
 0x1e8   : > { %v1308_v4 = vsel %vm1282_vm3, %v3153_v48, %v3562_v47  ;;  %v1292_v19 = vsel %vm1282_vm3, %v3021_v37, %v3564_v13 }
 0x1e9   : > { %1143 = vrot.lane.b32.xlu1 %v305_v35, %s2290_s19  ;;  %1111 = vrot.lane.b32.xlu0 %v2251_v43, %s2290_s19 }
 0x1eb   : > { %v842_v50 = vpop.permute.xlu1 %841  ;;  %v810_v24 = vpop.permute.xlu0 %809 }
 0x1ec   : > { %v1340_v26 = vsel %vm1315_vm4, %v1307_v20, %v842_v50 }
 0x1ed   : > { %757 = vrot.lane.b32.xlu1 %v270_v15, %s2286_s20  ;;  %725 = vrot.lane.b32.xlu0 %v2250_v1, %s2286_s20  ;;  %v1324_v15 = vsel %vm1315_vm4, %v1291_v42, %v810_v24  ;;  %v2257_v1 = vld [vmem:[%s2330_s16 + $0xda] sm:$0xff]  ;;  %v2258_v24 = vld [vmem:[%s2330_s16 + $0xe2] sm:$0xff] }
 0x1ef   : > { %v1134_v10 = vpop.permute.xlu1 %1133  ;;  %v1102_v51 = vpop.permute.xlu0 %1101 }
 0x1f0   : > { %v1438_v56 = vsel %vm1414_vm7, %v1405_v54, %v1134_v10  ;;  %v1422_v49 = vsel %vm1414_vm7, %v1389_v44, %v1102_v51 }
 0x1f1   : > { %853 = vrot.lane.b32.xlu1 %v305_v35, %s2287_s21  ;;  %2158 = vmatmul.mubr.msk.f32.gmra.mrb[6].mxu1 %vm1456_vm8, %v1438_v56  ;;  %v308_v35 = vld [vmem:[%s2330_s16 + $0x1a2] sm:$0xff]  ;;  %s2064_s16 = sshll.u32 %s4047_s9, 8 }
 0x1f2   : > { %821 = vrot.lane.b32.xlu0 %v2251_v43, %s2287_s21  ;;  %2134 = vmatmul.mubr.msk.f32.gmra.mrb[6].mxu0 %vm1456_vm8, %v1422_v49  ;;  %s3697_s22 = scalar_lea.vmem %s3840_s2, %s2064_s16 }
 0x1f3   : > { %v844_v31 = vpop.permute.xlu1 %843  ;;  %v812_v41 = vpop.permute.xlu0 %811 }
 0x1f4   : > { %v1341_v14 = vsel %vm1315_vm4, %v1308_v4, %v844_v31  ;;  %v1325_v39 = vsel %vm1315_vm4, %v1292_v19, %v812_v41 }
 0x1f5   : > { %1145 = vrot.lane.b32.xlu1 %v306_v27, %s2290_s19 }
 0x1f6   : > { %1113 = vrot.lane.b32.xlu0 %v2252_v32, %s2290_s19 }
 0x1f7   : > { %v940_v38 = vpop.permute.xlu1 %939  ;;  %v908_v61 = vpop.permute.xlu0 %907 }
 0x1f8   : > { %v1373_v52 = vsel %vm1348_vm5, %v1340_v26, %v940_v38  ;;  %v1357_v0 = vsel %vm1348_vm5, %v1324_v15, %v908_v61 }
 0x1f9   : > { %855 = vrot.lane.b32.xlu1 %v306_v27, %s2287_s21 }
 0x1fa   : > { %823 = vrot.lane.b32.xlu0 %v2252_v32, %s2287_s21 }
 0x1fb   : > { %v942_v58 = vpop.permute.xlu1 %941  ;;  %v910_v11 = vpop.permute.xlu0 %909 }
 0x1fc   : > { %v1374_v54 = vsel %vm1348_vm5, %v1341_v14, %v942_v58  ;;  %v1358_v44 = vsel %vm1348_vm5, %v1325_v39, %v910_v11 }
 0x1fd   : > { %951 = vrot.lane.b32.xlu1 %v235_v34, %s2288_s30 }
 0x1fe   : > { %919 = vrot.lane.b32.xlu0 %v2253_v3, %s2288_s30 }
 0x1ff   : > { %v1038_v63 = vpop.permute.xlu1 %1037  ;;  %v1006_v21 = vpop.permute.xlu0 %1005 }
 0x200   : > { %v1406_v59 = vsel %vm1381_vm6, %v1373_v52, %v1038_v63  ;;  %v1390_v46 = vsel %vm1381_vm6, %v1357_v0, %v1006_v21 }
 0x201   : > { %953 = vrot.lane.b32.xlu1 %v236_v29, %s2288_s30 }
 0x202   : > { %921 = vrot.lane.b32.xlu0 %v2254_v28, %s2288_s30 }
 0x203   : > { %v3604_v22 = vpop.permute.xlu1 %747  ;;  %v3606_v17 = vpop.permute.xlu0 %715 }
 0x204   : > { %v1309_v29 = vsel %vm1282_vm3, %v3176_v62, %v3604_v22  ;;  %v1293_v63 = vsel %vm1282_vm3, %v3044_v7, %v3606_v17 }
 0x205   : > { %1049 = vrot.lane.b32.xlu1 %v271_v9, %s2289_s7 }
 0x206   : > { %1017 = vrot.lane.b32.xlu0 %v2255_v16, %s2289_s7 }
 0x207   : > { %v1040_v25 = vpop.permute.xlu1 %1039  ;;  %v1008_v30 = vpop.permute.xlu0 %1007 }
 0x208   : > { %v1407_v10 = vsel %vm1381_vm6, %v1374_v54, %v1040_v25  ;;  %v1391_v51 = vsel %vm1381_vm6, %v1358_v44, %v1008_v30 }
 0x209   : > { %1051 = vrot.lane.b32.xlu1 %v272_v36, %s2289_s7 }
 0x20a   : > { %1019 = vrot.lane.b32.xlu0 %v2256_v5, %s2289_s7 }
 0x20b   : > { %v1136_v53 = vpop.permute.xlu1 %1135  ;;  %v1104_v40 = vpop.permute.xlu0 %1103 }
 0x20c   : > { %v1439_v18 = vsel %vm1414_vm7, %v1406_v59, %v1136_v53  ;;  %v1423_v45 = vsel %vm1414_vm7, %v1390_v46, %v1104_v40 }
 0x20d   : > { %1147 = vrot.lane.b32.xlu1 %v307_v12, %s2290_s19  ;;  %2160 = vmatprep.mubr.msk.f32.mxu1 %vm1456_vm8, %v1439_v18 }
 0x20e   : > { %1115 = vrot.lane.b32.xlu0 %v2257_v1, %s2290_s19  ;;  %2136 = vmatprep.mubr.msk.f32.mxu0 %vm1456_vm8, %v1423_v45 }
 0x20f   : > { %v750_v43 = vpop.permute.xlu1 %749  ;;  %v718_v50 = vpop.permute.xlu0 %717 }
 0x210   : > { %v1310_v15 = vsel %vm1282_vm3, %v3173_v55, %v750_v43  ;;  %v1294_v52 = vsel %vm1282_vm3, %v3041_v60, %v718_v50 }
 0x211   : > { %1149 = vrot.lane.b32.xlu1 %v308_v35, %s2290_s19 }
 0x212   : > { %1117 = vrot.lane.b32.xlu0 %v2258_v24, %s2290_s19 }
 0x213   : > { %v846_v33 = vpop.permute.xlu1 %845  ;;  %v814_v2 = vpop.permute.xlu0 %813 }
 0x214   : > { %v1342_v21 = vsel %vm1315_vm4, %v1309_v29, %v846_v33  ;;  %v1326_v28 = vsel %vm1315_vm4, %v1293_v63, %v814_v2 }
 0x217   : > { %v1138_v56 = vpop.permute.xlu1 %1137  ;;  %v1106_v49 = vpop.permute.xlu0 %1105 }
 0x218   : > { %v1440_v48 = vsel %vm1414_vm7, %v1407_v10, %v1138_v56  ;;  %v1424_v47 = vsel %vm1414_vm7, %v1391_v51, %v1106_v49 }
 0x219   : > { %2137 = vmatmul.mubr.msk.f32.gmra.mrb[8].mxu0 %vm1456_vm8, %v1424_v47  ;;  %2161 = vmatmul.mubr.msk.f32.gmra.mrb[8].mxu1 %vm1456_vm8, %v1440_v48 }
 0x21b   : > { %v848_v37 = vpop.permute.xlu1 %847  ;;  %v816_v13 = vpop.permute.xlu0 %815 }
 0x21c   : > { %v1343_v0 = vsel %vm1315_vm4, %v1310_v15, %v848_v37  ;;  %v1327_v5 = vsel %vm1315_vm4, %v1294_v52, %v816_v13 }
 0x21f   : > { %v944_v27 = vpop.permute.xlu1 %943  ;;  %v912_v31 = vpop.permute.xlu0 %911 }
 0x220   : > { %v1375_v9 = vsel %vm1348_vm5, %v1342_v21, %v944_v27  ;;  %v1359_v16 = vsel %vm1348_vm5, %v1326_v28, %v912_v31 }
 0x223   : > { %v946_v41 = vpop.permute.xlu1 %945  ;;  %v914_v32 = vpop.permute.xlu0 %913 }
 0x224   : > { %v1376_v12 = vsel %vm1348_vm5, %v1343_v0, %v946_v41  ;;  %v1360_v59 = vsel %vm1348_vm5, %v1327_v5, %v914_v32 }
 0x227   : > { %v1042_v38 = vpop.permute.xlu1 %1041  ;;  %v1010_v61 = vpop.permute.xlu0 %1009 }
 0x228   : > { %v1408_v36 = vsel %vm1381_vm6, %v1375_v9, %v1042_v38  ;;  %v1392_v25 = vsel %vm1381_vm6, %v1359_v16, %v1010_v61 }
 0x22b   : > { %v3655_v34 = vpop.permute.xlu1 %751  ;;  %v3657_v58 = vpop.permute.xlu0 %719 }
 0x22c   : > { %v1311_v41 = vsel %vm1282_vm3, %v3196_v8, %v3655_v34  ;;  %v1295_v32 = vsel %vm1282_vm3, %v3064_v23, %v3657_v58 }
 0x22f   : > { %v1044_v11 = vpop.permute.xlu1 %1043  ;;  %v1012_v3 = vpop.permute.xlu0 %1011 }
 0x230   : > { %v1409_v46 = vsel %vm1381_vm6, %v1376_v12, %v1044_v11  ;;  %v1393_v53 = vsel %vm1381_vm6, %v1360_v59, %v1012_v3 }
 0x233   : > { %v1140_v30 = vpop.permute.xlu1 %1139  ;;  %v1108_v20 = vpop.permute.xlu0 %1107 }
 0x234   : > { %v1441_v62 = vsel %vm1414_vm7, %v1408_v36, %v1140_v30  ;;  %v1425_v22 = vsel %vm1414_vm7, %v1392_v25, %v1108_v20 }
 0x235   : > { %2139 = vmatprep.mubr.msk.f32.mxu0 %vm1456_vm8, %v1425_v22  ;;  %2163 = vmatprep.mubr.msk.f32.mxu1 %vm1456_vm8, %v1441_v62 }
 0x237   : > { %v3675_v7 = vpop.permute.xlu1 %753  ;;  %v3677_v17 = vpop.permute.xlu0 %721 }
 0x238   : > { %v1312_v36 = vsel %vm1282_vm3, %v3193_v57, %v3675_v7  ;;  %v1296_v25 = vsel %vm1282_vm3, %v3061_v6, %v3677_v17 }
 0x23b   : > { %v850_v42 = vpop.permute.xlu1 %849  ;;  %v818_v26 = vpop.permute.xlu0 %817 }
 0x23c   : > { %v1344_v38 = vsel %vm1315_vm4, %v1311_v41, %v850_v42  ;;  %v1328_v61 = vsel %vm1315_vm4, %v1295_v32, %v818_v26  ;;  %v4040_v41 = vld [vmem:[#allocation10_spill] sm:$0xff]  ;;  %v4041_v32 = vld [vmem:[#allocation69_spill] sm:$0xff] }
 0x23f   : > { %v1142_v40 = vpop.permute.xlu1 %1141  ;;  %v1110_v18 = vpop.permute.xlu0 %1109 }
 0x240   : > { %v1442_v55 = vsel %vm1414_vm7, %v1409_v46, %v1142_v40  ;;  %v1426_v45 = vsel %vm1414_vm7, %v1393_v53, %v1110_v18 }
 0x241   : > { %2140 = vmatmul.mubr.msk.f32.gmra.mrb[10].mxu0 %vm1456_vm8, %v1426_v45  ;;  %2164 = vmatmul.mubr.msk.f32.gmra.mrb[10].mxu1 %vm1456_vm8, %v1442_v55 }
 0x243   : > { %v852_v60 = vpop.permute.xlu1 %851  ;;  %v820_v1 = vpop.permute.xlu0 %819 }
 0x244   : > { %v1345_v30 = vsel %vm1315_vm4, %v1312_v36, %v852_v60  ;;  %v1329_v20 = vsel %vm1315_vm4, %v1296_v25, %v820_v1 }
 0x247   : > { %v948_v35 = vpop.permute.xlu1 %947  ;;  %v916_v43 = vpop.permute.xlu0 %915 }
 0x248   : > { %v1377_v11 = vsel %vm1348_vm5, %v1344_v38, %v948_v35  ;;  %v1361_v3 = vsel %vm1348_vm5, %v1328_v61, %v916_v43 }
 0x24b   : > { %v950_v50 = vpop.permute.xlu1 %949  ;;  %v918_v24 = vpop.permute.xlu0 %917 }
 0x24c   : > { %v1378_v62 = vsel %vm1348_vm5, %v1345_v30, %v950_v50  ;;  %v1362_v22 = vsel %vm1348_vm5, %v1329_v20, %v918_v24 }
 0x24f   : > { %v1046_v33 = vpop.permute.xlu1 %1045  ;;  %v1014_v2 = vpop.permute.xlu0 %1013 }
 0x250   : > { %v1410_v29 = vsel %vm1381_vm6, %v1377_v11, %v1046_v33  ;;  %v1394_v63 = vsel %vm1381_vm6, %v1361_v3, %v1014_v2 }
 0x251   : > { %v2126_v4 = vpop.f32.mrb[0].mxu0  ;;  %v2150_v19 = vpop.f32.mrb[0].mxu1 }
 0x252   : > { %vm1779_vm9 = vcmp.ge.f32.partialorder %v2126_v4, 0.0  ;;  %v1811_v14 = vmul.f32 0.1, %v2126_v4  ;;  %vm1795_vm10 = vcmp.ge.f32.partialorder %v2150_v19, 0.0  ;;  %v1827_v39 = vmul.f32 0.1, %v2150_v19 }
 0x253   : > { %v1619_v54 = vpop.f32.mrb[1].mxu0  ;;  %v1699_v44 = vpop.f32.mrb[1].mxu1 }
 0x254   : > { %v1843_v10 = vsel %vm1779_vm9, %v2126_v4, %v1811_v14  ;;  %v1859_v51 = vsel %vm1795_vm10, %v2150_v19, %v1827_v39  ;;  %vm1778_vm11 = vcmp.ge.f32.partialorder %v1619_v54, 0.0  ;;  %v1810_v56 = vmul.f32 0.1, %v1619_v54  ;;  %v3699_v49 = vpop.permute.xlu1 %755  ;;  %v3701_v48 = vpop.permute.xlu0 %723  ;;  %v4038_v14 = vld [vmem:[#allocation30_spill] sm:$0xff] }
 0x255   : > { %1875 = vst.msk [vmem:[%s3697_s22 + $0x8] sm:$0xff] %vm1183_vm0, %v1843_v10  ;;  %1891 = vst.msk [vmem:[%s3697_s22 + $0x88] sm:$0xff] %vm1183_vm0, %v1859_v51  ;;  %vm1794_vm12 = vcmp.ge.f32.partialorder %v1699_v44, 0.0  ;;  %v1826_v47 = vmul.f32 0.1, %v1699_v44  ;;  %v1313_v39 = vsel %vm1282_vm3, %v4038_v14, %v3699_v49 }
 0x256   : > { %v1842_v37 = vsel %vm1778_vm11, %v1619_v54, %v1810_v56  ;;  %v4039_v54 = vld [vmem:[#allocation70_spill] sm:$0xff] }
 0x257   : > { %1874 = vst.msk [vmem:[%s3697_s22] sm:$0xff] %vm1183_vm0, %v1842_v37  ;;  %v1858_v13 = vsel %vm1794_vm12, %v1699_v44, %v1826_v47  ;;  %v1297_v44 = vsel %vm1282_vm3, %v4039_v54, %v3701_v48 }
 0x258   : > { %1890 = vst.msk [vmem:[%s3697_s22 + $0x80] sm:$0xff] %vm1183_vm0, %v1858_v13  ;;  %v1048_v27 = vpop.permute.xlu1 %1047  ;;  %v1016_v31 = vpop.permute.xlu0 %1015 }
 0x259   : > { %v1411_v42 = vsel %vm1381_vm6, %v1378_v62, %v1048_v27  ;;  %v1395_v26 = vsel %vm1381_vm6, %v1362_v22, %v1016_v31 }
 0x25c   : > { %v1144_v21 = vpop.permute.xlu1 %1143  ;;  %v1112_v28 = vpop.permute.xlu0 %1111 }
 0x25d   : > { %v1443_v8 = vsel %vm1414_vm7, %v1410_v29, %v1144_v21  ;;  %v1427_v34 = vsel %vm1414_vm7, %v1394_v63, %v1112_v28 }
 0x25e   : > { %2142 = vmatprep.mubr.msk.f32.mxu0 %vm1456_vm8, %v1427_v34  ;;  %2166 = vmatprep.mubr.msk.f32.mxu1 %vm1456_vm8, %v1443_v8 }
 0x260   : > { %v758_v23 = vpop.permute.xlu1 %757  ;;  %v726_v58 = vpop.permute.xlu0 %725 }
 0x261   : > { %v1314_v49 = vsel %vm1282_vm3, %v4040_v41, %v758_v23  ;;  %v1298_v48 = vsel %vm1282_vm3, %v4041_v32, %v726_v58 }
 0x264   : > { %v854_v9 = vpop.permute.xlu1 %853  ;;  %v822_v16 = vpop.permute.xlu0 %821 }
 0x265   : > { %v1346_v10 = vsel %vm1315_vm4, %v1313_v39, %v854_v9  ;;  %v1330_v51 = vsel %vm1315_vm4, %v1297_v44, %v822_v16 }
 0x268   : > { %v1146_v15 = vpop.permute.xlu1 %1145  ;;  %v1114_v52 = vpop.permute.xlu0 %1113 }
 0x269   : > { %v1444_v57 = vsel %vm1414_vm7, %v1411_v42, %v1146_v15  ;;  %v1428_v7 = vsel %vm1414_vm7, %v1395_v26, %v1114_v52 }
 0x26a   : > { %2143 = vmatmul.mubr.msk.f32.gmra.mrb[12].mxu0 %vm1456_vm8, %v1428_v7  ;;  %2167 = vmatmul.mubr.msk.f32.gmra.mrb[12].mxu1 %vm1456_vm8, %v1444_v57 }
 0x26c   : > { %v856_v6 = vpop.permute.xlu1 %855  ;;  %v824_v17 = vpop.permute.xlu0 %823 }
 0x26d   : > { %v1347_v11 = vsel %vm1315_vm4, %v1314_v49, %v856_v6  ;;  %v1331_v3 = vsel %vm1315_vm4, %v1298_v48, %v824_v17 }
 0x270   : > { %v952_v0 = vpop.permute.xlu1 %951  ;;  %v920_v5 = vpop.permute.xlu0 %919 }
 0x271   : > { %v1379_v56 = vsel %vm1348_vm5, %v1346_v10, %v952_v0  ;;  %v1363_v47 = vsel %vm1348_vm5, %v1330_v51, %v920_v5 }
 0x274   : > { %v954_v12 = vpop.permute.xlu1 %953  ;;  %v922_v59 = vpop.permute.xlu0 %921 }
 0x275   : > { %v2129_v46 = vpop.f32.mrb[2].mxu0  ;;  %v2153_v53 = vpop.f32.mrb[2].mxu1  ;;  %v1380_v29 = vsel %vm1348_vm5, %v1347_v11, %v954_v12  ;;  %v1364_v63 = vsel %vm1348_vm5, %v1331_v3, %v922_v59 }
 0x276   : > { %vm1781_vm13 = vcmp.ge.f32.partialorder %v2129_v46, 0.0  ;;  %v1813_v40 = vmul.f32 0.1, %v2129_v46  ;;  %vm1797_vm14 = vcmp.ge.f32.partialorder %v2153_v53, 0.0  ;;  %v1829_v18 = vmul.f32 0.1, %v2153_v53 }
 0x277   : > { %v1629_v55 = vpop.f32.mrb[3].mxu0  ;;  %v1709_v45 = vpop.f32.mrb[3].mxu1 }
 0x278   : > { %v1845_v60 = vsel %vm1781_vm13, %v2129_v46, %v1813_v40  ;;  %v1861_v1 = vsel %vm1797_vm14, %v2153_v53, %v1829_v18  ;;  %vm1780_vm15 = vcmp.ge.f32.partialorder %v1629_v55, 0.0  ;;  %v1812_v35 = vmul.f32 0.1, %v1629_v55  ;;  %v1050_v43 = vpop.permute.xlu1 %1049  ;;  %v1018_v50 = vpop.permute.xlu0 %1017 }
 0x279   : > { %1877 = vst.msk [vmem:[%s3697_s22 + $0x18] sm:$0xff] %vm1183_vm0, %v1845_v60  ;;  %1893 = vst.msk [vmem:[%s3697_s22 + $0x98] sm:$0xff] %vm1183_vm0, %v1861_v1  ;;  %vm1796_vm1 = vcmp.ge.f32.partialorder %v1709_v45, 0.0  ;;  %v1828_v24 = vmul.f32 0.1, %v1709_v45  ;;  %v1412_v37 = vsel %vm1381_vm6, %v1379_v56, %v1050_v43  ;;  %v1396_v13 = vsel %vm1381_vm6, %v1363_v47, %v1018_v50 }
 0x27a   : > { %v1844_v33 = vsel %vm1780_vm15, %v1629_v55, %v1812_v35 }
 0x27b   : > { %1876 = vst.msk [vmem:[%s3697_s22 + $0x10] sm:$0xff] %vm1183_vm0, %v1844_v33  ;;  %v1860_v2 = vsel %vm1796_vm1, %v1709_v45, %v1828_v24 }
 0x27c   : > { %1892 = vst.msk [vmem:[%s3697_s22 + $0x90] sm:$0xff] %vm1183_vm0, %v1860_v2  ;;  %v1052_v4 = vpop.permute.xlu1 %1051  ;;  %v1020_v19 = vpop.permute.xlu0 %1019 }
 0x27d   : > { %v1413_v21 = vsel %vm1381_vm6, %v1380_v29, %v1052_v4  ;;  %v1397_v28 = vsel %vm1381_vm6, %v1364_v63, %v1020_v19 }
 0x280   : > { %v1148_v27 = vpop.permute.xlu1 %1147  ;;  %v1116_v31 = vpop.permute.xlu0 %1115 }
 0x281   : > { %v1445_v38 = vsel %vm1414_vm7, %v1412_v37, %v1148_v27  ;;  %v1429_v61 = vsel %vm1414_vm7, %v1396_v13, %v1116_v31 }
 0x282   : > { %2145 = vmatprep.mubr.msk.f32.mxu0 %vm1456_vm8, %v1429_v61  ;;  %2169 = vmatprep.mubr.msk.f32.mxu1 %vm1456_vm8, %v1445_v38 }
 0x284   : > { %v1150_v8 = vpop.permute.xlu1 %1149  ;;  %v1118_v34 = vpop.permute.xlu0 %1117 }
 0x285   : > { %v1446_v23 = vsel %vm1414_vm7, %v1413_v21, %v1150_v8  ;;  %v1430_v58 = vsel %vm1414_vm7, %v1397_v28, %v1118_v34 }
 0x286   : > { %2146 = vmatmul.mubr.msk.f32.gmra.mrb[14].mxu0 %vm1456_vm8, %v1430_v58  ;;  %2170 = vmatmul.mubr.msk.f32.gmra.mrb[14].mxu1 %vm1456_vm8, %v1446_v23 }
 0x29d   : > { %v2132_v9 = vpop.f32.mrb[4].mxu0  ;;  %v2156_v16 = vpop.f32.mrb[4].mxu1 }
 0x29e   : > { %vm1783_vm2 = vcmp.ge.f32.partialorder %v2132_v9, 0.0  ;;  %v1815_v36 = vmul.f32 0.1, %v2132_v9  ;;  %vm1799_vm3 = vcmp.ge.f32.partialorder %v2156_v16, 0.0  ;;  %v1831_v25 = vmul.f32 0.1, %v2156_v16 }
 0x29f   : > { %v1639_v30 = vpop.f32.mrb[5].mxu0  ;;  %v1719_v20 = vpop.f32.mrb[5].mxu1 }
 0x2a0   : > { %v1847_v62 = vsel %vm1783_vm2, %v2132_v9, %v1815_v36  ;;  %v1863_v22 = vsel %vm1799_vm3, %v2156_v16, %v1831_v25  ;;  %vm1782_vm4 = vcmp.ge.f32.partialorder %v1639_v30, 0.0  ;;  %v1814_v42 = vmul.f32 0.1, %v1639_v30 }
 0x2a1   : > { %1879 = vst.msk [vmem:[%s3697_s22 + $0x28] sm:$0xff] %vm1183_vm0, %v1847_v62  ;;  %1895 = vst.msk [vmem:[%s3697_s22 + $0xa8] sm:$0xff] %vm1183_vm0, %v1863_v22  ;;  %vm1798_vm5 = vcmp.ge.f32.partialorder %v1719_v20, 0.0  ;;  %v1830_v26 = vmul.f32 0.1, %v1719_v20 }
 0x2a2   : > { %v1846_v15 = vsel %vm1782_vm4, %v1639_v30, %v1814_v42 }
 0x2a3   : > { %1878 = vst.msk [vmem:[%s3697_s22 + $0x20] sm:$0xff] %vm1183_vm0, %v1846_v15  ;;  %v1862_v52 = vsel %vm1798_vm5, %v1719_v20, %v1830_v26 }
 0x2a4   : > { %1894 = vst.msk [vmem:[%s3697_s22 + $0xa0] sm:$0xff] %vm1183_vm0, %v1862_v52 }
 0x2c4   : > { %v2159_v57 = vpop.f32.mrb[6].mxu1 }
 0x2c5   : > { %v2135_v7 = vpop.f32.mrb[6].mxu0  ;;  %vm1801_vm6 = vcmp.ge.f32.partialorder %v2159_v57, 0.0  ;;  %v1833_v6 = vmul.f32 0.1, %v2159_v57  ;;  %v1729_v17 = vpop.f32.mrb[7].mxu1 }
 0x2c6   : > { %vm1785_vm7 = vcmp.ge.f32.partialorder %v2135_v7, 0.0  ;;  %v1817_v0 = vmul.f32 0.1, %v2135_v7  ;;  %v1649_v5 = vpop.f32.mrb[7].mxu0  ;;  %vm1800_vm8 = vcmp.ge.f32.partialorder %v1729_v17, 0.0 }
 0x2c7   : > { %v1865_v12 = vsel %vm1801_vm6, %v2159_v57, %v1833_v6  ;;  %vm1784_vm9 = vcmp.ge.f32.partialorder %v1649_v5, 0.0  ;;  %v1816_v59 = vmul.f32 0.1, %v1649_v5  ;;  %v1832_v46 = vmul.f32 0.1, %v1729_v17 }
 0x2c8   : > { %v1849_v53 = vsel %vm1785_vm7, %v2135_v7, %v1817_v0  ;;  %1897 = vst.msk [vmem:[%s3697_s22 + $0xb8] sm:$0xff] %vm1183_vm0, %v1865_v12 }
 0x2c9   : > { %1881 = vst.msk [vmem:[%s3697_s22 + $0x38] sm:$0xff] %vm1183_vm0, %v1849_v53  ;;  %v1848_v40 = vsel %vm1784_vm9, %v1649_v5, %v1816_v59  ;;  %v1864_v18 = vsel %vm1800_vm8, %v1729_v17, %v1832_v46 }
 0x2ca   : > { %1880 = vst.msk [vmem:[%s3697_s22 + $0x30] sm:$0xff] %vm1183_vm0, %v1848_v40  ;;  %1896 = vst.msk [vmem:[%s3697_s22 + $0xb0] sm:$0xff] %vm1183_vm0, %v1864_v18 }
 0x2ec   : > { %v2138_v55 = vpop.f32.mrb[8].mxu0  ;;  %v2162_v45 = vpop.f32.mrb[8].mxu1 }
 0x2ed   : > { %vm1787_vm10 = vcmp.ge.f32.partialorder %v2138_v55, 0.0  ;;  %v1819_v60 = vmul.f32 0.1, %v2138_v55  ;;  %vm1803_vm11 = vcmp.ge.f32.partialorder %v2162_v45, 0.0  ;;  %v1835_v1 = vmul.f32 0.1, %v2162_v45 }
 0x2ee   : > { %v1659_v35 = vpop.f32.mrb[9].mxu0  ;;  %v1739_v43 = vpop.f32.mrb[9].mxu1 }
 0x2ef   : > { %v1851_v50 = vsel %vm1787_vm10, %v2138_v55, %v1819_v60  ;;  %v1867_v24 = vsel %vm1803_vm11, %v2162_v45, %v1835_v1  ;;  %vm1786_vm12 = vcmp.ge.f32.partialorder %v1659_v35, 0.0  ;;  %v1818_v33 = vmul.f32 0.1, %v1659_v35 }
 0x2f0   : > { %1883 = vst.msk [vmem:[%s3697_s22 + $0x48] sm:$0xff] %vm1183_vm0, %v1851_v50  ;;  %1899 = vst.msk [vmem:[%s3697_s22 + $0xc8] sm:$0xff] %vm1183_vm0, %v1867_v24  ;;  %vm1802_vm13 = vcmp.ge.f32.partialorder %v1739_v43, 0.0  ;;  %v1834_v2 = vmul.f32 0.1, %v1739_v43 }
 0x2f1   : > { %v1850_v4 = vsel %vm1786_vm12, %v1659_v35, %v1818_v33 }
 0x2f2   : > { %1882 = vst.msk [vmem:[%s3697_s22 + $0x40] sm:$0xff] %vm1183_vm0, %v1850_v4  ;;  %v1866_v19 = vsel %vm1802_vm13, %v1739_v43, %v1834_v2 }
 0x2f3   : > { %1898 = vst.msk [vmem:[%s3697_s22 + $0xc0] sm:$0xff] %vm1183_vm0, %v1866_v19 }
 0x314   : > { %v2141_v14 = vpop.f32.mrb[10].mxu0  ;;  %v2165_v39 = vpop.f32.mrb[10].mxu1 }
 0x315   : > { %vm1789_vm14 = vcmp.ge.f32.partialorder %v2141_v14, 0.0  ;;  %v1821_v54 = vmul.f32 0.1, %v2141_v14  ;;  %vm1805_vm15 = vcmp.ge.f32.partialorder %v2165_v39, 0.0  ;;  %v1837_v44 = vmul.f32 0.1, %v2165_v39 }
 0x316   : > { %v1669_v10 = vpop.f32.mrb[11].mxu0  ;;  %v1749_v51 = vpop.f32.mrb[11].mxu1 }
 0x317   : > { %v1853_v56 = vsel %vm1789_vm14, %v2141_v14, %v1821_v54  ;;  %v1869_v47 = vsel %vm1805_vm15, %v2165_v39, %v1837_v44  ;;  %vm1788_vm1 = vcmp.ge.f32.partialorder %v1669_v10, 0.0  ;;  %v1820_v37 = vmul.f32 0.1, %v1669_v10 }
 0x318   : > { %1885 = vst.msk [vmem:[%s3697_s22 + $0x58] sm:$0xff] %vm1183_vm0, %v1853_v56  ;;  %1901 = vst.msk [vmem:[%s3697_s22 + $0xd8] sm:$0xff] %vm1183_vm0, %v1869_v47  ;;  %vm1804_vm2 = vcmp.ge.f32.partialorder %v1749_v51, 0.0  ;;  %v1836_v13 = vmul.f32 0.1, %v1749_v51 }
 0x319   : > { %v1852_v27 = vsel %vm1788_vm1, %v1669_v10, %v1820_v37 }
 0x31a   : > { %1884 = vst.msk [vmem:[%s3697_s22 + $0x50] sm:$0xff] %vm1183_vm0, %v1852_v27  ;;  %v1868_v31 = vsel %vm1804_vm2, %v1749_v51, %v1836_v13 }
 0x31b   : > { %1900 = vst.msk [vmem:[%s3697_s22 + $0xd0] sm:$0xff] %vm1183_vm0, %v1868_v31 }
 0x33d   : > { %v2144_v41 = vpop.f32.mrb[12].mxu0  ;;  %v2168_v49 = vpop.f32.mrb[12].mxu1 }
 0x33e   : > { %vm1791_vm3 = vcmp.ge.f32.partialorder %v2144_v41, 0.0  ;;  %v1823_v32 = vmul.f32 0.1, %v2144_v41  ;;  %vm1807_vm4 = vcmp.ge.f32.partialorder %v2168_v49, 0.0  ;;  %v1839_v48 = vmul.f32 0.1, %v2168_v49 }
 0x33f   : > { %v1679_v38 = vpop.f32.mrb[13].mxu0  ;;  %v1759_v61 = vpop.f32.mrb[13].mxu1 }
 0x340   : > { %v1855_v11 = vsel %vm1791_vm3, %v2144_v41, %v1823_v32  ;;  %v1871_v3 = vsel %vm1807_vm4, %v2168_v49, %v1839_v48  ;;  %vm1790_vm5 = vcmp.ge.f32.partialorder %v1679_v38, 0.0  ;;  %v1822_v29 = vmul.f32 0.1, %v1679_v38 }
 0x341   : > { %1887 = vst.msk [vmem:[%s3697_s22 + $0x68] sm:$0xff] %vm1183_vm0, %v1855_v11  ;;  %1903 = vst.msk [vmem:[%s3697_s22 + $0xe8] sm:$0xff] %vm1183_vm0, %v1871_v3  ;;  %vm1806_vm6 = vcmp.ge.f32.partialorder %v1759_v61, 0.0  ;;  %v1838_v63 = vmul.f32 0.1, %v1759_v61 }
 0x342   : > { %v1854_v21 = vsel %vm1790_vm5, %v1679_v38, %v1822_v29 }
 0x343   : > { %1886 = vst.msk [vmem:[%s3697_s22 + $0x60] sm:$0xff] %vm1183_vm0, %v1854_v21  ;;  %v1870_v28 = vsel %vm1806_vm6, %v1759_v61, %v1838_v63 }
 0x344   : > { %1902 = vst.msk [vmem:[%s3697_s22 + $0xe0] sm:$0xff] %vm1183_vm0, %v1870_v28 }
 0x359   : > { %v2147_v8 = vpop.f32.mrb[14].mxu0  ;;  %v2171_v34 = vpop.f32.mrb[14].mxu1 }
 0x35a   : > { %vm1793_vm7 = vcmp.ge.f32.partialorder %v2147_v8, 0.0  ;;  %v1825_v23 = vmul.f32 0.1, %v2147_v8  ;;  %vm1809_vm8 = vcmp.ge.f32.partialorder %v2171_v34, 0.0  ;;  %v1841_v58 = vmul.f32 0.1, %v2171_v34 }
 0x35b   : > { %v1689_v9 = vpop.f32.mrb[15].mxu0  ;;  %v1769_v16 = vpop.f32.mrb[15].mxu1 }
 0x35c   : > { %v1857_v36 = vsel %vm1793_vm7, %v2147_v8, %v1825_v23  ;;  %v1873_v25 = vsel %vm1809_vm8, %v2171_v34, %v1841_v58  ;;  %vm1792_vm9 = vcmp.ge.f32.partialorder %v1689_v9, 0.0  ;;  %v1824_v30 = vmul.f32 0.1, %v1689_v9 }
 0x35d   : > { %1889 = vst.msk [vmem:[%s3697_s22 + $0x78] sm:$0xff] %vm1183_vm0, %v1857_v36  ;;  %1905 = vst.msk [vmem:[%s3697_s22 + $0xf8] sm:$0xff] %vm1183_vm0, %v1873_v25  ;;  %vm1808_vm10 = vcmp.ge.f32.partialorder %v1769_v16, 0.0  ;;  %v1840_v20 = vmul.f32 0.1, %v1769_v16 }
 0x35e   : > { %v1856_v62 = vsel %vm1792_vm9, %v1689_v9, %v1824_v30 }
 0x35f   : > { %1888 = vst.msk [vmem:[%s3697_s22 + $0x70] sm:$0xff] %vm1183_vm0, %v1856_v62  ;;  %v1872_v22 = vsel %vm1808_vm10, %v1769_v16, %v1840_v20 }
 0x360   : > { %1904 = vst.msk [vmem:[%s3697_s22 + $0xf0] sm:$0xff] %vm1183_vm0, %v1872_v22 }
 0x361 PF: > { %s12_s11 = sadd.s32 1, %s2281_s11   ;;  %s4042_s9 = smov %s2277_s10 }
 0x362   : > { %p9_p5 = scmp.ge.s32.totalorder %s12_s11, 4   ;;  %s4043_s10 = smov %s4045_s12 }
 0x364   :  { %11 = sbr.rel (!%p9_p5) target bundleno = 2 (0x2), region = 61 }

</bundles_post_ra>
